<compile_context>
chip_gen: v5e
topology: v5e:2x2
jax: 0.10.0
libtpu: 0.0.40
codegen_flags: <defaults>
</compile_context>

<pallas_src>
import functools

import jax
import jax.numpy as jnp
import numpy as np
from jax.experimental import pallas as pl
from jax.experimental.pallas import tpu as pltpu

# ---------------------------------------------------------------------------
# Model configuration (small shapes consistent with the module constructor).
# ---------------------------------------------------------------------------
DIM = 32                       # dim
NUM_HEADS = 2                  # num_attention_heads
HEAD_DIM = DIM // NUM_HEADS    # attention_head_dim = 16
TIME_EMBED_DIM = 16            # time_embed_dim
FF_INNER = 4 * DIM             # FeedForward inner dim = 128
NORM_EPS = 1e-5                # CogVideoXLayerNormZero eps
QK_EPS = 1e-6                  # Attention qk layer-norm eps
GELU_C = 0.7978845608028654    # sqrt(2/pi), tanh-approx gelu
NEG_INF = -1e30                # additive attention-mask value


# ---------------------------------------------------------------------------
# In-kernel helpers (pure jnp; traced inside the Pallas kernel body)
# ---------------------------------------------------------------------------
def _layer_norm(x, gamma, beta, eps):
    mu = jnp.mean(x, axis=-1, keepdims=True)
    xc = x - mu
    var = jnp.mean(xc * xc, axis=-1, keepdims=True)
    return xc * jax.lax.rsqrt(var + eps) * gamma + beta


def _gelu_tanh(x):
    return 0.5 * x * (1.0 + jnp.tanh(GELU_C * (x + 0.044715 * x * x * x)))


# ---------------------------------------------------------------------------
# Fused block kernel (single program, everything VMEM-resident)
# ---------------------------------------------------------------------------
def _block_kernel(x_ref, temb_ref, selb_ref, hm_ref, bias_ref,
                  n1w_ref, n1b_ref, n1g_ref, n1bt_ref,
                  n2w_ref, n2b_ref, n2g_ref, n2bt_ref,
                  wqkv_ref, qg_ref, qb_ref, kg_ref, kb_ref, wo_ref, bo_ref,
                  w1_ref, b1_ref, w2_ref, b2_ref,
                  out_ref, maps_ref,
                  *, n_heads, head_dim, s_text, s_vis, n_concepts):
    rows, d = x_ref.shape                      # rows = B * (s_text+s_vis+n_c)
    s2 = s_text + s_vis
    bf = jnp.bfloat16

    x = x_ref[...]                             # packed [encoder|hidden|concept]
    hm = hm_ref[...]                           # [rows, 1]  1.0 for hidden rows

    # --- adaLN-zero modulation: one silu+matmul per norm layer, expanded to a
    #     per-row [rows, 3D] slab with a batch-select matmul + branch blend.
    temb = temb_ref[...]
    t = temb * (1.0 / (1.0 + jnp.exp(-temb)))  # silu
    emb1 = jnp.dot(t, n1w_ref[...],
                   preferred_element_type=jnp.float32) + n1b_ref[...]
    emb2 = jnp.dot(t, n2w_ref[...],
                   preferred_element_type=jnp.float32) + n2b_ref[...]
    m1 = jnp.dot(selb_ref[...], emb1, preferred_element_type=jnp.float32)
    m2 = jnp.dot(selb_ref[...], emb2, preferred_element_type=jnp.float32)

    def seg(m, i):
        # blend hidden-branch chunk i with encoder-branch chunk i+3 per row
        return (hm * m[:, i * d:(i + 1) * d]
                + (1.0 - hm) * m[:, (i + 3) * d:(i + 4) * d])

    shift1, scale1, gate1 = seg(m1, 0), seg(m1, 1) + 1.0, seg(m1, 2)
    shift2, scale2, gate2 = seg(m2, 0), seg(m2, 1) + 1.0, seg(m2, 2)

    # --- norm1 over the whole packed slab + single fused QKV matmul ----------
    xn1 = _layer_norm(x, n1g_ref[...], n1bt_ref[...], NORM_EPS) * scale1 + shift1
    qkv = jnp.dot(xn1.astype(bf), wqkv_ref[...],
                  preferred_element_type=jnp.float32)            # [rows, 3D]

    # --- head-stacked masked attention (covers BOTH torch attn1 calls) ------
    qs = jnp.concatenate([qkv[:, h * head_dim:(h + 1) * head_dim]
                          for h in range(n_heads)], axis=0)       # [H*rows, hd]
    ks = jnp.concatenate([qkv[:, d + h * head_dim:d + (h + 1) * head_dim]
                          for h in range(n_heads)], axis=0)
    vs = jnp.concatenate([qkv[:, 2 * d + h * head_dim:2 * d + (h + 1) * head_dim]
                          for h in range(n_heads)], axis=0)
    # qk layer-norm; 1/sqrt(head_dim) is pre-folded into qg/qb by the wrapper
    qs = _layer_norm(qs, qg_ref[...], qb_ref[...], QK_EPS)
    ks = _layer_norm(ks, kg_ref[...], kb_ref[...], QK_EPS)

    s = jax.lax.dot_general(qs.astype(bf), ks.astype(bf),
                            (((1,), (1,)), ((), ())),
                            preferred_element_type=jnp.float32) + bias_ref[...]
    mx = jnp.max(s, axis=-1, keepdims=True)
    e = jnp.exp(s - mx)
    p = e * pl.reciprocal(jnp.sum(e, axis=-1, keepdims=True), approx=True)
    o = jnp.dot(p.astype(bf), vs.astype(bf),
                preferred_element_type=jnp.float32)               # [H*rows, hd]

    att = jnp.concatenate([o[h * rows:(h + 1) * rows]
                           for h in range(n_heads)], axis=1)      # [rows, D]
    proj = jnp.dot(att.astype(bf), wo_ref[...],
                   preferred_element_type=jnp.float32) + bo_ref[...]

    # --- concept attention maps (batch 0, pre-residual), lane-dense padded ---
    maps = jax.lax.dot_general(proj[s2:s2 + n_concepts],          # concept b0
                               proj[s_text:s2],                   # hidden  b0
                               (((1,), (1,)), ((), ())),
                               preferred_element_type=jnp.float32)
    maps_ref[...] = jnp.zeros_like(maps_ref)
    maps_ref[0:n_concepts, 0:s_vis] = maps.astype(maps_ref.dtype)

    # --- gated attention residual, norm2, feed-forward, gated FF residual ----
    x = x + gate1 * proj
    xn2 = _layer_norm(x, n2g_ref[...], n2bt_ref[...], NORM_EPS) * scale2 + shift2
    ff_h = _gelu_tanh(jnp.dot(xn2.astype(bf), w1_ref[...],
                              preferred_element_type=jnp.float32) + b1_ref[...])
    ffo = jnp.dot(ff_h.astype(bf), w2_ref[...],
                  preferred_element_type=jnp.float32) + b2_ref[...]
    out_ref[...] = (x + gate2 * ffo).astype(out_ref.dtype)


# ---------------------------------------------------------------------------
# Static selection / mask tensors (built once per static shape, in numpy)
# ---------------------------------------------------------------------------
def _selection_tensors(batch, n_heads, s_text, s_vis, n_concepts):
    s_all = s_text + s_vis + n_concepts
    s2 = s_text + s_vis
    rows = batch * s_all

    tok = np.arange(rows) % s_all
    row_b = np.arange(rows) // s_all
    sel_b = (row_b[:, None] == np.arange(batch)[None, :]).astype(np.float32)
    hidmask = ((tok >= s_text) & (tok < s2)).astype(np.float32)[:, None]

    n = n_heads * rows
    r = np.arange(n)
    head = r // rows
    rb = (r % rows) // s_all
    rt = r % s_all
    same = (head[:, None] == head[None, :]) & (rb[:, None] == rb[None, :])
    q_main = rt < s2                 # encoder / hidden query
    k_main = rt < s2                 # encoder / hidden key
    q_con = rt >= s2                 # concept query
    k_con = rt >= s_text             # hidden / concept key
    allowed = same & ((q_main[:, None] & k_main[None, :]) |
                      (q_con[:, None] & k_con[None, :]))
    bias = np.where(allowed, 0.0, NEG_INF).astype(np.float32)
    return sel_b, hidmask, bias


# ---------------------------------------------------------------------------
# Module forward (kernel path)
# ---------------------------------------------------------------------------
def modified_cogvideox_block(params, hidden, encoder, concept, temb):
    B, s_vis, d = hidden.shape
    s_text = encoder.shape[1]
    n_c = concept.shape[1]
    s_all = s_text + s_vis + n_c
    rows = B * s_all

    # packed per-batch [encoder | hidden | concept] activation slab
    x = jnp.concatenate([encoder, hidden, concept], axis=1).reshape(rows, d)

    sel_b, hidmask, bias = _selection_tensors(B, NUM_HEADS, s_text, s_vis, n_c)

    n1, n2 = params["norm1"], params["norm2"]
    attn, ff = params["attn"], params["ff"]
    inv_s = 1.0 / float(HEAD_DIM) ** 0.5
    bf = jnp.bfloat16

    args = (x, temb, jnp.asarray(sel_b), jnp.asarray(hidmask), jnp.asarray(bias),
            n1["w"], n1["b"], n1["gamma"], n1["beta"],
            n2["w"], n2["b"], n2["gamma"], n2["beta"],
            attn["wqkv"].astype(bf),
            attn["q_gamma"] * inv_s, attn["q_beta"] * inv_s,
            attn["k_gamma"], attn["k_beta"],
            attn["wo"].astype(bf), attn["bo"],
            ff["w1"].astype(bf), ff["b1"], ff["w2"].astype(bf), ff["b2"])

    kernel = functools.partial(_block_kernel, n_heads=NUM_HEADS,
                               head_dim=HEAD_DIM, s_text=s_text,
                               s_vis=s_vis, n_concepts=n_c)

    # lane-dense padded maps output (sliced back in the wrapper)
    maps_rows = max(8, ((n_c + 7) // 8) * 8)
    maps_cols = max(128, ((s_vis + 127) // 128) * 128)

    flops = int(2 * rows * d * (3 * d + d + 2 * FF_INNER)
                + 4 * (NUM_HEADS * rows) ** 2 * HEAD_DIM
                + 2 * n_c * s_vis * d
                + 4 * B * TIME_EMBED_DIM * 6 * d
                + 4 * rows * B * 6 * d)
    transcendentals = int(rows * FF_INNER + (NUM_HEADS * rows) ** 2
                          + B * TIME_EMBED_DIM)
    bytes_accessed = int(sum(int(np.prod(a.shape)) * a.dtype.itemsize
                             for a in args)
                         + rows * d * 4 + maps_rows * maps_cols * 4)

    vmem = pl.BlockSpec(memory_space=pltpu.MemorySpace.VMEM)
    out, maps_pad = pl.pallas_call(
        kernel,
        out_shape=(jax.ShapeDtypeStruct((rows, d), hidden.dtype),
                   jax.ShapeDtypeStruct((maps_rows, maps_cols), jnp.float32)),
        in_specs=[vmem] * len(args),
        out_specs=(vmem, vmem),
        cost_estimate=pl.CostEstimate(flops=flops,
                                      transcendentals=transcendentals,
                                      bytes_accessed=bytes_accessed),
    )(*args)

    out = out.reshape(B, s_all, d)
    encoder_out = out[:, :s_text]
    hidden_out = out[:, s_text:s_text + s_vis]
    concept_out = out[:, s_text + s_vis:]
    maps = maps_pad[:n_c, :s_vis].astype(hidden.dtype)
    return hidden_out, encoder_out, concept_out, {
        "concept_attention_maps": maps}


# ---------------------------------------------------------------------------
# Pure-JAX reference (for correctness check)
# ---------------------------------------------------------------------------
def ref_layer_norm(x, gamma, beta, eps):
    mu = jnp.mean(x, axis=-1, keepdims=True)
    var = jnp.mean(jnp.square(x - mu), axis=-1, keepdims=True)
    return (x - mu) / jnp.sqrt(var + eps) * gamma + beta


def ref_norm_zero(p, hidden, encoder, temb):
    emb = jax.nn.silu(temb) @ p["w"] + p["b"]
    shift, scale, gate, e_shift, e_scale, e_gate = jnp.split(emb, 6, axis=1)
    nh = (ref_layer_norm(hidden, p["gamma"], p["beta"], NORM_EPS)
          * (1.0 + scale[:, None, :]) + shift[:, None, :])
    ne = (ref_layer_norm(encoder, p["gamma"], p["beta"], NORM_EPS)
          * (1.0 + e_scale[:, None, :]) + e_shift[:, None, :])
    return nh, ne, gate[:, None, :], e_gate[:, None, :]


def ref_attention(p, norm_hidden, norm_encoder):
    text_len = norm_encoder.shape[1]
    x = jnp.concatenate([norm_encoder, norm_hidden], axis=1)
    B, S, D = x.shape

    def split_heads(t):
        return t.reshape(B, S, NUM_HEADS, HEAD_DIM).transpose(0, 2, 1, 3)

    q = split_heads(x @ p["wq"])
    k = split_heads(x @ p["wk"])
    v = split_heads(x @ p["wv"])
    q = ref_layer_norm(q, p["q_gamma"], p["q_beta"], QK_EPS)
    k = ref_layer_norm(k, p["k_gamma"], p["k_beta"], QK_EPS)
    s = jnp.einsum("bhqd,bhkd->bhqk", q, k) / jnp.sqrt(jnp.float32(HEAD_DIM))
    a = jax.nn.softmax(s, axis=-1)
    o = jnp.einsum("bhqk,bhkd->bhqd", a, v)
    o = o.transpose(0, 2, 1, 3).reshape(B, S, D)
    o = o @ p["wo"] + p["bo"]
    return o[:, text_len:], o[:, :text_len]


def ref_ff(p, x):
    h = x @ p["w1"] + p["b1"]
    h = 0.5 * h * (1.0 + jnp.tanh(GELU_C * (h + 0.044715 * h ** 3)))
    return h @ p["w2"] + p["b2"]


def ref_forward(params, hidden, encoder, concept, temb):
    text_len = encoder.shape[1]
    nh, ne, gate_msa, enc_gate_msa = ref_norm_zero(
        params["norm1"], hidden, encoder, temb)
    _, nc, _, concept_gate_msa = ref_norm_zero(
        params["norm1"], hidden, concept, temb)
    _, attn_concept = ref_attention(params["attn"], nh, nc)
    concept = concept + concept_gate_msa * attn_concept
    _, nc2, _, concept_gate_ff = ref_norm_zero(
        params["norm2"], hidden, concept, temb)
    concept = concept + concept_gate_ff * ref_ff(params["ff"], nc2)
    attn_hidden, attn_encoder = ref_attention(params["attn"], nh, ne)
    maps = jnp.einsum("bnd,bcd->bcn", attn_hidden, attn_concept)[0]
    hidden = hidden + gate_msa * attn_hidden
    encoder = encoder + enc_gate_msa * attn_encoder
    nh2, ne2, gate_ff, enc_gate_ff = ref_norm_zero(
        params["norm2"], hidden, encoder, temb)
    ff_out = ref_ff(params["ff"], jnp.concatenate([ne2, nh2], axis=1))
    hidden = hidden + gate_ff * ff_out[:, text_len:]
    encoder = encoder + enc_gate_ff * ff_out[:, :text_len]
    return hidden, encoder, concept, {"concept_attention_maps": maps}


# ---------------------------------------------------------------------------
# Deterministic parameter init (all params 2-D so they map cleanly to VMEM)
# ---------------------------------------------------------------------------
def init_params(key):
    keys = iter(jax.random.split(key, 24))

    def nrm(shape, std):
        return (std * jax.random.normal(next(keys), shape)).astype(jnp.float32)

    def norm_zero_params():
        return dict(
            w=nrm((TIME_EMBED_DIM, 6 * DIM), 0.1),
            b=nrm((1, 6 * DIM), 0.1),
            gamma=1.0 + nrm((1, DIM), 0.1),
            beta=nrm((1, DIM), 0.1),
        )

    norm1 = norm_zero_params()
    norm2 = norm_zero_params()
    wq = nrm((DIM, DIM), 0.05)
    wk = nrm((DIM, DIM), 0.05)
    wv = nrm((DIM, DIM), 0.05)
    attn = dict(
        wq=wq, wk=wk, wv=wv,
        wqkv=jnp.concatenate([wq, wk, wv], axis=1),   # fused QKV, hoisted here
        q_gamma=1.0 + nrm((1, HEAD_DIM), 0.1),
        q_beta=nrm((1, HEAD_DIM), 0.1),
        k_gamma=1.0 + nrm((1, HEAD_DIM), 0.1),
        k_beta=nrm((1, HEAD_DIM), 0.1),
        wo=nrm((DIM, DIM), 0.05),
        bo=nrm((1, DIM), 0.02),
    )
    ff = dict(
        w1=nrm((DIM, FF_INNER), 0.05),
        b1=nrm((1, FF_INNER), 0.02),
        w2=nrm((FF_INNER, DIM), 0.05),
        b2=nrm((1, DIM), 0.02),
    )
    return dict(norm1=norm1, norm2=norm2, attn=attn, ff=ff)


# ---------------------------------------------------------------------------
# Main
# ---------------------------------------------------------------------------
if __name__ == "__main__":
    key = jax.random.PRNGKey(0)
    k_params, k_h, k_e, k_c, k_t = jax.random.split(key, 5)

    B, S_VIS, S_TEXT, N_CONCEPTS = 2, 16, 8, 4
    params = init_params(k_params)
    hidden = jax.random.normal(k_h, (B, S_VIS, DIM), jnp.float32)
    encoder = jax.random.normal(k_e, (B, S_TEXT, DIM), jnp.float32)
    concept = jax.random.normal(k_c, (B, N_CONCEPTS, DIM), jnp.float32)
    temb = jax.random.normal(k_t, (B, TIME_EMBED_DIM), jnp.float32)

    out = jax.jit(modified_cogvideox_block)(params, hidden, encoder, concept,
                                            temb)
    out = jax.block_until_ready(out)
    h_k, e_k, c_k, d_k = out

    h_r, e_r, c_r, d_r = ref_forward(params, hidden, encoder, concept, temb)

    np.testing.assert_allclose(np.asarray(h_k), np.asarray(h_r),
                               rtol=2e-2, atol=2e-2)
    np.testing.assert_allclose(np.asarray(e_k), np.asarray(e_r),
                               rtol=2e-2, atol=2e-2)
    np.testing.assert_allclose(np.asarray(c_k), np.asarray(c_r),
                               rtol=2e-2, atol=2e-2)
    np.testing.assert_allclose(np.asarray(d_k["concept_attention_maps"]),
                               np.asarray(d_r["concept_attention_maps"]),
                               rtol=2e-2, atol=2e-2)
    print("KERNEL_OK")
</pallas_src>

<mosaic_0001>
module attributes {stable_mosaic.version = 11 : i64} {
  func.func @_block_kernel(%arg0: memref<56x32xf32, #tpu.memory_space<vmem>>, %arg1: memref<2x16xf32, #tpu.memory_space<vmem>>, %arg2: memref<56x2xf32, #tpu.memory_space<vmem>>, %arg3: memref<56x1xf32, #tpu.memory_space<vmem>>, %arg4: memref<112x112xf32, #tpu.memory_space<vmem>>, %arg5: memref<16x192xf32, #tpu.memory_space<vmem>>, %arg6: memref<1x192xf32, #tpu.memory_space<vmem>>, %arg7: memref<1x32xf32, #tpu.memory_space<vmem>>, %arg8: memref<1x32xf32, #tpu.memory_space<vmem>>, %arg9: memref<16x192xf32, #tpu.memory_space<vmem>>, %arg10: memref<1x192xf32, #tpu.memory_space<vmem>>, %arg11: memref<1x32xf32, #tpu.memory_space<vmem>>, %arg12: memref<1x32xf32, #tpu.memory_space<vmem>>, %arg13: memref<32x96xbf16, #tpu.memory_space<vmem>>, %arg14: memref<1x16xf32, #tpu.memory_space<vmem>>, %arg15: memref<1x16xf32, #tpu.memory_space<vmem>>, %arg16: memref<1x16xf32, #tpu.memory_space<vmem>>, %arg17: memref<1x16xf32, #tpu.memory_space<vmem>>, %arg18: memref<32x32xbf16, #tpu.memory_space<vmem>>, %arg19: memref<1x32xf32, #tpu.memory_space<vmem>>, %arg20: memref<32x128xbf16, #tpu.memory_space<vmem>>, %arg21: memref<1x128xf32, #tpu.memory_space<vmem>>, %arg22: memref<128x32xbf16, #tpu.memory_space<vmem>>, %arg23: memref<1x32xf32, #tpu.memory_space<vmem>>, %arg24: memref<56x32xf32, #tpu.memory_space<vmem>>, %arg25: memref<8x128xf32, #tpu.memory_space<vmem>>) attributes {dimension_semantics = [], scalar_prefetch = 0 : i64, scratch_operands = 0 : i64, tpu.core_type = #tpu.core_type<tc>} {
    %c0 = arith.constant 0 : index
    %c0_0 = arith.constant 0 : index
    %0 = vector.load %arg0[%c0, %c0_0] : memref<56x32xf32, #tpu.memory_space<vmem>>, vector<56x32xf32>
    %c0_1 = arith.constant 0 : index
    %c0_2 = arith.constant 0 : index
    %1 = vector.load %arg3[%c0_1, %c0_2] : memref<56x1xf32, #tpu.memory_space<vmem>>, vector<56x1xf32>
    %c0_3 = arith.constant 0 : index
    %c0_4 = arith.constant 0 : index
    %2 = vector.load %arg1[%c0_3, %c0_4] : memref<2x16xf32, #tpu.memory_space<vmem>>, vector<2x16xf32>
    %cst = arith.constant 0.000000e+00 : f32
    %3 = vector.broadcast %cst : f32 to vector<2x16xf32>
    %4 = arith.subf %3, %2 : vector<2x16xf32>
    %5 = math.exp %4 : vector<2x16xf32>
    %cst_5 = arith.constant 1.000000e+00 : f32
    %6 = vector.broadcast %cst_5 : f32 to vector<2x16xf32>
    %7 = arith.addf %6, %5 : vector<2x16xf32>
    %cst_6 = arith.constant 1.000000e+00 : f32
    %8 = vector.broadcast %cst_6 : f32 to vector<2x16xf32>
    %9 = arith.divf %8, %7 : vector<2x16xf32>
    %10 = arith.mulf %2, %9 : vector<2x16xf32>
    %c0_7 = arith.constant 0 : index
    %c0_8 = arith.constant 0 : index
    %11 = vector.load %arg5[%c0_7, %c0_8] : memref<16x192xf32, #tpu.memory_space<vmem>>, vector<16x192xf32>
    %cst_9 = arith.constant dense<0.000000e+00> : vector<2x192xf32>
    %12 = tpu.matmul %10, %11, %cst_9 {dimension_numbers = #tpu.dot_dimension_numbers<[1], [0], [0], [1], [0, 0, 1, 1], [], []>} : vector<2x16xf32>, vector<16x192xf32>, vector<2x192xf32> -> vector<2x192xf32>
    %c0_10 = arith.constant 0 : index
    %c0_11 = arith.constant 0 : index
    %13 = vector.load %arg6[%c0_10, %c0_11] : memref<1x192xf32, #tpu.memory_space<vmem>>, vector<1x192xf32>
    %14 = vector.broadcast %13 : vector<1x192xf32> to vector<2x192xf32>
    %15 = arith.addf %12, %14 : vector<2x192xf32>
    %c0_12 = arith.constant 0 : index
    %c0_13 = arith.constant 0 : index
    %16 = vector.load %arg9[%c0_12, %c0_13] : memref<16x192xf32, #tpu.memory_space<vmem>>, vector<16x192xf32>
    %cst_14 = arith.constant dense<0.000000e+00> : vector<2x192xf32>
    %17 = tpu.matmul %10, %16, %cst_14 {dimension_numbers = #tpu.dot_dimension_numbers<[1], [0], [0], [1], [0, 0, 1, 1], [], []>} : vector<2x16xf32>, vector<16x192xf32>, vector<2x192xf32> -> vector<2x192xf32>
    %c0_15 = arith.constant 0 : index
    %c0_16 = arith.constant 0 : index
    %18 = vector.load %arg10[%c0_15, %c0_16] : memref<1x192xf32, #tpu.memory_space<vmem>>, vector<1x192xf32>
    %19 = vector.broadcast %18 : vector<1x192xf32> to vector<2x192xf32>
    %20 = arith.addf %17, %19 : vector<2x192xf32>
    %c0_17 = arith.constant 0 : index
    %c0_18 = arith.constant 0 : index
    %21 = vector.load %arg2[%c0_17, %c0_18] : memref<56x2xf32, #tpu.memory_space<vmem>>, vector<56x2xf32>
    %cst_19 = arith.constant dense<0.000000e+00> : vector<56x192xf32>
    %22 = tpu.matmul %21, %15, %cst_19 {dimension_numbers = #tpu.dot_dimension_numbers<[1], [0], [0], [1], [0, 0, 1, 1], [], []>} : vector<56x2xf32>, vector<2x192xf32>, vector<56x192xf32> -> vector<56x192xf32>
    %c0_20 = arith.constant 0 : index
    %c0_21 = arith.constant 0 : index
    %23 = vector.load %arg2[%c0_20, %c0_21] : memref<56x2xf32, #tpu.memory_space<vmem>>, vector<56x2xf32>
    %cst_22 = arith.constant dense<0.000000e+00> : vector<56x192xf32>
    %24 = tpu.matmul %23, %20, %cst_22 {dimension_numbers = #tpu.dot_dimension_numbers<[1], [0], [0], [1], [0, 0, 1, 1], [], []>} : vector<56x2xf32>, vector<2x192xf32>, vector<56x192xf32> -> vector<56x192xf32>
    %25 = vector.extract_strided_slice %22 {offsets = [0, 0], sizes = [56, 32], strides = [1, 1]} : vector<56x192xf32> to vector<56x32xf32>
    %26 = vector.broadcast %1 : vector<56x1xf32> to vector<56x32xf32>
    %27 = arith.mulf %26, %25 : vector<56x32xf32>
    %cst_23 = arith.constant 1.000000e+00 : f32
    %28 = vector.broadcast %cst_23 : f32 to vector<56x1xf32>
    %29 = arith.subf %28, %1 : vector<56x1xf32>
    %30 = vector.extract_strided_slice %22 {offsets = [0, 96], sizes = [56, 32], strides = [1, 1]} : vector<56x192xf32> to vector<56x32xf32>
    %31 = vector.broadcast %29 : vector<56x1xf32> to vector<56x32xf32>
    %32 = arith.mulf %31, %30 : vector<56x32xf32>
    %33 = arith.addf %27, %32 : vector<56x32xf32>
    %34 = vector.extract_strided_slice %22 {offsets = [0, 32], sizes = [56, 32], strides = [1, 1]} : vector<56x192xf32> to vector<56x32xf32>
    %35 = vector.broadcast %1 : vector<56x1xf32> to vector<56x32xf32>
    %36 = arith.mulf %35, %34 : vector<56x32xf32>
    %cst_24 = arith.constant 1.000000e+00 : f32
    %37 = vector.broadcast %cst_24 : f32 to vector<56x1xf32>
    %38 = arith.subf %37, %1 : vector<56x1xf32>
    %39 = vector.extract_strided_slice %22 {offsets = [0, 128], sizes = [56, 32], strides = [1, 1]} : vector<56x192xf32> to vector<56x32xf32>
    %40 = vector.broadcast %38 : vector<56x1xf32> to vector<56x32xf32>
    %41 = arith.mulf %40, %39 : vector<56x32xf32>
    %42 = arith.addf %36, %41 : vector<56x32xf32>
    %cst_25 = arith.constant 1.000000e+00 : f32
    %43 = vector.broadcast %cst_25 : f32 to vector<56x32xf32>
    %44 = arith.addf %42, %43 : vector<56x32xf32>
    %45 = vector.extract_strided_slice %22 {offsets = [0, 64], sizes = [56, 32], strides = [1, 1]} : vector<56x192xf32> to vector<56x32xf32>
    %46 = vector.broadcast %1 : vector<56x1xf32> to vector<56x32xf32>
    %47 = arith.mulf %46, %45 : vector<56x32xf32>
    %cst_26 = arith.constant 1.000000e+00 : f32
    %48 = vector.broadcast %cst_26 : f32 to vector<56x1xf32>
    %49 = arith.subf %48, %1 : vector<56x1xf32>
    %50 = vector.extract_strided_slice %22 {offsets = [0, 160], sizes = [56, 32], strides = [1, 1]} : vector<56x192xf32> to vector<56x32xf32>
    %51 = vector.broadcast %49 : vector<56x1xf32> to vector<56x32xf32>
    %52 = arith.mulf %51, %50 : vector<56x32xf32>
    %53 = arith.addf %47, %52 : vector<56x32xf32>
    %54 = vector.extract_strided_slice %24 {offsets = [0, 0], sizes = [56, 32], strides = [1, 1]} : vector<56x192xf32> to vector<56x32xf32>
    %55 = vector.broadcast %1 : vector<56x1xf32> to vector<56x32xf32>
    %56 = arith.mulf %55, %54 : vector<56x32xf32>
    %cst_27 = arith.constant 1.000000e+00 : f32
    %57 = vector.broadcast %cst_27 : f32 to vector<56x1xf32>
    %58 = arith.subf %57, %1 : vector<56x1xf32>
    %59 = vector.extract_strided_slice %24 {offsets = [0, 96], sizes = [56, 32], strides = [1, 1]} : vector<56x192xf32> to vector<56x32xf32>
    %60 = vector.broadcast %58 : vector<56x1xf32> to vector<56x32xf32>
    %61 = arith.mulf %60, %59 : vector<56x32xf32>
    %62 = arith.addf %56, %61 : vector<56x32xf32>
    %63 = vector.extract_strided_slice %24 {offsets = [0, 32], sizes = [56, 32], strides = [1, 1]} : vector<56x192xf32> to vector<56x32xf32>
    %64 = vector.broadcast %1 : vector<56x1xf32> to vector<56x32xf32>
    %65 = arith.mulf %64, %63 : vector<56x32xf32>
    %cst_28 = arith.constant 1.000000e+00 : f32
    %66 = vector.broadcast %cst_28 : f32 to vector<56x1xf32>
    %67 = arith.subf %66, %1 : vector<56x1xf32>
    %68 = vector.extract_strided_slice %24 {offsets = [0, 128], sizes = [56, 32], strides = [1, 1]} : vector<56x192xf32> to vector<56x32xf32>
    %69 = vector.broadcast %67 : vector<56x1xf32> to vector<56x32xf32>
    %70 = arith.mulf %69, %68 : vector<56x32xf32>
    %71 = arith.addf %65, %70 : vector<56x32xf32>
    %cst_29 = arith.constant 1.000000e+00 : f32
    %72 = vector.broadcast %cst_29 : f32 to vector<56x32xf32>
    %73 = arith.addf %71, %72 : vector<56x32xf32>
    %74 = vector.extract_strided_slice %24 {offsets = [0, 64], sizes = [56, 32], strides = [1, 1]} : vector<56x192xf32> to vector<56x32xf32>
    %75 = vector.broadcast %1 : vector<56x1xf32> to vector<56x32xf32>
    %76 = arith.mulf %75, %74 : vector<56x32xf32>
    %cst_30 = arith.constant 1.000000e+00 : f32
    %77 = vector.broadcast %cst_30 : f32 to vector<56x1xf32>
    %78 = arith.subf %77, %1 : vector<56x1xf32>
    %79 = vector.extract_strided_slice %24 {offsets = [0, 160], sizes = [56, 32], strides = [1, 1]} : vector<56x192xf32> to vector<56x32xf32>
    %80 = vector.broadcast %78 : vector<56x1xf32> to vector<56x32xf32>
    %81 = arith.mulf %80, %79 : vector<56x32xf32>
    %82 = arith.addf %76, %81 : vector<56x32xf32>
    %c0_31 = arith.constant 0 : index
    %c0_32 = arith.constant 0 : index
    %83 = vector.load %arg7[%c0_31, %c0_32] : memref<1x32xf32, #tpu.memory_space<vmem>>, vector<1x32xf32>
    %c0_33 = arith.constant 0 : index
    %c0_34 = arith.constant 0 : index
    %84 = vector.load %arg8[%c0_33, %c0_34] : memref<1x32xf32, #tpu.memory_space<vmem>>, vector<1x32xf32>
    %cst_35 = arith.constant dense<0.000000e+00> : vector<56xf32>
    %85 = vector.multi_reduction <add>, %0, %cst_35 [1] : vector<56x32xf32> to vector<56xf32>
    %86 = vector.shape_cast %85 : vector<56xf32> to vector<56x1xf32>
    %cst_36 = arith.constant 3.200000e+01 : f32
    %87 = vector.broadcast %cst_36 : f32 to vector<56x1xf32>
    %88 = arith.divf %86, %87 : vector<56x1xf32>
    %89 = vector.broadcast %88 : vector<56x1xf32> to vector<56x32xf32>
    %90 = arith.subf %0, %89 : vector<56x32xf32>
    %91 = arith.mulf %90, %90 : vector<56x32xf32>
    %cst_37 = arith.constant dense<0.000000e+00> : vector<56xf32>
    %92 = vector.multi_reduction <add>, %91, %cst_37 [1] : vector<56x32xf32> to vector<56xf32>
    %93 = vector.shape_cast %92 : vector<56xf32> to vector<56x1xf32>
    %cst_38 = arith.constant 3.200000e+01 : f32
    %94 = vector.broadcast %cst_38 : f32 to vector<56x1xf32>
    %95 = arith.divf %93, %94 : vector<56x1xf32>
    %cst_39 = arith.constant 9.99999974E-6 : f32
    %96 = vector.broadcast %cst_39 : f32 to vector<56x1xf32>
    %97 = arith.addf %95, %96 : vector<56x1xf32>
    %98 = math.rsqrt %97 : vector<56x1xf32>
    %99 = vector.broadcast %98 : vector<56x1xf32> to vector<56x32xf32>
    %100 = arith.mulf %90, %99 : vector<56x32xf32>
    %101 = vector.broadcast %83 : vector<1x32xf32> to vector<56x32xf32>
    %102 = arith.mulf %100, %101 : vector<56x32xf32>
    %103 = vector.broadcast %84 : vector<1x32xf32> to vector<56x32xf32>
    %104 = arith.addf %102, %103 : vector<56x32xf32>
    %105 = arith.mulf %104, %44 : vector<56x32xf32>
    %106 = arith.addf %105, %33 : vector<56x32xf32>
    %107 = arith.truncf %106 : vector<56x32xf32> to vector<56x32xbf16>
    %c0_40 = arith.constant 0 : index
    %c0_41 = arith.constant 0 : index
    %108 = vector.load %arg13[%c0_40, %c0_41] : memref<32x96xbf16, #tpu.memory_space<vmem>>, vector<32x96xbf16>
    %cst_42 = arith.constant dense<0.000000e+00> : vector<56x96xf32>
    %109 = tpu.matmul %107, %108, %cst_42 {dimension_numbers = #tpu.dot_dimension_numbers<[1], [0], [0], [1], [0, 0, 1, 1], [], []>} : vector<56x32xbf16>, vector<32x96xbf16>, vector<56x96xf32> -> vector<56x96xf32>
    %110 = vector.extract_strided_slice %109 {offsets = [0, 0], sizes = [56, 16], strides = [1, 1]} : vector<56x96xf32> to vector<56x16xf32>
    %111 = vector.extract_strided_slice %109 {offsets = [0, 16], sizes = [56, 16], strides = [1, 1]} : vector<56x96xf32> to vector<56x16xf32>
    %112 = tpu.concatenate %110, %111 in 0 : vector<56x16xf32>, vector<56x16xf32> -> vector<112x16xf32>
    %113 = vector.extract_strided_slice %109 {offsets = [0, 32], sizes = [56, 16], strides = [1, 1]} : vector<56x96xf32> to vector<56x16xf32>
    %114 = vector.extract_strided_slice %109 {offsets = [0, 48], sizes = [56, 16], strides = [1, 1]} : vector<56x96xf32> to vector<56x16xf32>
    %115 = tpu.concatenate %113, %114 in 0 : vector<56x16xf32>, vector<56x16xf32> -> vector<112x16xf32>
    %116 = vector.extract_strided_slice %109 {offsets = [0, 64], sizes = [56, 16], strides = [1, 1]} : vector<56x96xf32> to vector<56x16xf32>
    %117 = vector.extract_strided_slice %109 {offsets = [0, 80], sizes = [56, 16], strides = [1, 1]} : vector<56x96xf32> to vector<56x16xf32>
    %118 = tpu.concatenate %116, %117 in 0 : vector<56x16xf32>, vector<56x16xf32> -> vector<112x16xf32>
    %c0_43 = arith.constant 0 : index
    %c0_44 = arith.constant 0 : index
    %119 = vector.load %arg14[%c0_43, %c0_44] : memref<1x16xf32, #tpu.memory_space<vmem>>, vector<1x16xf32>
    %c0_45 = arith.constant 0 : index
    %c0_46 = arith.constant 0 : index
    %120 = vector.load %arg15[%c0_45, %c0_46] : memref<1x16xf32, #tpu.memory_space<vmem>>, vector<1x16xf32>
    %cst_47 = arith.constant dense<0.000000e+00> : vector<112xf32>
    %121 = vector.multi_reduction <add>, %112, %cst_47 [1] : vector<112x16xf32> to vector<112xf32>
    %122 = vector.shape_cast %121 : vector<112xf32> to vector<112x1xf32>
    %cst_48 = arith.constant 1.600000e+01 : f32
    %123 = vector.broadcast %cst_48 : f32 to vector<112x1xf32>
    %124 = arith.divf %122, %123 : vector<112x1xf32>
    %125 = vector.broadcast %124 : vector<112x1xf32> to vector<112x16xf32>
    %126 = arith.subf %112, %125 : vector<112x16xf32>
    %127 = arith.mulf %126, %126 : vector<112x16xf32>
    %cst_49 = arith.constant dense<0.000000e+00> : vector<112xf32>
    %128 = vector.multi_reduction <add>, %127, %cst_49 [1] : vector<112x16xf32> to vector<112xf32>
    %129 = vector.shape_cast %128 : vector<112xf32> to vector<112x1xf32>
    %cst_50 = arith.constant 1.600000e+01 : f32
    %130 = vector.broadcast %cst_50 : f32 to vector<112x1xf32>
    %131 = arith.divf %129, %130 : vector<112x1xf32>
    %cst_51 = arith.constant 9.99999997E-7 : f32
    %132 = vector.broadcast %cst_51 : f32 to vector<112x1xf32>
    %133 = arith.addf %131, %132 : vector<112x1xf32>
    %134 = math.rsqrt %133 : vector<112x1xf32>
    %135 = vector.broadcast %134 : vector<112x1xf32> to vector<112x16xf32>
    %136 = arith.mulf %126, %135 : vector<112x16xf32>
    %137 = vector.broadcast %119 : vector<1x16xf32> to vector<112x16xf32>
    %138 = arith.mulf %136, %137 : vector<112x16xf32>
    %139 = vector.broadcast %120 : vector<1x16xf32> to vector<112x16xf32>
    %140 = arith.addf %138, %139 : vector<112x16xf32>
    %c0_52 = arith.constant 0 : index
    %c0_53 = arith.constant 0 : index
    %141 = vector.load %arg16[%c0_52, %c0_53] : memref<1x16xf32, #tpu.memory_space<vmem>>, vector<1x16xf32>
    %c0_54 = arith.constant 0 : index
    %c0_55 = arith.constant 0 : index
    %142 = vector.load %arg17[%c0_54, %c0_55] : memref<1x16xf32, #tpu.memory_space<vmem>>, vector<1x16xf32>
    %cst_56 = arith.constant dense<0.000000e+00> : vector<112xf32>
    %143 = vector.multi_reduction <add>, %115, %cst_56 [1] : vector<112x16xf32> to vector<112xf32>
    %144 = vector.shape_cast %143 : vector<112xf32> to vector<112x1xf32>
    %cst_57 = arith.constant 1.600000e+01 : f32
    %145 = vector.broadcast %cst_57 : f32 to vector<112x1xf32>
    %146 = arith.divf %144, %145 : vector<112x1xf32>
    %147 = vector.broadcast %146 : vector<112x1xf32> to vector<112x16xf32>
    %148 = arith.subf %115, %147 : vector<112x16xf32>
    %149 = arith.mulf %148, %148 : vector<112x16xf32>
    %cst_58 = arith.constant dense<0.000000e+00> : vector<112xf32>
    %150 = vector.multi_reduction <add>, %149, %cst_58 [1] : vector<112x16xf32> to vector<112xf32>
    %151 = vector.shape_cast %150 : vector<112xf32> to vector<112x1xf32>
    %cst_59 = arith.constant 1.600000e+01 : f32
    %152 = vector.broadcast %cst_59 : f32 to vector<112x1xf32>
    %153 = arith.divf %151, %152 : vector<112x1xf32>
    %cst_60 = arith.constant 9.99999997E-7 : f32
    %154 = vector.broadcast %cst_60 : f32 to vector<112x1xf32>
    %155 = arith.addf %153, %154 : vector<112x1xf32>
    %156 = math.rsqrt %155 : vector<112x1xf32>
    %157 = vector.broadcast %156 : vector<112x1xf32> to vector<112x16xf32>
    %158 = arith.mulf %148, %157 : vector<112x16xf32>
    %159 = vector.broadcast %141 : vector<1x16xf32> to vector<112x16xf32>
    %160 = arith.mulf %158, %159 : vector<112x16xf32>
    %161 = vector.broadcast %142 : vector<1x16xf32> to vector<112x16xf32>
    %162 = arith.addf %160, %161 : vector<112x16xf32>
    %163 = arith.truncf %140 : vector<112x16xf32> to vector<112x16xbf16>
    %164 = arith.truncf %162 : vector<112x16xf32> to vector<112x16xbf16>
    %cst_61 = arith.constant dense<0.000000e+00> : vector<112x112xf32>
    %165 = tpu.matmul %163, %164, %cst_61 {dimension_numbers = #tpu.dot_dimension_numbers<[1], [1], [0], [0], [0, 0, 1, 0], [], []>} : vector<112x16xbf16>, vector<112x16xbf16>, vector<112x112xf32> -> vector<112x112xf32>
    %c0_62 = arith.constant 0 : index
    %c0_63 = arith.constant 0 : index
    %166 = vector.load %arg4[%c0_62, %c0_63] : memref<112x112xf32, #tpu.memory_space<vmem>>, vector<112x112xf32>
    %167 = arith.addf %165, %166 : vector<112x112xf32>
    %cst_64 = arith.constant dense<0xFF800000> : vector<112xf32>
    %168 = vector.multi_reduction <maximumf>, %167, %cst_64 [1] : vector<112x112xf32> to vector<112xf32>
    %169 = vector.shape_cast %168 : vector<112xf32> to vector<112x1xf32>
    %170 = vector.broadcast %169 : vector<112x1xf32> to vector<112x112xf32>
    %171 = arith.subf %167, %170 : vector<112x112xf32>
    %172 = math.exp %171 : vector<112x112xf32>
    %cst_65 = arith.constant dense<0.000000e+00> : vector<112xf32>
    %173 = vector.multi_reduction <add>, %172, %cst_65 [1] : vector<112x112xf32> to vector<112xf32>
    %174 = vector.shape_cast %173 : vector<112xf32> to vector<112x1xf32>
    %175 = tpu.reciprocal %174 {approx = true} : vector<112x1xf32> -> vector<112x1xf32>
    %176 = vector.broadcast %175 : vector<112x1xf32> to vector<112x112xf32>
    %177 = arith.mulf %172, %176 : vector<112x112xf32>
    %178 = arith.truncf %177 : vector<112x112xf32> to vector<112x112xbf16>
    %179 = arith.truncf %118 : vector<112x16xf32> to vector<112x16xbf16>
    %cst_66 = arith.constant dense<0.000000e+00> : vector<112x16xf32>
    %180 = tpu.matmul %178, %179, %cst_66 {dimension_numbers = #tpu.dot_dimension_numbers<[1], [0], [0], [1], [0, 0, 1, 1], [], []>} : vector<112x112xbf16>, vector<112x16xbf16>, vector<112x16xf32> -> vector<112x16xf32>
    %181 = vector.extract_strided_slice %180 {offsets = [0, 0], sizes = [56, 16], strides = [1, 1]} : vector<112x16xf32> to vector<56x16xf32>
    %182 = vector.extract_strided_slice %180 {offsets = [56, 0], sizes = [56, 16], strides = [1, 1]} : vector<112x16xf32> to vector<56x16xf32>
    %183 = tpu.concatenate %181, %182 in 1 : vector<56x16xf32>, vector<56x16xf32> -> vector<56x32xf32>
    %184 = arith.truncf %183 : vector<56x32xf32> to vector<56x32xbf16>
    %c0_67 = arith.constant 0 : index
    %c0_68 = arith.constant 0 : index
    %185 = vector.load %arg18[%c0_67, %c0_68] : memref<32x32xbf16, #tpu.memory_space<vmem>>, vector<32x32xbf16>
    %cst_69 = arith.constant dense<0.000000e+00> : vector<56x32xf32>
    %186 = tpu.matmul %184, %185, %cst_69 {dimension_numbers = #tpu.dot_dimension_numbers<[1], [0], [0], [1], [0, 0, 1, 1], [], []>} : vector<56x32xbf16>, vector<32x32xbf16>, vector<56x32xf32> -> vector<56x32xf32>
    %c0_70 = arith.constant 0 : index
    %c0_71 = arith.constant 0 : index
    %187 = vector.load %arg19[%c0_70, %c0_71] : memref<1x32xf32, #tpu.memory_space<vmem>>, vector<1x32xf32>
    %188 = vector.broadcast %187 : vector<1x32xf32> to vector<56x32xf32>
    %189 = arith.addf %186, %188 : vector<56x32xf32>
    %190 = vector.extract_strided_slice %189 {offsets = [24, 0], sizes = [4, 32], strides = [1, 1]} : vector<56x32xf32> to vector<4x32xf32>
    %191 = vector.extract_strided_slice %189 {offsets = [8, 0], sizes = [16, 32], strides = [1, 1]} : vector<56x32xf32> to vector<16x32xf32>
    %cst_72 = arith.constant dense<0.000000e+00> : vector<4x16xf32>
    %192 = tpu.matmul %190, %191, %cst_72 {dimension_numbers = #tpu.dot_dimension_numbers<[1], [1], [0], [0], [0, 0, 1, 0], [], []>} : vector<4x32xf32>, vector<16x32xf32>, vector<4x16xf32> -> vector<4x16xf32>
    %cst_73 = arith.constant 0.000000e+00 : f32
    %193 = vector.broadcast %cst_73 : f32 to vector<8x128xf32>
    %c0_74 = arith.constant 0 : index
    %c0_75 = arith.constant 0 : index
    %194 = vector.load %arg25[%c0_74, %c0_75] : memref<8x128xf32, #tpu.memory_space<vmem>>, vector<8x128xf32>
    tpu.vector_store %arg25[%c0_74, %c0_75], %193 {strides = array<i32>} : memref<8x128xf32, #tpu.memory_space<vmem>>, vector<8x128xf32>,
    %c0_76 = arith.constant 0 : index
    %c0_77 = arith.constant 0 : index
    %195 = vector.load %arg25[%c0_76, %c0_77] : memref<8x128xf32, #tpu.memory_space<vmem>>, vector<4x16xf32>
    tpu.vector_store %arg25[%c0_76, %c0_77], %192 {strides = array<i32>} : memref<8x128xf32, #tpu.memory_space<vmem>>, vector<4x16xf32>,
    %196 = arith.mulf %53, %189 : vector<56x32xf32>
    %197 = arith.addf %0, %196 : vector<56x32xf32>
    %c0_78 = arith.constant 0 : index
    %c0_79 = arith.constant 0 : index
    %198 = vector.load %arg11[%c0_78, %c0_79] : memref<1x32xf32, #tpu.memory_space<vmem>>, vector<1x32xf32>
    %c0_80 = arith.constant 0 : index
    %c0_81 = arith.constant 0 : index
    %199 = vector.load %arg12[%c0_80, %c0_81] : memref<1x32xf32, #tpu.memory_space<vmem>>, vector<1x32xf32>
    %cst_82 = arith.constant dense<0.000000e+00> : vector<56xf32>
    %200 = vector.multi_reduction <add>, %197, %cst_82 [1] : vector<56x32xf32> to vector<56xf32>
    %201 = vector.shape_cast %200 : vector<56xf32> to vector<56x1xf32>
    %cst_83 = arith.constant 3.200000e+01 : f32
    %202 = vector.broadcast %cst_83 : f32 to vector<56x1xf32>
    %203 = arith.divf %201, %202 : vector<56x1xf32>
    %204 = vector.broadcast %203 : vector<56x1xf32> to vector<56x32xf32>
    %205 = arith.subf %197, %204 : vector<56x32xf32>
    %206 = arith.mulf %205, %205 : vector<56x32xf32>
    %cst_84 = arith.constant dense<0.000000e+00> : vector<56xf32>
    %207 = vector.multi_reduction <add>, %206, %cst_84 [1] : vector<56x32xf32> to vector<56xf32>
    %208 = vector.shape_cast %207 : vector<56xf32> to vector<56x1xf32>
    %cst_85 = arith.constant 3.200000e+01 : f32
    %209 = vector.broadcast %cst_85 : f32 to vector<56x1xf32>
    %210 = arith.divf %208, %209 : vector<56x1xf32>
    %cst_86 = arith.constant 9.99999974E-6 : f32
    %211 = vector.broadcast %cst_86 : f32 to vector<56x1xf32>
    %212 = arith.addf %210, %211 : vector<56x1xf32>
    %213 = math.rsqrt %212 : vector<56x1xf32>
    %214 = vector.broadcast %213 : vector<56x1xf32> to vector<56x32xf32>
    %215 = arith.mulf %205, %214 : vector<56x32xf32>
    %216 = vector.broadcast %198 : vector<1x32xf32> to vector<56x32xf32>
    %217 = arith.mulf %215, %216 : vector<56x32xf32>
    %218 = vector.broadcast %199 : vector<1x32xf32> to vector<56x32xf32>
    %219 = arith.addf %217, %218 : vector<56x32xf32>
    %220 = arith.mulf %219, %73 : vector<56x32xf32>
    %221 = arith.addf %220, %62 : vector<56x32xf32>
    %222 = arith.truncf %221 : vector<56x32xf32> to vector<56x32xbf16>
    %c0_87 = arith.constant 0 : index
    %c0_88 = arith.constant 0 : index
    %223 = vector.load %arg20[%c0_87, %c0_88] : memref<32x128xbf16, #tpu.memory_space<vmem>>, vector<32x128xbf16>
    %cst_89 = arith.constant dense<0.000000e+00> : vector<56x128xf32>
    %224 = tpu.matmul %222, %223, %cst_89 {dimension_numbers = #tpu.dot_dimension_numbers<[1], [0], [0], [1], [0, 0, 1, 1], [], []>} : vector<56x32xbf16>, vector<32x128xbf16>, vector<56x128xf32> -> vector<56x128xf32>
    %c0_90 = arith.constant 0 : index
    %c0_91 = arith.constant 0 : index
    %225 = vector.load %arg21[%c0_90, %c0_91] : memref<1x128xf32, #tpu.memory_space<vmem>>, vector<1x128xf32>
    %226 = vector.broadcast %225 : vector<1x128xf32> to vector<56x128xf32>
    %227 = arith.addf %224, %226 : vector<56x128xf32>
    %cst_92 = arith.constant 5.000000e-01 : f32
    %228 = vector.broadcast %cst_92 : f32 to vector<56x128xf32>
    %229 = arith.mulf %228, %227 : vector<56x128xf32>
    %cst_93 = arith.constant 4.471500e-02 : f32
    %230 = vector.broadcast %cst_93 : f32 to vector<56x128xf32>
    %231 = arith.mulf %230, %227 : vector<56x128xf32>
    %232 = arith.mulf %231, %227 : vector<56x128xf32>
    %233 = arith.mulf %232, %227 : vector<56x128xf32>
    %234 = arith.addf %227, %233 : vector<56x128xf32>
    %cst_94 = arith.constant 0.797884583 : f32
    %235 = vector.broadcast %cst_94 : f32 to vector<56x128xf32>
    %236 = arith.mulf %235, %234 : vector<56x128xf32>
    %237 = math.tanh %236 : vector<56x128xf32>
    %cst_95 = arith.constant 1.000000e+00 : f32
    %238 = vector.broadcast %cst_95 : f32 to vector<56x128xf32>
    %239 = arith.addf %238, %237 : vector<56x128xf32>
    %240 = arith.mulf %229, %239 : vector<56x128xf32>
    %241 = arith.truncf %240 : vector<56x128xf32> to vector<56x128xbf16>
    %c0_96 = arith.constant 0 : index
    %c0_97 = arith.constant 0 : index
    %242 = vector.load %arg22[%c0_96, %c0_97] : memref<128x32xbf16, #tpu.memory_space<vmem>>, vector<128x32xbf16>
    %cst_98 = arith.constant dense<0.000000e+00> : vector<56x32xf32>
    %243 = tpu.matmul %241, %242, %cst_98 {dimension_numbers = #tpu.dot_dimension_numbers<[1], [0], [0], [1], [0, 0, 1, 1], [], []>} : vector<56x128xbf16>, vector<128x32xbf16>, vector<56x32xf32> -> vector<56x32xf32>
    %c0_99 = arith.constant 0 : index
    %c0_100 = arith.constant 0 : index
    %244 = vector.load %arg23[%c0_99, %c0_100] : memref<1x32xf32, #tpu.memory_space<vmem>>, vector<1x32xf32>
    %245 = vector.broadcast %244 : vector<1x32xf32> to vector<56x32xf32>
    %246 = arith.addf %243, %245 : vector<56x32xf32>
    %247 = arith.mulf %82, %246 : vector<56x32xf32>
    %248 = arith.addf %197, %247 : vector<56x32xf32>
    %c0_101 = arith.constant 0 : index
    %c0_102 = arith.constant 0 : index
    %249 = vector.load %arg24[%c0_101, %c0_102] : memref<56x32xf32, #tpu.memory_space<vmem>>, vector<56x32xf32>
    tpu.vector_store %arg24[%c0_101, %c0_102], %248 {strides = array<i32>} : memref<56x32xf32, #tpu.memory_space<vmem>>, vector<56x32xf32>,
    return
  }
}

</mosaic_0001>

<bundles_post_ra>
// kernel: modified_cogvideox_block.1
= control target key start
LH: loop header
LB: loop body
LE: loop exit
PB: predicated region body
PF: predicated region fallthrough
CT: control target
= control target key end

     0   :  { %vm688_vm0 = vcmask 261120   ;;  %v3264_v20 = vmov 0   ;;  %vm125_vm5 = vcmask 130048   ;;  %v3265_v53 = vmov 32.0   ;;  %s3268_s29 = smov 112   ;;  %s5028_s0 = inlined_call_operand.vmem [shape: f32[56,32], index: 0, kind: input, shape index: {}]   ;;  %s5029_s5 = inlined_call_operand.vmem [shape: f32[16,192], index: 5, kind: input, shape index: {}]   ;;  %s5030_s9 = inlined_call_operand.vmem [shape: f32[16,192], index: 9, kind: input, shape index: {}]   ;;  %s5031_s1 = inlined_call_operand.vmem [shape: f32[2,16], index: 1, kind: input, shape index: {}]   ;;  %s5032_s3 = inlined_call_operand.vmem [shape: f32[56,1], index: 3, kind: input, shape index: {}]   ;;  %s5033_s7 = inlined_call_operand.vmem [shape: f32[1,32], index: 7, kind: input, shape index: {}]   ;;  %s5034_s8 = inlined_call_operand.vmem [shape: f32[1,32], index: 8, kind: input, shape index: {}]   ;;  %s5035_s6 = inlined_call_operand.vmem [shape: f32[1,192], index: 6, kind: input, shape index: {}]   ;;  %s5036_s16 = inlined_call_operand.vmem [shape: f32[1,16], index: 16, kind: input, shape index: {}]   ;;  %s5037_s2 = inlined_call_operand.vmem [shape: f32[56,2], index: 2, kind: input, shape index: {}]   ;;  %s5038_s10 = inlined_call_operand.vmem [shape: f32[1,192], index: 10, kind: input, shape index: {}]   ;;  %s5039_s17 = inlined_call_operand.vmem [shape: f32[1,16], index: 17, kind: input, shape index: {}]   ;;  %s5040_s13 = inlined_call_operand.vmem [shape: bf16[32,96], index: 13, kind: input, shape index: {}]   ;;  %s5041_s14 = inlined_call_operand.vmem [shape: f32[1,16], index: 14, kind: input, shape index: {}]   ;;  %s5042_s15 = inlined_call_operand.vmem [shape: f32[1,16], index: 15, kind: input, shape index: {}]   ;;  %s5043_s4 = inlined_call_operand.vmem [shape: f32[112,112], index: 4, kind: input, shape index: {}]   ;;  %s5044_s18 = inlined_call_operand.vmem [shape: bf16[32,32], index: 18, kind: input, shape index: {}]   ;;  %s5045_s19 = inlined_call_operand.vmem [shape: f32[1,32], index: 19, kind: input, shape index: {}]   ;;  %s5046_s25 = inlined_call_operand.vmem [shape: f32[8,128], index: 25, kind: output, shape index: {1}]   ;;  %s5047_s11 = inlined_call_operand.vmem [shape: f32[1,32], index: 11, kind: input, shape index: {}]   ;;  %s5048_s12 = inlined_call_operand.vmem [shape: f32[1,32], index: 12, kind: input, shape index: {}]   ;;  %s5049_s20 = inlined_call_operand.vmem [shape: bf16[32,128], index: 20, kind: input, shape index: {}]   ;;  %s5050_s21 = inlined_call_operand.vmem [shape: f32[1,128], index: 21, kind: input, shape index: {}]   ;;  %s5051_s22 = inlined_call_operand.vmem [shape: bf16[128,32], index: 22, kind: input, shape index: {}]   ;;  %s5052_s23 = inlined_call_operand.vmem [shape: f32[1,32], index: 23, kind: input, shape index: {}]   ;;  %s5053_s24 = inlined_call_operand.vmem [shape: f32[56,32], index: 24, kind: output, shape index: {0}]  }
   0x1   :  { %5087 = sst [smem:[#allocation23_spill]] %s5028_s0  ;;  %3067 = vset.pattern.permute.xlu2 %v3264_v20  ;;  %3066 = vset.pattern.permute.xlu0 %v3264_v20  ;;  %vm248_vm7 = vcmask 1041408   ;;  %vm226_vm8 = vcmask 15360  }
   0x2   :  { %5088 = sst [smem:[#allocation24_spill]] %s5029_s5  ;;  %3068 = vset.pattern.permute.xlu1 %v3264_v20 }
   0x3   :  { %5089 = sst [smem:[#allocation25_spill]] %s5030_s9 }
   0x4   :  { %5090 = sst [smem:[#allocation26_spill]] %s5031_s1 }
   0x5   :  { %5091 = sst [smem:[#allocation27_spill]] %s5032_s3 }
   0x6   :  { %5092 = sst [smem:[#allocation28_spill]] %s5033_s7 }
   0x7   :  { %5093 = sst [smem:[#allocation29_spill]] %s5034_s8 }
   0x8   :  { %5094 = sst [smem:[#allocation30_spill]] %s5035_s6 }
   0x9   :  { %5095 = sst [smem:[#allocation31_spill]] %s5036_s16 }
   0xa   :  { %5096 = sst [smem:[#allocation32_spill]] %s5037_s2 }
   0xb   :  { %s5097_s9 = sld [smem:[#allocation23_spill]] }
   0xc   :  { %s5098_s3 = sld [smem:[#allocation24_spill]] }
   0xd   :  { %s5099_s28 = sld [smem:[#allocation25_spill]] }
   0xe   :  { %s5100_s16 = sld [smem:[#allocation26_spill]] }
   0xf   :  { %s5101_s27 = sld [smem:[#allocation27_spill]] }
  0x10   :  { %s5103_s5 = sld [smem:[#allocation30_spill]] }
  0x11   :  { %v3406_v0 = vld [vmem:[%s5097_s9] sm:$0xff]  ;;  %v3441_v11 = vld [vmem:[%s5097_s9 + $0x8] sm:$0xff]  ;;  %v3454_v17 = vld [vmem:[%s5097_s9 + $0x18] sm:$0xff]  ;;  %s5104_s8 = sld [smem:[#allocation32_spill]] }
  0x12   :  { %v689_v1 = vsel %vm688_vm0, %v3406_v0, 0.0  ;;  %v3413_v2 = vld [vmem:[%s5097_s9 + $0x20] sm:$0xff]  ;;  %v117_v3 = vld [vmem:[%s5098_s3 + $0x10] sm:$0xff]  ;;  %v118_v4 = vld [vmem:[%s5098_s3 + $0x18] sm:$0xff]  ;;  %v692_v16 = vsel %vm688_vm0, %v3441_v11, 0.0  ;;  %v698_v22 = vsel %vm688_vm0, %v3454_v17, 0.0 }
  0x13   :  { %690 = vadd.xlane.f32.xlu1 %v689_v1  ;;  %v701_v5 = vsel %vm688_vm0, %v3413_v2, 0.0  ;;  %143 = vmatpush.msra.mxu2 %v117_v3  ;;  %v172_v6 = vld [vmem:[%s5099_s28 + $0x18] sm:$0xff]  ;;  %v115_v7 = vld [vmem:[%s5098_s3] sm:$0xff]  ;;  %v116_v8 = vld [vmem:[%s5098_s3 + $0x8] sm:$0xff]  ;;  %s5105_s6 = sld [smem:[#allocation31_spill]] }
  0x14   :  { %702 = vadd.xlane.f32.xlu2 %v701_v5  ;;  %163 = vmatpush.msra.mxu1 %v118_v4  ;;  %v170_v9 = vld [vmem:[%s5099_s28 + $0x8] sm:$0xff]  ;;  %v94_v10 = vld [vmem:[%s5100_s16] sm:$0x3]  ;;  %v171_v13 = vld [vmem:[%s5099_s28 + $0x10] sm:$0xff]  ;;  %s5128_s3 = sld [smem:[#allocation28_spill]] }
  0x15   :  { %213 = vmatpush.msra.mxu3 %v172_v6  ;;  %144 = vmatpush.msra.mxu2 %v115_v7  ;;  %v95_v12 = vsub.f32 0.0, %v94_v10  ;;  %v169_v14 = vld [vmem:[%s5099_s28] sm:$0xff]  ;;  %v3459_v18 = vld [vmem:[%s5097_s9 + $0x10] sm:$0xff]  ;;  %v3468_v24 = vld [vmem:[%s5097_s9 + $0x28] sm:$0xff]  ;;  %s5129_s0 = sld [smem:[#allocation29_spill]]  ;;  %s3270_s28 = smov 64  }
  0x16   :  { %164 = vmatpush.msra.mxu1 %v116_v8  ;;  %v695_v19 = vsel %vm688_vm0, %v3459_v18, 0.0  ;;  %v89_v25 = vld [vmem:[%s5101_s27 + $0x10] sm:$0xff]  ;;  %v704_v27 = vsel %vm688_vm0, %v3468_v24, 0.0  ;;  %v87_v33 = vld [vmem:[%s5101_s27] sm:$0xff]  ;;  %v90_v36 = vld [vmem:[%s5101_s27 + $0x18] sm:$0xff] }
  0x17   :  { %214 = vmatpush.msra.mxu3 %v170_v9  ;;  %v96_v15 = vmul.f32 1.442695, %v95_v12  ;;  %193 = vmatpush.msrb.mxu2 %v171_v13  ;;  %v457_v28 = vsub.f32 1.0, %v89_v25  ;;  %v3481_v35 = vld [vmem:[%s5097_s9 + $0x30] sm:$0xff]  ;;  %v455_v39 = vsub.f32 1.0, %v87_v33  ;;  %v458_v41 = vsub.f32 1.0, %v90_v36 }
  0x18   :  { %696 = vadd.xlane.f32.xlu0 %v695_v19  ;;  %v707_v40 = vsel %vm688_vm0, %v3481_v35, 0.0  ;;  %v88_v45 = vld [vmem:[%s5101_s27 + $0x8] sm:$0xff]  ;;  %v91_v46 = vld [vmem:[%s5101_s27 + $0x20] sm:$0xff]  ;;  %v93_v51 = vld [vmem:[%s5101_s27 + $0x30] sm:$0xff] }
  0x19   :  { %3095 = vpow2.f32 %v96_v15  ;;  %194 = vmatpush.msrb.mxu2 %v169_v14  ;;  %v456_v47 = vsub.f32 1.0, %v88_v45  ;;  %v459_v48 = vsub.f32 1.0, %v91_v46  ;;  %v92_v49 = vld [vmem:[%s5101_s27 + $0x28] sm:$0xff]  ;;  %v461_v52 = vsub.f32 1.0, %v93_v51 }
  0x1a   :  { %v460_v50 = vsub.f32 1.0, %v92_v49 }
  0x1b   :  { %693 = vadd.xlane.f32.xlu1 %v692_v16 }
  0x1f   :  { %v3096_v21 = vpop.eup %3095 }
  0x20   :  { %v98_v23 = vadd.f32 1.0, %v3096_v21 }
  0x22   :  { %3097 = vrcp.f32 %v98_v23  ;;  %v110_v30 = vand.u32 2147483648, %v98_v23  ;;  %vm104_vm1 = vweird.f32 %v98_v23  ;;  %v108_v32 = vand.u32 2147483647, %v98_v23 }
  0x23   :  { %699 = vadd.xlane.f32.xlu1 %v698_v22  ;;  %3099 = vrcp.f32 %v3265_v53  ;;  %v3085_v53 = vld [vmem:[%s5039_s17] ss:$0 sm:$0xff]  ;;  %s3267_s17 = smov 96  }
  0x24   :  { %v111_v37 = vor.u32 1.1754944e-38, %v110_v30  ;;  %vm109_vm4 = vcmp.eq.f32.partialorder %v108_v32, 8.507059e+37 }
  0x28   :  { %v3098_v26 = vpop.eup %3097 }
  0x29   :  { %v100_v29 = vmul.f32 %v3098_v26, %v98_v23  ;;  %vm105_vm2 = vweird.f32 %v3098_v26  ;;  %v3100_v54 = vpop.eup %3099 }
  0x2a   :  { %vm106_vm3 = vmor %vm104_vm1, %vm105_vm2  ;;  %v711_v55 = vmul.f32 32.0, %v3100_v54  ;;  %vm715_vm6 = vweird.f32 %v3100_v54 }
  0x2b   :  { %v101_v31 = vsub.f32 1.0, %v100_v29  ;;  %705 = vadd.xlane.f32.xlu1 %v704_v27  ;;  %v173_v29 = vld [vmem:[%s5038_s10] sm:$0x3] }
  0x2c   :  { %474 = vperm.xlu2 %3067, %v457_v28   ;;  %464 = vperm.xlu0 %3066, %v455_v39   ;;  %v712_v56 = vsub.f32 1.0, %v711_v55  ;;  %v219_v28 = vld [vmem:[%s5104_s8] sm:$0xff] }
  0x2d   :  { %v102_v34 = vmul.f32 %v3098_v26, %v101_v31  ;;  %v176_v31 = vperm.slane %v173_v29, 1 }
  0x2e   :  { %v713_v57 = vmul.f32 %v3100_v54, %v712_v56 }
  0x2f   :  { %v103_v38 = vadd.f32 %v3098_v26, %v102_v34 }
  0x30   :  { %v714_v58 = vadd.f32 %v3100_v54, %v713_v57 }
  0x31   :  { %v107_v42 = vsel %vm106_vm3, %v3098_v26, %v103_v38  ;;  %v175_v38 = vperm.slane %v173_v29, 0 }
  0x32   :  { %v112_v43 = vsel %vm109_vm4, %v111_v37, %v107_v42  ;;  %v3504_v59 = vsel %vm715_vm6, %v3100_v54, %v714_v58 }
  0x33   :  { %v114_v44 = vmul.f32 %v112_v43, %v94_v10  ;;  %708 = vadd.xlane.f32.xlu1 %v707_v40  ;;  %5102 = vst [vmem:[#allocation2_spill] sm:$0xff] %v3504_v59  ;;  %v221_v43 = vld [vmem:[%s5104_s8 + $0x10] sm:$0xff] }
  0x34   :  { %479 = vperm.xlu2 %3067, %v458_v41   ;;  %469 = vperm.xlu0 %3066, %v456_v47   ;;  %v222_v47 = vld [vmem:[%s5104_s8 + $0x18] sm:$0xff] }
  0x35   :  { %2922 = vmatmul.msk.f32.vlgmr.msra.gmra.mxu2 %vm125_vm5, %v114_v44  ;;  %2923 = vmatmul.msk.f32.vlgmr.msra.gmra.mxu1 %vm125_vm5, %v114_v44 }
  0x36   :  { %2925 = vmatmul.msk.f32.vlgmr.msra.gmra.mxu3 %vm125_vm5, %v114_v44 }
  0x3c   :  { %484 = vperm.xlu2 %3067, %v459_v48   ;;  %425 = vperm.xlu0 %3066, %v89_v25  }
  0x3d   :  { %2924 = vmatmul.msk.f32.vlgmr.msrb.gmra.mxu2 %vm125_vm5, %v114_v44 }
  0x44   :  { %415 = vperm.xlu2 %3067, %v87_v33  }
  0x4c   :  { %420 = vperm.xlu2 %3067, %v88_v45   ;;  %489 = vperm.xlu1 %3068, %v460_v50   ;;  %v224_v50 = vld [vmem:[%s5104_s8 + $0x28] sm:$0xff] }
  0x54   :  { %494 = vperm.xlu2 %3067, %v461_v52   ;;  %430 = vperm.xlu1 %3068, %v90_v36   ;;  %v220_v36 = vld [vmem:[%s5104_s8 + $0x8] sm:$0xff]  ;;  %v3084_v52 = vld [vmem:[%s5105_s6] ss:$0 sm:$0xff] }
  0x5c   :  { %440 = vperm.xlu1 %3068, %v92_v49   ;;  %v223_v49 = vld [vmem:[%s5104_s8 + $0x20] sm:$0xff] }
  0x64   :  { %445 = vperm.xlu1 %3068, %v93_v51   ;;  %v225_v51 = vld [vmem:[%s5104_s8 + $0x30] sm:$0xff]  ;;  %s3266_s8 = smov 32  }
  0x86   :  { %v691_v60 = vpop.xlane.xlu1 %690 }
  0x87   :  { %v717_v61 = vmul.f32 %v3504_v59, %v691_v60  ;;  %v703_v3 = vpop.xlane.xlu2 %702 }
  0x88   :  { %v721_v5 = vmul.f32 %v3504_v59, %v703_v3 }
  0x89   :  { %v3508_v62 = vsub.f32 %v3406_v0, %v717_v61 }
  0x8a   :  { %v3516_v7 = vsub.f32 %v3413_v2, %v721_v5 }
  0x8b   :  { %v731_v63 = vmul.f32 %v3508_v62, %v3508_v62  ;;  %v697_v37 = vpop.xlane.xlu0 %696 }
  0x8c   :  { %v735_v0 = vmul.f32 %v3516_v7, %v3516_v7  ;;  %v719_v39 = vmul.f32 %v3504_v59, %v697_v37 }
  0x8d   :  { %v738_v1 = vsel %vm688_vm0, %v731_v63, 0.0 }
  0x8e   :  { %739 = vadd.xlane.f32.xlu0 %v738_v1  ;;  %v694_v4 = vpop.xlane.xlu1 %693  ;;  %v750_v10 = vsel %vm688_vm0, %v735_v0, 0.0  ;;  %v3562_v42 = vsub.f32 %v3459_v18, %v719_v39 }
  0x8f   :  { %v718_v6 = vmul.f32 %v3504_v59, %v694_v4  ;;  %751 = vadd.xlane.f32.xlu1 %v750_v10  ;;  %v3622_v54 = vpop.permute.xlu2 %474 }
  0x90   :  { %v733_v18 = vmul.f32 %v3562_v42, %v3562_v42  ;;  %5106 = vst [vmem:[#allocation3_spill] sm:$0xff] %v3622_v54 }
  0x91   :  { %v3519_v8 = vsub.f32 %v3441_v11, %v718_v6 }
  0x93   :  { %v732_v9 = vmul.f32 %v3519_v8, %v3519_v8 }
  0x95   :  { %v741_v12 = vsel %vm688_vm0, %v732_v9, 0.0 }
  0x96   :  { %742 = vadd.xlane.f32.xlu2 %v741_v12  ;;  %v700_v13 = vpop.xlane.xlu1 %699 }
  0x97   :  { %v720_v14 = vmul.f32 %v3504_v59, %v700_v13  ;;  %v3628_v60 = vpop.permute.xlu2 %479 }
  0x98   :  { %5107 = vst [vmem:[#allocation4_spill] sm:$0xff] %v3628_v60 }
  0x99   :  { %v3529_v2 = vsub.f32 %v3454_v17, %v720_v14  ;;  %v119_v17 = vld [vmem:[%s5103_s5] sm:$0x3] }
  0x9a   :  { %v122_v25 = vperm.slane %v119_v17, 1  ;;  %v121_v30 = vperm.slane %v119_v17, 0 }
  0x9b   :  { %v734_v11 = vmul.f32 %v3529_v2, %v3529_v2 }
  0x9d   :  { %v747_v15 = vsel %vm688_vm0, %v734_v11, 0.0 }
  0x9e   :  { %748 = vadd.xlane.f32.xlu2 %v747_v15  ;;  %v706_v16 = vpop.xlane.xlu1 %705  ;;  %v3624_v55 = vpop.permute.xlu0 %464 }
  0x9f   :  { %v722_v44 = vmul.f32 %v3504_v59, %v706_v16  ;;  %v3637_v0 = vpop.permute.xlu2 %484 }
  0xa0   :  { %5109 = vst [vmem:[#allocation6_spill] sm:$0xff] %v3637_v0 }
  0xa1   :  { %v3576_v45 = vsub.f32 %v3468_v24, %v722_v44 }
  0xa2   :  { %435 = vperm.xlu0 %3066, %v91_v46   ;;  %v744_v46 = vsel %vm688_vm0, %v733_v18, 0.0 }
  0xa3   :  { %v736_v48 = vmul.f32 %v3576_v45, %v3576_v45 }
  0xa5   :  { %v753_v24 = vsel %vm688_vm0, %v736_v48, 0.0 }
  0xa6   :  { %v709_v19 = vpop.xlane.xlu1 %708  ;;  %v3631_v63 = vpop.permute.xlu0 %469 }
  0xa7   :  { %v723_v20 = vmul.f32 %v3504_v59, %v709_v19  ;;  %5108 = vst [vmem:[#allocation5_spill] sm:$0xff] %v3631_v63  ;;  %v3647_v14 = vpop.permute.xlu2 %415 }
  0xa8   :  { %5110 = vst [vmem:[#allocation7_spill] sm:$0xff] %v3647_v14 }
  0xa9   :  { %v3536_v21 = vsub.f32 %v3481_v35, %v723_v20 }
  0xab   :  { %v737_v22 = vmul.f32 %v3536_v21, %v3536_v21 }
  0xad   :  { %v756_v23 = vsel %vm688_vm0, %v737_v22, 0.0 }
  0xae   :  { %757 = vadd.xlane.f32.xlu2 %v756_v23 }
  0xaf   :  { %v3653_v20 = vpop.permute.xlu2 %420 }
  0xb0   :  { %5111 = vst [vmem:[#allocation8_spill] sm:$0xff] %v3653_v20 }
  0xb2   :  { %v166_v26 = vpop.f32.mrf.mxu1 }
  0xb3   :  { %v167_v27 = vadd.f32 %v166_v26, %v122_v25 }
  0xb5   :  { %2934 = vmatpush.msk.msrb.mxu1 %vm248_vm7, %v167_v27 }
  0xb6   :  { %2935 = vmatmul.msk.f32.vlgmr.msrb.gmra.mxu1 %vm226_vm8, %v219_v28 }
  0xb8   :  { %v146_v32 = vpop.f32.mrf.mxu2 }
  0xb9   :  { %v147_v33 = vadd.f32 %v146_v32, %v121_v30  ;;  %v216_v34 = vpop.f32.mrf.mxu3  ;;  %v3664_v30 = vpop.permute.xlu2 %494 }
  0xba   :  { %v217_v35 = vadd.f32 %v216_v34, %v176_v31  ;;  %5113 = vst [vmem:[#allocation10_spill] sm:$0xff] %v3664_v30 }
  0xbb   :  { %2926 = vmatpush.msk.msra.mxu0 %vm248_vm7, %v147_v33 }
  0xbc   :  { %2950 = vmatpush.msk.msrb.mxu3 %vm248_vm7, %v217_v35  ;;  %2927 = vmatmul.msk.f32.vlgmr.msra.gmra.mxu0 %vm226_vm8, %v219_v28  ;;  %v3671_v35 = vpop.permute.xlu0 %425 }
  0xbd   :  { %2951 = vmatmul.msk.f32.vlgmr.msrb.gmra.mxu3 %vm226_vm8, %v219_v28  ;;  %5114 = vst [vmem:[#allocation11_spill] sm:$0xff] %v3671_v35 }
  0xbe   :  { %2936 = vmatmul.msk.f32.gmra.mxu1 %vm226_vm8, %v220_v36  ;;  %v3657_v25 = vpop.permute.xlu1 %489 }
  0xbf   :  { %5112 = vst [vmem:[#allocation9_spill] sm:$0xff] %v3657_v25 }
  0xc0   :  { %v196_v40 = vpop.f32.mrf.mxu2 }
  0xc1   :  { %v197_v41 = vadd.f32 %v196_v40, %v175_v38 }
  0xc3   :  { %2942 = vmatpush.msk.msra.mxu2 %vm248_vm7, %v197_v41 }
  0xc4   :  { %2928 = vmatmul.msk.f32.gmra.mxu0 %vm226_vm8, %v220_v36  ;;  %2943 = vmatmul.msk.f32.vlgmr.msra.gmra.mxu2 %vm226_vm8, %v219_v28 }
  0xc5   :  { %2952 = vmatmul.msk.f32.gmra.mxu3 %vm226_vm8, %v220_v36 }
  0xc6   :  { %2937 = vmatmul.msk.f32.gmra.mxu1 %vm226_vm8, %v221_v43  ;;  %1780 = vrot.lane.b32.xlu2 %v3085_v53, %s3266_s8  ;;  %v3679_v44 = vpop.permute.xlu1 %430 }
  0xc7   :  { %5116 = vst [vmem:[#allocation13_spill] sm:$0xff] %v3679_v44 }
  0xcc   :  { %2929 = vmatmul.msk.f32.gmra.mxu0 %vm226_vm8, %v221_v43  ;;  %2944 = vmatmul.msk.f32.gmra.mxu2 %vm226_vm8, %v220_v36 }
  0xcd   :  { %2953 = vmatmul.msk.f32.gmra.mxu3 %vm226_vm8, %v221_v43  ;;  %745 = vadd.xlane.f32.xlu0 %v744_v46 }
  0xce   :  { %2938 = vmatmul.msk.f32.gmra.mxu1 %vm226_vm8, %v222_v47 }
  0xd4   :  { %2930 = vmatmul.msk.f32.gmra.mxu0 %vm226_vm8, %v222_v47  ;;  %2945 = vmatmul.msk.f32.gmra.mxu2 %vm226_vm8, %v221_v43 }
  0xd5   :  { %2954 = vmatmul.msk.f32.gmra.mxu3 %vm226_vm8, %v222_v47  ;;  %754 = vadd.xlane.f32.xlu0 %v753_v24 }
  0xd6   :  { %2939 = vmatmul.msk.f32.gmra.mxu1 %vm226_vm8, %v223_v49 }
  0xdc   :  { %2931 = vmatmul.msk.f32.gmra.mxu0 %vm226_vm8, %v223_v49  ;;  %2946 = vmatmul.msk.f32.gmra.mxu2 %vm226_vm8, %v222_v47  ;;  %v3685_v47 = vpop.permute.xlu1 %440 }
  0xdd   :  { %2955 = vmatmul.msk.f32.gmra.mxu3 %vm226_vm8, %v223_v49  ;;  %5117 = vst [vmem:[#allocation14_spill] sm:$0xff] %v3685_v47 }
  0xde   :  { %2940 = vmatmul.msk.f32.gmra.mxu1 %vm226_vm8, %v224_v50 }
  0xe4   :  { %2932 = vmatmul.msk.f32.gmra.mxu0 %vm226_vm8, %v224_v50  ;;  %2947 = vmatmul.msk.f32.gmra.mxu2 %vm226_vm8, %v223_v49  ;;  %v3700_v53 = vpop.permute.xlu1 %445 }
  0xe5   :  { %2956 = vmatmul.msk.f32.gmra.mxu3 %vm226_vm8, %v224_v50  ;;  %5119 = vst [vmem:[#allocation16_spill] sm:$0xff] %v3700_v53 }
  0xe6   :  { %2941 = vmatmul.msk.f32.gmra.mxu1 %vm226_vm8, %v225_v51 }
  0xe9   :  { %1761 = vrot.lane.b32.xlu0 %v3084_v52, %s3266_s8 }
  0xec   :  { %2933 = vmatmul.msk.f32.gmra.mxu0 %vm226_vm8, %v225_v51  ;;  %2948 = vmatmul.msk.f32.gmra.mxu2 %vm226_vm8, %v224_v50 }
  0xed   :  { %2957 = vmatmul.msk.f32.gmra.mxu3 %vm226_vm8, %v225_v51 }
  0xf4   :  { %2949 = vmatmul.msk.f32.gmra.mxu2 %vm226_vm8, %v225_v51 }
 0x101   :  { %v740_v36 = vpop.xlane.xlu0 %739 }
 0x109   :  { %v743_v37 = vpop.xlane.xlu2 %742 }
 0x111   :  { %v749_v39 = vpop.xlane.xlu2 %748 }
 0x114   :  { %v3673_v38 = vpop.permute.xlu0 %435 }
 0x115   :  { %5115 = vst [vmem:[#allocation12_spill] sm:$0xff] %v3673_v38 }
 0x121   :  { %v3675_v41 = vpop.xlane.xlu2 %757 }
 0x129   :  { %v3681_v18 = vpop.permute.xlu2 %1780 }
 0x133   :  { %v310_v56 = vpop.f32.mrf.mxu1 }
 0x134   :  { %v539_v57 = vmul.f32 %v3624_v55, %v310_v56 }
 0x136   :  { %553 = vrot.lane.b32.xlu0 %v539_v57, %s3266_s8 }
 0x139   :  { %v272_v58 = vpop.f32.mrf.mxu0 }
 0x13a   :  { %v497_v61 = vmul.f32 %v3624_v55, %v272_v58  ;;  %v3690_v24 = vmul.f32 %v3647_v14, %v272_v58 }
 0x13b   :  { %v313_v1 = vpop.f32.mrf.mxu1 }
 0x13c   :  { %v540_v3 = vmul.f32 %v3631_v63, %v313_v1  ;;  %511 = vrot.lane.b32.xlu1 %v497_v61, %s3266_s8 }
 0x13e   :  { %555 = vrot.lane.b32.xlu0 %v540_v3, %s3266_s8 }
 0x140   :  { %v746_v40 = vpop.xlane.xlu0 %745 }
 0x141   :  { %v275_v4 = vpop.f32.mrf.mxu0 }
 0x142   :  { %v498_v6 = vmul.f32 %v3631_v63, %v275_v4  ;;  %v3703_v57 = vmul.f32 %v3653_v20, %v275_v4 }
 0x143   :  { %v316_v5 = vpop.f32.mrf.mxu1 }
 0x144   :  { %v541_v13 = vmul.f32 %v3622_v54, %v316_v5 }
 0x146   :  { %513 = vrot.lane.b32.xlu0 %v498_v6, %s3266_s8  ;;  %v3715_v6 = vpop.xlane.xlu1 %751 }
 0x148   :  { %v3677_v43 = vpop.xlane.xlu0 %754 }
 0x149   :  { %v3640_v9 = vpop.f32.mrf.mxu0 }
 0x14a   :  { %v499_v10 = vmul.f32 %v3622_v54, %v3640_v9  ;;  %v3721_v4 = vmul.f32 %v3671_v35, %v3640_v9 }
 0x14b   :  { %v319_v12 = vpop.f32.mrf.mxu1 }
 0x14c   :  { %515 = vrot.lane.b32.xlu2 %v499_v10, %s3266_s8  ;;  %v542_v15 = vmul.f32 %v3628_v60, %v319_v12  ;;  %v3044_v12 = vld [vmem:[%s5040_s13 + $0x8] sm:$0xff] }
 0x14d   :  { %950 = vmatpush.bf16.msrb.mxu0 %v3044_v12  ;;  %v762_v12 = vmul.f32 %v749_v39, %v3504_v59 }
 0x14e   :  { %557 = vrot.lane.b32.xlu0 %v541_v13, %s3266_s8 }
 0x151   :  { %v281_v11 = vpop.f32.mrf.mxu0 }
 0x152   :  { %v500_v17 = vmul.f32 %v3628_v60, %v281_v11  ;;  %v3697_v52 = vmul.f32 %v3679_v44, %v281_v11 }
 0x153   :  { %v322_v16 = vpop.f32.mrf.mxu1 }
 0x154   :  { %v543_v19 = vmul.f32 %v3637_v0, %v322_v16  ;;  %559 = vrot.lane.b32.xlu2 %v542_v15, %s3266_s8 }
 0x156   :  { %561 = vrot.lane.b32.xlu1 %v543_v19, %s3266_s8 }
 0x159   :  { %v284_v22 = vpop.f32.mrf.mxu0 }
 0x15a   :  { %v501_v23 = vmul.f32 %v3637_v0, %v284_v22  ;;  %v3734_v19 = vmul.f32 %v3673_v38, %v284_v22 }
 0x15b   :  { %v325_v26 = vpop.f32.mrf.mxu1  ;;  %v3683_v46 = vpop.permute.xlu0 %1761 }
 0x15c   :  { %v544_v27 = vmul.f32 %v3657_v25, %v325_v26  ;;  %519 = vrot.lane.b32.xlu0 %v501_v23, %s3266_s8  ;;  %517 = vrot.lane.b32.xlu2 %v500_v17, %s3266_s8 }
 0x15e   :  { %563 = vrot.lane.b32.xlu1 %v544_v27, %s3266_s8 }
 0x161   :  { %v287_v28 = vpop.f32.mrf.mxu0 }
 0x162   :  { %v502_v29 = vmul.f32 %v3657_v25, %v287_v28  ;;  %v3744_v27 = vmul.f32 %v3685_v47, %v287_v28  ;;  %v760_v28 = vmul.f32 %v743_v37, %v3504_v59 }
 0x163   :  { %v328_v31 = vpop.f32.mrf.mxu1 }
 0x164   :  { %v545_v32 = vmul.f32 %v3664_v30, %v328_v31  ;;  %521 = vrot.lane.b32.xlu0 %v502_v29, %s3266_s8 }
 0x166   :  { %565 = vrot.lane.b32.xlu2 %v545_v32, %s3266_s8 }
 0x169   :  { %v290_v33 = vpop.f32.mrf.mxu0 }
 0x16a   :  { %v503_v34 = vmul.f32 %v3664_v30, %v290_v33 }
 0x16c   :  { %523 = vrot.lane.b32.xlu1 %v503_v34, %s3266_s8  ;;  %v3751_v34 = vmul.f32 %v3700_v53, %v290_v33  ;;  %v3043_v33 = vld [vmem:[%s5040_s13] sm:$0xff] }
 0x16d   :  { %951 = vmatpush.bf16.msrb.mxu0 %v3043_v33 }
 0x1a6   :  { %v3687_v48 = vpop.permute.xlu2 %515 }
 0x1a8   :  { %v554_v49 = vpop.permute.xlu0 %553 }
 0x1a9   :  { %v3693_v50 = vadd.f32 %v554_v49, %v3690_v24 }
 0x1ab   :  { %5118 = vst [vmem:[#allocation15_spill] sm:$0xff] %v3693_v50  ;;  %v581_v51 = vadd.f32 1.0, %v3693_v50 }
 0x1ad   :  { %877 = vrot.lane.b32.xlu1 %v581_v51, %s3267_s17 }
 0x1ae   :  { %v560_v56 = vpop.permute.xlu2 %559  ;;  %v3726_v13 = vpop.permute.xlu1 %511 }
 0x1af   :  { %v3706_v58 = vadd.f32 %v560_v56, %v3697_v52  ;;  %v759_v56 = vmul.f32 %v740_v36, %v3504_v59 }
 0x1b0   :  { %v556_v61 = vpop.permute.xlu0 %555 }
 0x1b1   :  { %5120 = vst [vmem:[#allocation17_spill] sm:$0xff] %v3706_v58  ;;  %v3709_v1 = vadd.f32 %v556_v61, %v3703_v57  ;;  %v584_v3 = vadd.f32 1.0, %v3706_v58  ;;  %v767_v61 = vadd.f32 1e-05, %v760_v28 }
 0x1b3   :  { %5121 = vst [vmem:[#allocation18_spill] sm:$0xff] %v3709_v1  ;;  %v582_v5 = vadd.f32 1.0, %v3709_v1  ;;  %3101 = vrsqrt.f32 %v767_v61  ;;  %vm789_vm9 = vweird.f32 %v767_v61 }
 0x1b5   :  { %879 = vrot.lane.b32.xlu2 %v582_v5, %s3267_s17  ;;  %883 = vrot.lane.b32.xlu1 %v584_v3, %s3267_s17  ;;  %v766_v3 = vadd.f32 1e-05, %v759_v56  ;;  %v761_v5 = vmul.f32 %v746_v40, %v3504_v59 }
 0x1b6   :  { %v3740_v26 = vpop.permute.xlu2 %517 }
 0x1b7   :  { %3103 = vrsqrt.f32 %v766_v3  ;;  %vm779_vm11 = vweird.f32 %v766_v3 }
 0x1b8   :  { %v3717_v10 = vpop.permute.xlu0 %513 }
 0x1c0   :  { %v558_v11 = vpop.permute.xlu0 %557  ;;  %v566_v32 = vpop.permute.xlu2 %565 }
 0x1c1   :  { %v3729_v15 = vadd.f32 %v558_v11, %v3721_v4  ;;  %v3755_v49 = vadd.f32 %v566_v32, %v3751_v34  ;;  %v768_v11 = vadd.f32 1e-05, %v761_v5 }
 0x1c3   :  { %5122 = vst [vmem:[#allocation19_spill] sm:$0xff] %v3729_v15  ;;  %v583_v16 = vadd.f32 1.0, %v3729_v15  ;;  %v587_v51 = vadd.f32 1.0, %v3755_v49  ;;  %3105 = vrsqrt.f32 %v768_v11  ;;  %vm799_vm15 = vweird.f32 %v768_v11 }
 0x1c4   :  { %5125 = vst [vmem:[#allocation22_spill] sm:$0xff] %v3755_v49 }
 0x1c5   :  { %881 = vrot.lane.b32.xlu2 %v583_v16, %s3267_s17  ;;  %v3102_v16 = vpop.eup %3101 }
 0x1c6   :  { %v784_v37 = vmul.f32 %v3102_v16, %v767_v61  ;;  %vm790_vm10 = vweird.f32 %v3102_v16 }
 0x1c7   :  { %vm791_vm13 = vmor %vm789_vm9, %vm790_vm10 }
 0x1c8   :  { %v562_v9 = vpop.permute.xlu1 %561 }
 0x1c9   :  { %v3737_v17 = vadd.f32 %v562_v9, %v3734_v19  ;;  %v769_v9 = vadd.f32 1e-05, %v762_v12 }
 0x1cb   :  { %5123 = vst [vmem:[#allocation20_spill] sm:$0xff] %v3737_v17  ;;  %v585_v23 = vadd.f32 1.0, %v3737_v17  ;;  %3107 = vrsqrt.f32 %v769_v9  ;;  %vm809_vm2 = vweird.f32 %v769_v9 }
 0x1cd   :  { %885 = vrot.lane.b32.xlu1 %v585_v23, %s3267_s17  ;;  %v3104_v23 = vpop.eup %3103 }
 0x1ce   :  { %v774_v36 = vmul.f32 %v3104_v23, %v766_v3  ;;  %vm780_vm12 = vweird.f32 %v3104_v23 }
 0x1cf   :  { %vm781_vm14 = vmor %vm779_vm11, %vm780_vm12 }
 0x1d0   :  { %v564_v29 = vpop.permute.xlu1 %563  ;;  %v775_v32 = vmul.f32 %v3104_v23, %v774_v36 }
 0x1d1   :  { %v3747_v31 = vadd.f32 %v564_v29, %v3744_v27  ;;  %v785_v29 = vmul.f32 %v3102_v16, %v784_v37 }
 0x1d2   :  { %v776_v53 = vmul.f32 0.5, %v775_v32 }
 0x1d3   :  { %5124 = vst [vmem:[#allocation21_spill] sm:$0xff] %v3747_v31  ;;  %v586_v22 = vadd.f32 1.0, %v3747_v31  ;;  %v786_v28 = vmul.f32 0.5, %v785_v29 }
 0x1d4   :  { %v777_v47 = vsub.f32 1.5, %v776_v53  ;;  %v763_v53 = vmul.f32 %v3715_v6, %v3504_v59 }
 0x1d5   :  { %887 = vrot.lane.b32.xlu0 %v586_v22, %s3267_s17  ;;  %v3106_v22 = vpop.eup %3105  ;;  %v787_v33 = vsub.f32 1.5, %v786_v28 }
 0x1d6   :  { %v794_v56 = vmul.f32 %v3106_v22, %v768_v11  ;;  %v778_v44 = vmul.f32 %v3104_v23, %v777_v47  ;;  %vm800_vm1 = vweird.f32 %v3106_v22  ;;  %v764_v47 = vmul.f32 %v3677_v43, %v3504_v59  ;;  %v3778_v11 = vld [vmem:[%s5128_s3] ss:$0 sm:$0xff] }
 0x1d7   :  { %v788_v5 = vmul.f32 %v3102_v16, %v787_v33  ;;  %vm3769_vm4 = vmor %vm799_vm15, %vm800_vm1  ;;  %v3789_v43 = vld [vmem:[%s5129_s0] ss:$0 sm:$0xff] }
 0x1d8   :  { %v795_v38 = vmul.f32 %v3106_v22, %v794_v56  ;;  %v782_v32 = vsel %vm781_vm14, %v3104_v23, %v778_v44  ;;  %v771_v23 = vadd.f32 1e-05, %v764_v47 }
 0x1d9   :  { %v792_v35 = vsel %vm791_vm13, %v3102_v16, %v788_v5  ;;  %v843_v44 = vmul.f32 %v782_v32, %v3508_v62 }
 0x1da   :  { %v796_v12 = vmul.f32 0.5, %v795_v38  ;;  %v844_v61 = vmul.f32 %v792_v35, %v3519_v8  ;;  %v770_v8 = vadd.f32 1e-05, %v763_v53  ;;  %vm829_vm9 = vweird.f32 %v771_v23 }
 0x1db   :  { %v853_v28 = vmul.f32 %v3778_v11, %v843_v44 }
 0x1dc   :  { %v797_v36 = vsub.f32 1.5, %v796_v12  ;;  %v854_v35 = vmul.f32 %v3778_v11, %v844_v61  ;;  %3109 = vrsqrt.f32 %v770_v8  ;;  %vm819_vm7 = vweird.f32 %v770_v8 }
 0x1dd   :  { %889 = vrot.lane.b32.xlu0 %v587_v51, %s3267_s17  ;;  %v3108_v51 = vpop.eup %3107  ;;  %3111 = vrsqrt.f32 %v771_v23  ;;  %v863_v5 = vadd.f32 %v3789_v43, %v853_v28 }
 0x1de   :  { %v804_v40 = vmul.f32 %v3108_v51, %v769_v9  ;;  %vm810_vm3 = vweird.f32 %v3108_v51  ;;  %v798_v3 = vmul.f32 %v3106_v22, %v797_v36  ;;  %v3781_v16 = vpop.permute.xlu1 %523  ;;  %v533_v36 = vadd.f32 %v3717_v10, %v3703_v57 }
 0x1df   :  { %vm811_vm6 = vmor %vm809_vm2, %vm810_vm3 }
 0x1e0   :  { %v805_v39 = vmul.f32 %v3108_v51, %v804_v40  ;;  %v802_v9 = vsel %vm3769_vm4, %v3106_v22, %v798_v3  ;;  %v864_v40 = vadd.f32 %v3789_v43, %v854_v35 }
 0x1e1   :  { %v845_v33 = vmul.f32 %v802_v9, %v3562_v42  ;;  %v765_v42 = vmul.f32 %v3675_v41, %v3504_v59  ;;  %v534_v41 = vadd.f32 %v3687_v48, %v3721_v4  ;;  %v535_v9 = vadd.f32 %v3740_v26, %v3697_v52  ;;  %v520_v48 = vpop.permute.xlu0 %519 }
 0x1e2   :  { %v806_v37 = vmul.f32 0.5, %v805_v39  ;;  %v3110_v32 = vpop.eup %3109 }
 0x1e3   :  { %vm820_vm8 = vweird.f32 %v3110_v32 }
 0x1e4   :  { %v807_v29 = vsub.f32 1.5, %v806_v37  ;;  %v532_v37 = vadd.f32 %v3726_v13, %v3690_v24  ;;  %v814_v24 = vmul.f32 %v3110_v32, %v770_v8  ;;  %v772_v13 = vadd.f32 1e-05, %v765_v42  ;;  %vm821_vm11 = vmor %vm819_vm7, %vm820_vm8 }
 0x1e6   :  { %v808_v6 = vmul.f32 %v3108_v51, %v807_v29  ;;  %3113 = vrsqrt.f32 %v772_v13  ;;  %vm839_vm13 = vweird.f32 %v772_v13 }
 0x1e8   :  { %v812_v62 = vsel %vm811_vm6, %v3108_v51, %v808_v6  ;;  %v855_v51 = vmul.f32 %v3778_v11, %v845_v33 }
 0x1e9   :  { %v846_v22 = vmul.f32 %v812_v62, %v3529_v2  ;;  %v3112_v2 = vpop.eup %3111 }
 0x1ea   :  { %v865_v47 = vadd.f32 %v3789_v43, %v855_v51  ;;  %v824_v10 = vmul.f32 %v3112_v2, %v771_v23  ;;  %vm830_vm10 = vweird.f32 %v3112_v2 }
 0x1eb   :  { %v856_v3 = vmul.f32 %v3778_v11, %v846_v22  ;;  %vm831_vm12 = vmor %vm829_vm9, %vm830_vm10 }
 0x1ec   :  { %v825_v33 = vmul.f32 %v3112_v2, %v824_v10 }
 0x1ed   :  { %v866_v57 = vadd.f32 %v3789_v43, %v856_v3 }
 0x1ee   :  { %v826_v22 = vmul.f32 0.5, %v825_v33 }
 0x1f0   :  { %v827_v51 = vsub.f32 1.5, %v826_v22 }
 0x1f2   :  { %v828_v4 = vmul.f32 %v3112_v2, %v827_v51 }
 0x20f   :  { %v880_v56 = vpop.permute.xlu2 %879 }
 0x210   :  { %v899_v39 = vmul.f32 %v880_v56, %v864_v40  ;;  %v815_v56 = vmul.f32 %v3110_v32, %v814_v24 }
 0x212   :  { %v906_v53 = vadd.f32 %v899_v39, %v533_v36 }
 0x21f   :  { %v878_v12 = vpop.permute.xlu1 %877  ;;  %v882_v38 = vpop.permute.xlu2 %881 }
 0x220   :  { %v898_v29 = vmul.f32 %v878_v12, %v863_v5  ;;  %v900_v6 = vmul.f32 %v882_v38, %v865_v47  ;;  %v816_v5 = vmul.f32 0.5, %v815_v56  ;;  %v3114_v12 = vpop.eup %3113  ;;  %v522_v38 = vpop.permute.xlu0 %521 }
 0x221   :  { %v834_v36 = vmul.f32 %v3114_v12, %v772_v13  ;;  %vm840_vm14 = vweird.f32 %v3114_v12  ;;  %v537_v10 = vadd.f32 %v522_v38, %v3744_v27 }
 0x222   :  { %v905_v61 = vadd.f32 %v898_v29, %v532_v37  ;;  %v907_v62 = vadd.f32 %v900_v6, %v534_v41  ;;  %v817_v37 = vsub.f32 1.5, %v816_v5  ;;  %vm841_vm15 = vmor %vm839_vm13, %vm840_vm14 }
 0x223   :  { %v835_v52 = vmul.f32 %v3114_v12, %v834_v36 }
 0x224   :  { %v912_v44 = vpack.c.bf16 %v906_v53, %v905_v61  ;;  %v818_v29 = vmul.f32 %v3110_v32, %v817_v37  ;;  %v832_v53 = vsel %vm831_vm12, %v3112_v2, %v828_v4  ;;  %v3269_v4 = vmov 16.0  }
 0x225   :  { %v836_v42 = vmul.f32 0.5, %v835_v52  ;;  %v848_v3 = vmul.f32 %v832_v53, %v3576_v45  ;;  %v536_v45 = vadd.f32 %v520_v48, %v3734_v19  ;;  %3115 = vrcp.f32 %v3269_v4 }
 0x226   :  { %2966 = vmatmul.msk.bf16.vlgmr.msrb.gmra.mxu0 %vm688_vm0, %v912_v44  ;;  %v822_v26 = vsel %vm821_vm11, %v3110_v32, %v818_v29 }
 0x227   :  { %v884_v35 = vpop.permute.xlu1 %883  ;;  %v847_v61 = vmul.f32 %v822_v26, %v3516_v7  ;;  %v837_v8 = vsub.f32 1.5, %v836_v42  ;;  %v858_v23 = vmul.f32 %v3778_v11, %v848_v3 }
 0x228   :  { %v901_v28 = vmul.f32 %v884_v35, %v866_v57 }
 0x229   :  { %v857_v47 = vmul.f32 %v3778_v11, %v847_v61  ;;  %v838_v44 = vmul.f32 %v3114_v12, %v837_v8  ;;  %v868_v2 = vadd.f32 %v3789_v43, %v858_v23 }
 0x22a   :  { %v908_v40 = vadd.f32 %v901_v28, %v535_v9 }
 0x22b   :  { %v867_v6 = vadd.f32 %v3789_v43, %v857_v47  ;;  %v842_v7 = vsel %vm841_vm15, %v3114_v12, %v838_v44  ;;  %v3116_v26 = vpop.eup %3115 }
 0x22c   :  { %v913_v39 = vpack.c.bf16 %v908_v40, %v907_v62  ;;  %v849_v9 = vmul.f32 %v842_v7, %v3536_v21  ;;  %v1045_v42 = vmul.f32 16.0, %v3116_v26  ;;  %vm1049_vm1 = vweird.f32 %v3116_v26 }
 0x22e   :  { %v859_v56 = vmul.f32 %v3778_v11, %v849_v9  ;;  %v1046_v61 = vsub.f32 1.0, %v1045_v42 }
 0x230   :  { %v869_v40 = vadd.f32 %v3789_v43, %v859_v56  ;;  %v1047_v3 = vmul.f32 %v3116_v26, %v1046_v61 }
 0x232   :  { %v1048_v8 = vadd.f32 %v3116_v26, %v1047_v3 }
 0x234   :  { %v3885_v38 = vsel %vm1049_vm1, %v3116_v26, %v1048_v8 }
 0x236   :  { %2967 = vmatmul.msk.bf16.gmra.mxu0 %vm688_vm0, %v913_v39  ;;  %v538_v39 = vadd.f32 %v3781_v16, %v3751_v34 }
 0x23f   :  { %v886_v24 = vpop.permute.xlu1 %885 }
 0x240   :  { %v902_v32 = vmul.f32 %v886_v24, %v867_v6 }
 0x242   :  { %v909_v41 = vadd.f32 %v902_v32, %v536_v45 }
 0x247   :  { %v888_v57 = vpop.permute.xlu0 %887 }
 0x248   :  { %v903_v35 = vmul.f32 %v888_v57, %v868_v2 }
 0x24a   :  { %v910_v13 = vadd.f32 %v903_v35, %v537_v10 }
 0x24c   :  { %v914_v28 = vpack.c.bf16 %v910_v13, %v909_v41 }
 0x24e   :  { %2968 = vmatmul.msk.bf16.gmra.mxu0 %vm688_vm0, %v914_v28 }
 0x24f   :  { %v890_v62 = vpop.permute.xlu0 %889 }
 0x250   :  { %v904_v33 = vmul.f32 %v890_v62, %v869_v40 }
 0x252   :  { %v911_v19 = vadd.f32 %v904_v33, %v538_v39 }
 0x254   :  { %v915_v5 = vpack.c.bf16 %v911_v19, %v911_v19 }
 0x25e   :  { %2969 = vmatmul.msk.bf16.gmra.mxu0 %vm688_vm0, %v915_v5 }
 0x2a3   :  { %v3827_v27 = vpop.f32.mrf.mxu0 }
 0x2a4   :  { %979 = vrot.lane.b32.xlu0 %v3827_v27, %s3268_s29  ;;  %v1002_v21 = vsel %vm125_vm5, %v3827_v27, 0.0 }
 0x2a5   :  { %1003 = vadd.xlane.f32.xlu2 %v1002_v21 }
 0x2ab   :  { %v3833_v11 = vpop.f32.mrf.mxu0 }
 0x2ac   :  { %1353 = vrot.lane.b32.xlu0 %v3827_v27, %s3267_s17  ;;  %v1005_v34 = vsel %vm125_vm5, %v3833_v11, 0.0 }
 0x2ad   :  { %1006 = vadd.xlane.f32.xlu1 %v1005_v34 }
 0x2b3   :  { %v3841_v16 = vpop.f32.mrf.mxu0 }
 0x2b4   :  { %981 = vrot.lane.b32.xlu0 %v3833_v11, %s3268_s29  ;;  %v1008_v48 = vsel %vm125_vm5, %v3841_v16, 0.0 }
 0x2bb   :  { %v3847_v43 = vpop.f32.mrf.mxu0 }
 0x2bc   :  { %1355 = vrot.lane.b32.xlu0 %v3833_v11, %s3267_s17  ;;  %v1011_v52 = vsel %vm125_vm5, %v3847_v43, 0.0 }
 0x2bd   :  { %1357 = vrot.lane.b32.xlu2 %v3841_v16, %s3267_s17 }
 0x2c4   :  { %985 = vrot.lane.b32.xlu0 %v3847_v43, %s3268_s29 }
 0x2c6   :  { %983 = vrot.lane.b32.xlu1 %v3841_v16, %s3268_s29 }
 0x2cb   :  { %v3853_v22 = vpop.f32.mrf.mxu0 }
 0x2cc   :  { %1359 = vrot.lane.b32.xlu0 %v3847_v43, %s3267_s17  ;;  %v1014_v51 = vsel %vm125_vm5, %v3853_v22, 0.0 }
 0x2d3   :  { %v3857_v12 = vpop.f32.mrf.mxu0 }
 0x2d4   :  { %v1017_v29 = vsel %vm125_vm5, %v3857_v12, 0.0 }
 0x2db   :  { %v3859_v37 = vpop.f32.mrf.mxu0 }
 0x2e3   :  { %v970_v36 = vpop.f32.mrf.mxu0 }
 0x2e6   :  { %1015 = vadd.xlane.f32.xlu2 %v1014_v51 }
 0x2ee   :  { %1018 = vadd.xlane.f32.xlu2 %v1017_v29 }
 0x2f0   :  { %1009 = vadd.xlane.f32.xlu1 %v1008_v48 }
 0x2f6   :  { %1012 = vadd.xlane.f32.xlu0 %v1011_v52 }
 0x306   :  { %991 = vrot.lane.b32.xlu2 %v3859_v37, %s3268_s29 }
 0x309   :  { %987 = vrot.lane.b32.xlu1 %v3853_v22, %s3268_s29 }
 0x30a   :  { %1361 = vrot.lane.b32.xlu0 %v3853_v22, %s3267_s17 }
 0x311   :  { %989 = vrot.lane.b32.xlu1 %v3857_v12, %s3268_s29 }
 0x316   :  { %v3877_v53 = vpop.permute.xlu0 %979 }
 0x317   :  { %1367 = vrot.lane.b32.xlu2 %v3877_v53, %s3267_s17 }
 0x318   :  { %v1004_v47 = vpop.xlane.xlu2 %1003 }
 0x319   :  { %1363 = vrot.lane.b32.xlu1 %v3857_v12, %s3267_s17  ;;  %v1051_v23 = vmul.f32 %v3885_v38, %v1004_v47 }
 0x31b   :  { %v3889_v44 = vsub.f32 %v3827_v27, %v1051_v23 }
 0x31d   :  { %v1079_v24 = vmul.f32 %v3889_v44, %v3889_v44 }
 0x31e   :  { %v1354_v6 = vpop.permute.xlu0 %1353 }
 0x31f   :  { %v1093_v32 = vsel %vm125_vm5, %v1079_v24, 0.0  ;;  %v1395_v7 = vsel %vm125_vm5, %v1354_v6, 0.0 }
 0x320   :  { %v3896_v57 = vpop.xlane.xlu1 %1006  ;;  %v1358_v10 = vpop.permute.xlu2 %1357 }
 0x321   :  { %1365 = vrot.lane.b32.xlu1 %v3859_v37, %s3267_s17  ;;  %v1401_v41 = vsel %vm125_vm5, %v1358_v10, 0.0 }
 0x326   :  { %v3894_v2 = vpop.permute.xlu0 %981 }
 0x32e   :  { %v1356_v45 = vpop.permute.xlu0 %1355 }
 0x32f   :  { %v1398_v62 = vsel %vm125_vm5, %v1356_v45, 0.0 }
 0x334   :  { %1094 = vadd.xlane.f32.xlu0 %v1093_v32 }
 0x336   :  { %v3904_v13 = vpop.permute.xlu0 %985 }
 0x338   :  { %v3899_v35 = vpop.permute.xlu1 %983 }
 0x33e   :  { %v1360_v56 = vpop.permute.xlu0 %1359 }
 0x33f   :  { %v1404_v39 = vsel %vm125_vm5, %v1360_v56, 0.0 }
 0x340   :  { %1396 = vadd.xlane.f32.xlu2 %v1395_v7 }
 0x348   :  { %1371 = vrot.lane.b32.xlu0 %v3899_v35, %s3267_s17 }
 0x34b   :  { %1402 = vadd.xlane.f32.xlu1 %v1401_v41 }
 0x350   :  { %1373 = vrot.lane.b32.xlu0 %v3904_v13, %s3267_s17 }
 0x358   :  { %1369 = vrot.lane.b32.xlu2 %v3894_v2, %s3267_s17 }
 0x359   :  { %v3924_v5 = vpop.xlane.xlu2 %1015 }
 0x361   :  { %v3928_v51 = vpop.xlane.xlu2 %1018 }
 0x363   :  { %v3910_v9 = vpop.xlane.xlu1 %1009 }
 0x369   :  { %v3921_v33 = vpop.xlane.xlu0 %1012  ;;  %v3930_v29 = vpop.permute.xlu2 %991 }
 0x371   :  { %v1368_v48 = vpop.permute.xlu2 %1367 }
 0x372   :  { %v1416_v52 = vsel %vm125_vm5, %v1368_v48, 0.0 }
 0x37b   :  { %v3912_v28 = vpop.permute.xlu1 %987 }
 0x37c   :  { %1375 = vrot.lane.b32.xlu1 %v3912_v28, %s3267_s17  ;;  %v1362_v34 = vpop.permute.xlu0 %1361 }
 0x37d   :  { %v1407_v36 = vsel %vm125_vm5, %v1362_v34, 0.0 }
 0x381   :  { %1399 = vadd.xlane.f32.xlu2 %v1398_v62 }
 0x383   :  { %v3917_v40 = vpop.permute.xlu1 %989 }
 0x384   :  { %1377 = vrot.lane.b32.xlu1 %v3917_v40, %s3267_s17 }
 0x389   :  { %1405 = vadd.xlane.f32.xlu2 %v1404_v39 }
 0x38b   :  { %v1364_v19 = vpop.permute.xlu1 %1363 }
 0x38c   :  { %v1410_v21 = vsel %vm125_vm5, %v1364_v19, 0.0 }
 0x38d   :  { %1411 = vadd.xlane.f32.xlu0 %v1410_v21 }
 0x391   :  { %1408 = vadd.xlane.f32.xlu2 %v1407_v36 }
 0x393   :  { %v1366_v4 = vpop.permute.xlu1 %1365 }
 0x394   :  { %v1413_v6 = vsel %vm125_vm5, %v1366_v4, 0.0 }
 0x3a7   :  { %v3950_v7 = vpop.xlane.xlu0 %1094 }
 0x3a9   :  { %1379 = vrot.lane.b32.xlu2 %v3930_v29, %s3267_s17 }
 0x3ae   :  { %1417 = vadd.xlane.f32.xlu1 %v1416_v52 }
 0x3b3   :  { %v1397_v26 = vpop.xlane.xlu2 %1396 }
 0x3b4   :  { %v1437_v42 = vmul.f32 %v1397_v26, %v3885_v38 }
 0x3b6   :  { %v3938_v8 = vsub.f32 %v3827_v27, %v1437_v42 }
 0x3b8   :  { %v1465_v24 = vmul.f32 %v3938_v8, %v3938_v8 }
 0x3ba   :  { %v1372_v10 = vpop.permute.xlu0 %1371 }
 0x3bb   :  { %v1370_v32 = vpop.permute.xlu2 %1369 }
 0x3bc   :  { %v1419_v45 = vsel %vm125_vm5, %v1370_v32, 0.0 }
 0x3be   :  { %v1403_v61 = vpop.xlane.xlu1 %1402 }
 0x3bf   :  { %v1439_v3 = vmul.f32 %v1403_v61, %v3885_v38 }
 0x3c1   :  { %v3941_v47 = vsub.f32 %v3841_v16, %v1439_v3 }
 0x3c2   :  { %v1374_v41 = vpop.permute.xlu0 %1373 }
 0x3c3   :  { %v1467_v23 = vmul.f32 %v3941_v47, %v3941_v47  ;;  %v1425_v56 = vsel %vm125_vm5, %v1374_v41, 0.0 }
 0x3c5   :  { %1497 = vrot.lane.b32.xlu0 %v1467_v23, %s3267_s17 }
 0x3c7   :  { %1493 = vrot.lane.b32.xlu1 %v1465_v24, %s3267_s17 }
 0x3d2   :  { %1414 = vadd.xlane.f32.xlu2 %v1413_v6  ;;  %v1422_v6 = vsel %vm125_vm5, %v1372_v10, 0.0 }
 0x3da   :  { %1420 = vadd.xlane.f32.xlu2 %v1419_v45 }
 0x3ee   :  { %v1376_v4 = vpop.permute.xlu1 %1375 }
 0x3ef   :  { %1426 = vadd.xlane.f32.xlu0 %v1425_v56 }
 0x3f4   :  { %v1400_v62 = vpop.xlane.xlu2 %1399 }
 0x3f5   :  { %v1438_v39 = vmul.f32 %v1400_v62, %v3885_v38 }
 0x3f6   :  { %v1378_v42 = vpop.permute.xlu1 %1377 }
 0x3f7   :  { %v3956_v19 = vsub.f32 %v3833_v11, %v1438_v39 }
 0x3f9   :  { %v1466_v21 = vmul.f32 %v3956_v19, %v3956_v19 }
 0x3fb   :  { %1495 = vrot.lane.b32.xlu1 %v1466_v21, %s3267_s17 }
 0x3fc   :  { %v1406_v26 = vpop.xlane.xlu2 %1405 }
 0x3fd   :  { %v1440_v56 = vmul.f32 %v1406_v26, %v3885_v38 }
 0x3ff   :  { %v3979_v62 = vsub.f32 %v3847_v43, %v1440_v56 }
 0x400   :  { %v1412_v34 = vpop.xlane.xlu0 %1411 }
 0x401   :  { %v1442_v36 = vmul.f32 %v1412_v34, %v3885_v38  ;;  %v1468_v39 = vmul.f32 %v3979_v62, %v3979_v62 }
 0x403   :  { %v3963_v48 = vsub.f32 %v3857_v12, %v1442_v36 }
 0x404   :  { %v1409_v3 = vpop.xlane.xlu2 %1408 }
 0x405   :  { %v1470_v52 = vmul.f32 %v3963_v48, %v3963_v48 }
 0x407   :  { %1503 = vrot.lane.b32.xlu2 %v1470_v52, %s3267_s17  ;;  %v1428_v52 = vsel %vm125_vm5, %v1376_v4, 0.0 }
 0x40c   :  { %v1380_v45 = vpop.permute.xlu2 %1379 }
 0x40d   :  { %v1434_v41 = vsel %vm125_vm5, %v1380_v45, 0.0 }
 0x421   :  { %v1418_v61 = vpop.xlane.xlu1 %1417 }
 0x422   :  { %v1444_v23 = vmul.f32 %v1418_v61, %v3885_v38  ;;  %v1441_v61 = vmul.f32 %v1409_v3, %v3885_v38 }
 0x424   :  { %v3970_v24 = vsub.f32 %v3877_v53, %v1444_v23  ;;  %v3994_v23 = vsub.f32 %v3853_v22, %v1441_v61 }
 0x425   :  { %1423 = vadd.xlane.f32.xlu1 %v1422_v6 }
 0x426   :  { %v1472_v32 = vmul.f32 %v3970_v24, %v3970_v24  ;;  %v1469_v6 = vmul.f32 %v3994_v23, %v3994_v23 }
 0x428   :  { %1507 = vrot.lane.b32.xlu0 %v1472_v32, %s3267_s17 }
 0x430   :  { %1435 = vadd.xlane.f32.xlu2 %v1434_v41 }
 0x437   :  { %v1498_v10 = vpop.permute.xlu0 %1497 }
 0x439   :  { %v1494_v32 = vpop.permute.xlu1 %1493 }
 0x43e   :  { %1499 = vrot.lane.b32.xlu1 %v1468_v39, %s3267_s17 }
 0x462   :  { %v1427_v21 = vpop.xlane.xlu0 %1426 }
 0x463   :  { %v1447_v34 = vmul.f32 %v1427_v21, %v3885_v38 }
 0x465   :  { %v3986_v36 = vsub.f32 %v3904_v13, %v1447_v34  ;;  %v1431_v34 = vsel %vm125_vm5, %v1378_v42, 0.0 }
 0x467   :  { %v1475_v26 = vmul.f32 %v3986_v36, %v3986_v36 }
 0x468   :  { %1429 = vadd.xlane.f32.xlu1 %v1428_v52  ;;  %v1415_v52 = vpop.xlane.xlu2 %1414 }
 0x469   :  { %1513 = vrot.lane.b32.xlu2 %v1475_v26, %s3267_s17  ;;  %v1443_v26 = vmul.f32 %v1415_v52, %v3885_v38 }
 0x46b   :  { %v4010_v61 = vsub.f32 %v3859_v37, %v1443_v26 }
 0x46d   :  { %v1496_v45 = vpop.permute.xlu1 %1495 }
 0x470   :  { %v1421_v52 = vpop.xlane.xlu2 %1420 }
 0x471   :  { %v1445_v26 = vmul.f32 %v1421_v52, %v3885_v38 }
 0x481   :  { %1501 = vrot.lane.b32.xlu1 %v1469_v6, %s3267_s17  ;;  %v1471_v6 = vmul.f32 %v4010_v61, %v4010_v61 }
 0x498   :  { %v1424_v41 = vpop.xlane.xlu1 %1423 }
 0x499   :  { %v1446_v4 = vmul.f32 %v1424_v41, %v3885_v38  ;;  %v1541_v41 = vsel %vm125_vm5, %v1498_v10, 0.0  ;;  %v4026_v10 = vsub.f32 %v3894_v2, %v1445_v26  ;;  %v1538_v26 = vsel %vm125_vm5, %v1496_v45, 0.0 }
 0x49a   :  { %v1508_v56 = vpop.permute.xlu0 %1507 }
 0x49b   :  { %v4001_v39 = vsub.f32 %v3899_v35, %v1446_v4  ;;  %v1556_v21 = vsel %vm125_vm5, %v1508_v56, 0.0 }
 0x49c   :  { %1557 = vadd.xlane.f32.xlu2 %v1556_v21 }
 0x49d   :  { %v1474_v3 = vmul.f32 %v4001_v39, %v4001_v39 }
 0x49f   :  { %1511 = vrot.lane.b32.xlu0 %v1474_v3, %s3267_s17 }
 0x4ab   :  { %1432 = vadd.xlane.f32.xlu1 %v1431_v34  ;;  %v1535_v34 = vsel %vm125_vm5, %v1494_v32, 0.0 }
 0x4b0   :  { %v1500_v4 = vpop.permute.xlu1 %1499 }
 0x4c4   :  { %1505 = vrot.lane.b32.xlu1 %v1471_v6, %s3267_s17  ;;  %v1473_v6 = vmul.f32 %v4026_v10, %v4026_v10 }
 0x4c9   :  { %1542 = vadd.xlane.f32.xlu0 %v1541_v41 }
 0x4db   :  { %v1430_v56 = vpop.xlane.xlu1 %1429 }
 0x4dc   :  { %v1448_v21 = vmul.f32 %v1430_v56, %v3885_v38 }
 0x4de   :  { %v4018_v42 = vsub.f32 %v3912_v28, %v1448_v21 }
 0x4e0   :  { %v1476_v3 = vmul.f32 %v4018_v42, %v4018_v42 }
 0x4e2   :  { %1515 = vrot.lane.b32.xlu0 %v1476_v3, %s3267_s17 }
 0x4ee   :  { %1536 = vadd.xlane.f32.xlu1 %v1535_v34 }
 0x4f3   :  { %v1502_v21 = vpop.permute.xlu1 %1501 }
 0x507   :  { %1509 = vrot.lane.b32.xlu1 %v1473_v6, %s3267_s17  ;;  %v1544_v6 = vsel %vm125_vm5, %v1500_v4, 0.0 }
 0x511   :  { %v1512_v41 = vpop.permute.xlu0 %1511 }
 0x512   :  { %v1562_v56 = vsel %vm125_vm5, %v1512_v41, 0.0  ;;  %v1547_v41 = vsel %vm125_vm5, %v1502_v21, 0.0 }
 0x513   :  { %1563 = vadd.xlane.f32.xlu2 %v1562_v56  ;;  %v1504_v56 = vpop.permute.xlu2 %1503 }
 0x51b   :  { %v1436_v20 = vpop.xlane.xlu2 %1435 }
 0x51c   :  { %v1450_v4 = vmul.f32 %v1436_v20, %v3885_v38 }
 0x51e   :  { %v1433_v3 = vpop.xlane.xlu1 %1432  ;;  %v4049_v21 = vsub.f32 %v3930_v29, %v1450_v4 }
 0x51f   :  { %v1449_v32 = vmul.f32 %v1433_v3, %v3885_v38  ;;  %v1550_v3 = vsel %vm125_vm5, %v1504_v56, 0.0 }
 0x521   :  { %v4034_v34 = vsub.f32 %v3917_v40, %v1449_v32 }
 0x523   :  { %v1477_v52 = vmul.f32 %v4034_v34, %v4034_v34  ;;  %v1514_v56 = vpop.permute.xlu2 %1513 }
 0x525   :  { %1517 = vrot.lane.b32.xlu0 %v1477_v52, %s3267_s17 }
 0x531   :  { %1539 = vadd.xlane.f32.xlu1 %v1538_v26  ;;  %v1478_v26 = vmul.f32 %v4049_v21, %v4049_v21 }
 0x536   :  { %v1506_v32 = vpop.permute.xlu1 %1505 }
 0x537   :  { %v1553_v30 = vsel %vm125_vm5, %v1506_v32, 0.0 }
 0x539   :  { %1545 = vadd.xlane.f32.xlu1 %v1544_v6 }
 0x53c   :  { %v4043_v59 = vpop.xlane.xlu0 %1542 }
 0x541   :  { %1548 = vadd.xlane.f32.xlu1 %v1547_v41 }
 0x549   :  { %1551 = vadd.xlane.f32.xlu1 %v1550_v3  ;;  %v1565_v3 = vsel %vm125_vm5, %v1514_v56, 0.0 }
 0x54f   :  { %1554 = vadd.xlane.f32.xlu0 %v1553_v30 }
 0x554   :  { %v1516_v52 = vpop.permute.xlu0 %1515 }
 0x555   :  { %v1568_v45 = vsel %vm125_vm5, %v1516_v52, 0.0  ;;  %v1558_v52 = vpop.xlane.xlu2 %1557 }
 0x556   :  { %1569 = vadd.xlane.f32.xlu2 %v1568_v45  ;;  %v1584_v45 = vmul.f32 %v1558_v52, %v3885_v38 }
 0x561   :  { %v4054_v6 = vpop.xlane.xlu1 %1536 }
 0x562   :  { %1519 = vrot.lane.b32.xlu1 %v1478_v26, %s3267_s17  ;;  %v1598_v26 = vadd.f32 1e-06, %v1584_v45 }
 0x564   :  { %3117 = vrsqrt.f32 %v1598_v26  ;;  %vm1681_vm3 = vweird.f32 %v1598_v26 }
 0x56a   :  { %v3118_v17 = vpop.eup %3117 }
 0x56b   :  { %vm1682_vm2 = vweird.f32 %v3118_v17 }
 0x56c   :  { %vm1683_vm4 = vmor %vm1681_vm3, %vm1682_vm2 }
 0x579   :  { %v1510_v41 = vpop.permute.xlu1 %1509 }
 0x57a   :  { %v1559_v30 = vsel %vm125_vm5, %v1510_v41, 0.0  ;;  %v1676_v41 = vmul.f32 %v3118_v17, %v1598_v26 }
 0x57b   :  { %1560 = vadd.xlane.f32.xlu0 %v1559_v30 }
 0x57c   :  { %v1677_v30 = vmul.f32 %v3118_v17, %v1676_v41 }
 0x58c   :  { %1566 = vadd.xlane.f32.xlu1 %v1565_v3 }
 0x597   :  { %v1518_v32 = vpop.permute.xlu0 %1517 }
 0x598   :  { %v1571_v20 = vsel %vm125_vm5, %v1518_v32, 0.0  ;;  %v1678_v32 = vmul.f32 0.5, %v1677_v30 }
 0x599   :  { %1572 = vadd.xlane.f32.xlu2 %v1571_v20 }
 0x59a   :  { %v1679_v20 = vsub.f32 1.5, %v1678_v32 }
 0x59c   :  { %v1680_v15 = vmul.f32 %v3118_v17, %v1679_v20 }
 0x59e   :  { %v1684_v50 = vsel %vm1683_vm4, %v3118_v17, %v1680_v15 }
 0x5a4   :  { %v4060_v4 = vpop.xlane.xlu1 %1539 }
 0x5ac   :  { %v4062_v14 = vpop.xlane.xlu1 %1545 }
 0x5b4   :  { %v4064_v58 = vpop.xlane.xlu1 %1548 }
 0x5bc   :  { %v4067_v31 = vpop.xlane.xlu1 %1551 }
 0x5c2   :  { %v1555_v56 = vpop.xlane.xlu0 %1554 }
 0x5c3   :  { %v1583_v3 = vmul.f32 %v1555_v56, %v3885_v38  ;;  %v1752_v56 = vmul.f32 %v1684_v50, %v3970_v24 }
 0x5c5   :  { %v1597_v49 = vadd.f32 1e-06, %v1583_v3  ;;  %v1564_v3 = vpop.xlane.xlu2 %1563  ;;  %v1771_v15 = vmul.f32 %v3683_v46, %v1752_v56 }
 0x5c6   :  { %v1586_v54 = vmul.f32 %v1564_v3, %v3885_v38 }
 0x5c7   :  { %3119 = vrsqrt.f32 %v1597_v49  ;;  %vm1671_vm7 = vweird.f32 %v1597_v49  ;;  %v1790_v50 = vadd.f32 %v3681_v18, %v1771_v15 }
 0x5c8   :  { %v1600_v17 = vadd.f32 1e-06, %v1586_v54 }
 0x5ca   :  { %3121 = vrsqrt.f32 %v1600_v17  ;;  %vm1701_vm10 = vweird.f32 %v1600_v17 }
 0x5cd   :  { %v3120_v52 = vpop.eup %3119 }
 0x5ce   :  { %v1666_v45 = vmul.f32 %v3120_v52, %v1597_v49  ;;  %vm1672_vm6 = vweird.f32 %v3120_v52  ;;  %v1570_v49 = vpop.xlane.xlu2 %1569 }
 0x5cf   :  { %vm1673_vm8 = vmor %vm1671_vm7, %vm1672_vm6 }
 0x5d0   :  { %v1667_v1 = vmul.f32 %v3120_v52, %v1666_v45 }
 0x5d2   :  { %v1668_v41 = vmul.f32 0.5, %v1667_v1 }
 0x5d4   :  { %v1669_v0 = vsub.f32 1.5, %v1668_v41  ;;  %v1520_v25 = vpop.permute.xlu1 %1519 }
 0x5d5   :  { %v1574_v30 = vsel %vm125_vm5, %v1520_v25, 0.0 }
 0x5d6   :  { %v1670_v32 = vmul.f32 %v3120_v52, %v1669_v0  ;;  %1575 = vadd.xlane.f32.xlu0 %v1574_v30  ;;  %v3122_v0 = vpop.eup %3121 }
 0x5d7   :  { %v1696_v24 = vmul.f32 %v3122_v0, %v1600_v17  ;;  %vm1702_vm9 = vweird.f32 %v3122_v0 }
 0x5d8   :  { %v1674_v20 = vsel %vm1673_vm8, %v3120_v52, %v1670_v32  ;;  %v1588_v52 = vmul.f32 %v1570_v49, %v3885_v38  ;;  %vm1703_vm11 = vmor %vm1701_vm10, %vm1702_vm9 }
 0x5d9   :  { %v1751_v26 = vmul.f32 %v1674_v20, %v4010_v61  ;;  %v1697_v41 = vmul.f32 %v3122_v0, %v1696_v24 }
 0x5da   :  { %v1602_v61 = vadd.f32 1e-06, %v1588_v52 }
 0x5db   :  { %v1770_v1 = vmul.f32 %v3683_v46, %v1751_v26  ;;  %v1698_v54 = vmul.f32 0.5, %v1697_v41 }
 0x5dc   :  { %3123 = vrsqrt.f32 %v1602_v61  ;;  %vm1721_vm1 = vweird.f32 %v1602_v61 }
 0x5dd   :  { %v1789_v45 = vadd.f32 %v3681_v18, %v1770_v1  ;;  %v1699_v32 = vsub.f32 1.5, %v1698_v54 }
 0x5df   :  { %v1807_v25 = vpack.c.bf16 %v1790_v50, %v1789_v45  ;;  %v1700_v15 = vmul.f32 %v3122_v0, %v1699_v32 }
 0x5e1   :  { %1838 = vrot.lane.b32.xlu1 %v1807_v25, %s3267_s17  ;;  %v1704_v25 = vsel %vm1703_vm11, %v3122_v0, %v1700_v15 }
 0x5e2   :  { %v3124_v20 = vpop.eup %3123 }
 0x5e3   :  { %v1716_v45 = vmul.f32 %v3124_v20, %v1602_v61  ;;  %vm1722_vm15 = vweird.f32 %v3124_v20 }
 0x5e4   :  { %vm1723_vm2 = vmor %vm1721_vm1, %vm1722_vm15 }
 0x5e5   :  { %v1717_v24 = vmul.f32 %v3124_v20, %v1716_v45 }
 0x5e7   :  { %v1718_v32 = vmul.f32 0.5, %v1717_v24 }
 0x5e9   :  { %v1719_v15 = vsub.f32 1.5, %v1718_v32 }
 0x5ee   :  { %v1561_v30 = vpop.xlane.xlu0 %1560 }
 0x5ef   :  { %v1585_v56 = vmul.f32 %v1561_v30, %v3885_v38  ;;  %v1754_v30 = vmul.f32 %v1704_v25, %v4001_v39  ;;  %v1720_v39 = vmul.f32 %v3124_v20, %v1719_v15 }
 0x5f1   :  { %v1599_v3 = vadd.f32 1e-06, %v1585_v56  ;;  %v1773_v0 = vmul.f32 %v3683_v46, %v1754_v30 }
 0x5f3   :  { %3125 = vrsqrt.f32 %v1599_v3  ;;  %vm1691_vm13 = vweird.f32 %v1599_v3 }
 0x5f9   :  { %v3126_v26 = vpop.eup %3125 }
 0x5fa   :  { %v1686_v1 = vmul.f32 %v3126_v26, %v1599_v3  ;;  %vm1692_vm12 = vweird.f32 %v3126_v26 }
 0x5fb   :  { %vm1693_vm14 = vmor %vm1691_vm13, %vm1692_vm12 }
 0x5fc   :  { %v1687_v50 = vmul.f32 %v3126_v26, %v1686_v1 }
 0x5fe   :  { %v1688_v49 = vmul.f32 0.5, %v1687_v50  ;;  %v1792_v50 = vadd.f32 %v3681_v18, %v1773_v0  ;;  %v1577_v0 = vmul.f32 %v4054_v6, %v3885_v38 }
 0x5ff   :  { %v1567_v52 = vpop.xlane.xlu1 %1566 }
 0x600   :  { %v1689_v60 = vsub.f32 1.5, %v1688_v49  ;;  %v1587_v41 = vmul.f32 %v1567_v52, %v3885_v38 }
 0x602   :  { %v1690_v56 = vmul.f32 %v3126_v26, %v1689_v60  ;;  %v1601_v54 = vadd.f32 1e-06, %v1587_v41 }
 0x604   :  { %v1694_v63 = vsel %vm1693_vm14, %v3126_v26, %v1690_v56  ;;  %3127 = vrsqrt.f32 %v1601_v54  ;;  %vm1711_vm4 = vweird.f32 %v1601_v54 }
 0x605   :  { %v1753_v17 = vmul.f32 %v1694_v63, %v4026_v10  ;;  %v1724_v63 = vsel %vm1723_vm2, %v3124_v20, %v1720_v39 }
 0x606   :  { %v1756_v24 = vmul.f32 %v1724_v63, %v4018_v42  ;;  %v1580_v42 = vmul.f32 %v4062_v14, %v3885_v38  ;;  %v1053_v14 = vmul.f32 %v3885_v38, %v3910_v9 }
 0x607   :  { %v1772_v1 = vmul.f32 %v3683_v46, %v1753_v17 }
 0x608   :  { %v1775_v56 = vmul.f32 %v3683_v46, %v1756_v24  ;;  %v1594_v15 = vadd.f32 1e-06, %v1580_v42  ;;  %v4110_v6 = vsub.f32 %v3841_v16, %v1053_v14 }
 0x609   :  { %v1791_v45 = vadd.f32 %v3681_v18, %v1772_v1 }
 0x60a   :  { %v3128_v49 = vpop.eup %3127  ;;  %v1794_v17 = vadd.f32 %v3681_v18, %v1775_v56  ;;  %3129 = vrsqrt.f32 %v1594_v15  ;;  %v1081_v24 = vmul.f32 %v4110_v6, %v4110_v6  ;;  %vm1641_vm10 = vweird.f32 %v1594_v15 }
 0x60b   :  { %v1706_v60 = vmul.f32 %v3128_v49, %v1601_v54  ;;  %v1808_v3 = vpack.c.bf16 %v1792_v50, %v1791_v45  ;;  %vm1712_vm3 = vweird.f32 %v3128_v49  ;;  %v1579_v54 = vmul.f32 %v4043_v59, %v3885_v38 }
 0x60c   :  { %vm1713_vm6 = vmor %vm1711_vm4, %vm1712_vm3  ;;  %v4103_v50 = vadd.f32 1e-06, %v1577_v0 }
 0x60d   :  { %v1707_v25 = vmul.f32 %v3128_v49, %v1706_v60  ;;  %1840 = vrot.lane.b32.xlu2 %v1808_v3, %s3267_s17  ;;  %v1593_v1 = vadd.f32 1e-06, %v1579_v54  ;;  %v1020_v60 = vsel %vm125_vm5, %v3859_v37, 0.0 }
 0x60e   :  { %vm1611_vm2 = vweird.f32 %v4103_v50 }
 0x60f   :  { %v1708_v10 = vmul.f32 0.5, %v1707_v25  ;;  %3131 = vrsqrt.f32 %v1593_v1  ;;  %vm1631_vm11 = vweird.f32 %v1593_v1 }
 0x610   :  { %v3130_v59 = vpop.eup %3129 }
 0x611   :  { %v1709_v26 = vsub.f32 1.5, %v1708_v10  ;;  %v1636_v25 = vmul.f32 %v3130_v59, %v1594_v15  ;;  %vm1642_vm7 = vweird.f32 %v3130_v59 }
 0x612   :  { %vm1643_vm12 = vmor %vm1641_vm10, %vm1642_vm7 }
 0x613   :  { %v1710_v52 = vmul.f32 %v3128_v49, %v1709_v26 }
 0x615   :  { %v1714_v41 = vsel %vm1713_vm6, %v3128_v49, %v1710_v52  ;;  %v1573_v49 = vpop.xlane.xlu2 %1572  ;;  %v3132_v39 = vpop.eup %3131 }
 0x616   :  { %v1755_v30 = vmul.f32 %v1714_v41, %v3986_v36  ;;  %v1578_v36 = vmul.f32 %v4060_v4, %v3885_v38  ;;  %v1589_v4 = vmul.f32 %v1573_v49, %v3885_v38  ;;  %v1626_v10 = vmul.f32 %v3132_v39, %v1593_v1 }
 0x617   :  { %v1637_v41 = vmul.f32 %v3130_v59, %v1636_v25  ;;  %vm1632_vm8 = vweird.f32 %v3132_v39 }
 0x618   :  { %v1774_v61 = vmul.f32 %v3683_v46, %v1755_v30  ;;  %v1592_v45 = vadd.f32 1e-06, %v1578_v36  ;;  %v4114_v26 = vadd.f32 1e-06, %v1589_v4  ;;  %v1627_v30 = vmul.f32 %v3132_v39, %v1626_v10  ;;  %vm1633_vm13 = vmor %vm1631_vm11, %vm1632_vm8 }
 0x61a   :  { %v1793_v32 = vadd.f32 %v3681_v18, %v1774_v61  ;;  %3133 = vrsqrt.f32 %v1592_v45  ;;  %v1099_v61 = vsel %vm125_vm5, %v1081_v24, 0.0  ;;  %vm1621_vm15 = vweird.f32 %v1592_v45 }
 0x61b   :  { %3135 = vrsqrt.f32 %v4103_v50  ;;  %vm1731_vm6 = vweird.f32 %v4114_v26 }
 0x61c   :  { %v1809_v20 = vpack.c.bf16 %v1794_v17, %v1793_v32  ;;  %3137 = vrsqrt.f32 %v4114_v26  ;;  %v1638_v17 = vmul.f32 0.5, %v1637_v41 }
 0x61e   :  { %1842 = vrot.lane.b32.xlu0 %v1809_v20, %s3267_s17  ;;  %v1628_v20 = vmul.f32 0.5, %v1627_v30  ;;  %v1639_v0 = vsub.f32 1.5, %v1638_v17 }
 0x620   :  { %v3134_v3 = vpop.eup %3133  ;;  %v1629_v14 = vsub.f32 1.5, %v1628_v20  ;;  %v1640_v10 = vmul.f32 %v3130_v59, %v1639_v0 }
 0x621   :  { %v3136_v63 = vpop.eup %3135  ;;  %v1616_v9 = vmul.f32 %v3134_v3, %v1592_v45  ;;  %vm1622_vm9 = vweird.f32 %v3134_v3 }
 0x622   :  { %v1606_v52 = vmul.f32 %v3136_v63, %v4103_v50  ;;  %v4121_v54 = vpop.eup %3137  ;;  %v1630_v24 = vmul.f32 %v3132_v39, %v1629_v14  ;;  %vm1612_vm14 = vweird.f32 %v3136_v63  ;;  %vm1623_vm1 = vmor %vm1621_vm15, %vm1622_vm9 }
 0x623   :  { %v1617_v56 = vmul.f32 %v3134_v3, %v1616_v9  ;;  %v1726_v4 = vmul.f32 %v4121_v54, %v4114_v26  ;;  %v1023_v9 = vsel %vm125_vm5, %v3877_v53, 0.0  ;;  %vm1613_vm3 = vmor %vm1611_vm2, %vm1612_vm14  ;;  %vm1732_vm4 = vweird.f32 %v4121_v54 }
 0x624   :  { %v1607_v32 = vmul.f32 %v3136_v63, %v1606_v52  ;;  %v1634_v20 = vsel %vm1633_vm13, %v3132_v39, %v1630_v24  ;;  %vm1733_vm7 = vmor %vm1731_vm6, %vm1732_vm4 }
 0x625   :  { %v1618_v42 = vmul.f32 0.5, %v1617_v56  ;;  %v1727_v41 = vmul.f32 %v4121_v54, %v1726_v4  ;;  %v1747_v0 = vmul.f32 %v1634_v20, %v3941_v47 }
 0x626   :  { %v1608_v36 = vmul.f32 0.5, %v1607_v32  ;;  %v1644_v32 = vsel %vm1643_vm12, %v3130_v59, %v1640_v10 }
 0x627   :  { %v1619_v49 = vsub.f32 1.5, %v1618_v42  ;;  %v1748_v15 = vmul.f32 %v1644_v32, %v3979_v62  ;;  %v1766_v39 = vmul.f32 %v3683_v46, %v1747_v0 }
 0x628   :  { %v1609_v25 = vsub.f32 1.5, %v1608_v36  ;;  %v1728_v36 = vmul.f32 0.5, %v1727_v41 }
 0x629   :  { %v1620_v52 = vmul.f32 %v3134_v3, %v1619_v49  ;;  %v1767_v45 = vmul.f32 %v3683_v46, %v1748_v15 }
 0x62a   :  { %v1729_v49 = vsub.f32 1.5, %v1728_v36  ;;  %v1581_v36 = vmul.f32 %v4064_v58, %v3885_v38 }
 0x62b   :  { %v1624_v42 = vsel %vm1623_vm1, %v3134_v3, %v1620_v52 }
 0x62c   :  { %v1746_v14 = vmul.f32 %v1624_v42, %v3956_v19  ;;  %v1730_v3 = vmul.f32 %v4121_v54, %v1729_v49  ;;  %v1595_v0 = vadd.f32 1e-06, %v1581_v36 }
 0x62e   :  { %v1765_v50 = vmul.f32 %v3683_v46, %v1746_v14  ;;  %vm1651_vm15 = vweird.f32 %v1595_v0 }
 0x636   :  { %1021 = vadd.xlane.f32.xlu2 %v1020_v60  ;;  %v1026_v60 = vsel %vm125_vm5, %v3894_v2, 0.0 }
 0x63e   :  { %1100 = vadd.xlane.f32.xlu2 %v1099_v61  ;;  %v1610_v61 = vmul.f32 %v3136_v63, %v1609_v25  ;;  %v1734_v25 = vsel %vm1733_vm7, %v4121_v54, %v1730_v3 }
 0x63f   :  { %v1757_v41 = vmul.f32 %v1734_v25, %v4034_v34 }
 0x640   :  { %v1614_v1 = vsel %vm1613_vm3, %v3136_v63, %v1610_v61  ;;  %v1786_v63 = vadd.f32 %v3681_v18, %v1767_v45 }
 0x641   :  { %v1745_v59 = vmul.f32 %v1614_v1, %v3938_v8  ;;  %v1785_v8 = vadd.f32 %v3681_v18, %v1766_v39  ;;  %v1776_v54 = vmul.f32 %v3683_v46, %v1757_v41  ;;  %v1055_v1 = vmul.f32 %v3885_v38, %v3924_v5 }
 0x643   :  { %v1764_v47 = vmul.f32 %v3683_v46, %v1745_v59  ;;  %v1795_v20 = vadd.f32 %v3681_v18, %v1776_v54  ;;  %v4169_v49 = vsub.f32 %v3853_v22, %v1055_v1  ;;  %v1052_v59 = vmul.f32 %v3885_v38, %v3896_v57 }
 0x645   :  { %v1783_v24 = vadd.f32 %v3681_v18, %v1764_v47 }
 0x646   :  { %1027 = vadd.xlane.f32.xlu2 %v1026_v60  ;;  %v1784_v60 = vadd.f32 %v3681_v18, %v1765_v50 }
 0x648   :  { %1024 = vadd.xlane.f32.xlu0 %v1023_v9  ;;  %v1805_v9 = vpack.c.bf16 %v1786_v63, %v1785_v8 }
 0x649   :  { %v1576_v30 = vpop.xlane.xlu0 %1575 }
 0x64a   :  { %v1590_v56 = vmul.f32 %v1576_v30, %v3885_v38  ;;  %v1804_v30 = vpack.c.bf16 %v1784_v60, %v1783_v24 }
 0x64c   :  { %v1604_v17 = vadd.f32 1e-06, %v1590_v56 }
 0x64e   :  { %3139 = vrsqrt.f32 %v1604_v17  ;;  %vm1741_vm9 = vweird.f32 %v1604_v17 }
 0x654   :  { %v3140_v4 = vpop.eup %3139 }
 0x655   :  { %v1736_v62 = vmul.f32 %v3140_v4, %v1604_v17  ;;  %vm1742_vm8 = vweird.f32 %v3140_v4  ;;  %v1582_v17 = vmul.f32 %v4067_v31, %v3885_v38  ;;  %v1056_v31 = vmul.f32 %v3885_v38, %v3928_v51 }
 0x656   :  { %vm1743_vm10 = vmor %vm1741_vm9, %vm1742_vm8 }
 0x657   :  { %v1737_v19 = vmul.f32 %v3140_v4, %v1736_v62  ;;  %v1596_v15 = vadd.f32 1e-06, %v1582_v17  ;;  %v4185_v62 = vsub.f32 %v3833_v11, %v1052_v59 }
 0x659   :  { %v1738_v10 = vmul.f32 0.5, %v1737_v19  ;;  %3141 = vrsqrt.f32 %v1596_v15  ;;  %v1080_v8 = vmul.f32 %v4185_v62, %v4185_v62  ;;  %vm1661_vm13 = vweird.f32 %v1596_v15 }
 0x65a   :  { %3143 = vrsqrt.f32 %v1595_v0 }
 0x65b   :  { %v1739_v52 = vsub.f32 1.5, %v1738_v10  ;;  %v1096_v10 = vsel %vm125_vm5, %v1080_v8, 0.0 }
 0x65c   :  { %1834 = vrot.lane.b32.xlu0 %v1805_v9, %s3267_s17 }
 0x65d   :  { %v1740_v26 = vmul.f32 %v3140_v4, %v1739_v52  ;;  %v1035_v52 = vsel %vm125_vm5, %v3912_v28, 0.0 }
 0x65e   :  { %1832 = vrot.lane.b32.xlu2 %v1804_v30, %s3267_s17 }
 0x65f   :  { %v1744_v56 = vsel %vm1743_vm10, %v3140_v4, %v1740_v26  ;;  %v3142_v45 = vpop.eup %3141  ;;  %v4180_v4 = vsub.f32 %v3857_v12, %v1056_v31  ;;  %v1839_v31 = vpop.permute.xlu1 %1838 }
 0x660   :  { %v1758_v61 = vmul.f32 %v1744_v56, %v4049_v21  ;;  %v1054_v21 = vmul.f32 %v3885_v38, %v3921_v33  ;;  %v1083_v33 = vmul.f32 %v4169_v49, %v4169_v49  ;;  %v3144_v5 = vpop.eup %3143  ;;  %v1656_v50 = vmul.f32 %v3142_v45, %v1596_v15 }
 0x661   :  { %v1646_v3 = vmul.f32 %v3144_v5, %v1595_v0  ;;  %v1084_v63 = vmul.f32 %v4180_v4, %v4180_v4  ;;  %vm1662_vm11 = vweird.f32 %v3142_v45  ;;  %vm1652_vm12 = vweird.f32 %v3144_v5 }
 0x662   :  { %v1777_v32 = vmul.f32 %v3683_v46, %v1758_v61  ;;  %v4166_v14 = vsub.f32 %v3847_v43, %v1054_v21  ;;  %v1105_v51 = vsel %vm125_vm5, %v1083_v33, 0.0  ;;  %v1657_v47 = vmul.f32 %v3142_v45, %v1656_v50  ;;  %vm1663_vm14 = vmor %vm1661_vm13, %vm1662_vm11 }
 0x663   :  { %v1647_v19 = vmul.f32 %v3144_v5, %v1646_v3  ;;  %v1108_v57 = vsel %vm125_vm5, %v1084_v63, 0.0  ;;  %vm1653_vm1 = vmor %vm1651_vm15, %vm1652_vm12  ;;  %v1032_v50 = vsel %vm125_vm5, %v3904_v13, 0.0 }
 0x664   :  { %v1796_v42 = vadd.f32 %v3681_v18, %v1777_v32  ;;  %v1082_v58 = vmul.f32 %v4166_v14, %v4166_v14  ;;  %v1658_v60 = vmul.f32 0.5, %v1657_v47 }
 0x665   :  { %v1648_v25 = vmul.f32 0.5, %v1647_v19 }
 0x666   :  { %v1810_v34 = vpack.c.bf16 %v1796_v42, %v1795_v20  ;;  %v1102_v39 = vsel %vm125_vm5, %v1082_v58, 0.0  ;;  %v1659_v9 = vsub.f32 1.5, %v1658_v60  ;;  %v1029_v58 = vsel %vm125_vm5, %v3899_v35, 0.0 }
 0x667   :  { %v1649_v24 = vsub.f32 1.5, %v1648_v25  ;;  %v1038_v60 = vsel %vm125_vm5, %v3917_v40, 0.0 }
 0x668   :  { %1844 = vrot.lane.b32.xlu1 %v1810_v34, %s3267_s17  ;;  %v1660_v41 = vmul.f32 %v3142_v45, %v1659_v9  ;;  %v1877_v9 = vsel %vm125_vm5, %v1839_v31, 0 }
 0x669   :  { %v1650_v30 = vmul.f32 %v3144_v5, %v1649_v24 }
 0x66a   :  { %v1664_v26 = vsel %vm1663_vm14, %v3142_v45, %v1660_v41 }
 0x66b   :  { %v1654_v56 = vsel %vm1653_vm1, %v3144_v5, %v1650_v30  ;;  %v1750_v61 = vmul.f32 %v1664_v26, %v3963_v48  ;;  %v1135_v30 = vmul.f32 %v3950_v7, %v3885_v38 }
 0x66c   :  { %v1749_v54 = vmul.f32 %v1654_v56, %v3994_v23 }
 0x66d   :  { %v1769_v32 = vmul.f32 %v3683_v46, %v1750_v61  ;;  %v1149_v56 = vadd.f32 1e-06, %v1135_v30 }
 0x66e   :  { %v1768_v20 = vmul.f32 %v3683_v46, %v1749_v54  ;;  %v1841_v46 = vpop.permute.xlu2 %1840 }
 0x66f   :  { %v1788_v42 = vadd.f32 %v3681_v18, %v1769_v32  ;;  %3145 = vrsqrt.f32 %v1149_v56  ;;  %vm1169_vm7 = vweird.f32 %v1149_v56 }
 0x670   :  { %v1787_v34 = vadd.f32 %v3681_v18, %v1768_v20  ;;  %v1041_v18 = vsel %vm125_vm5, %v3930_v29, 0.0 }
 0x672   :  { %v1806_v17 = vpack.c.bf16 %v1788_v42, %v1787_v34 }
 0x686   :  { %1103 = vadd.xlane.f32.xlu0 %v1102_v39 }
 0x687   :  { %1106 = vadd.xlane.f32.xlu2 %v1105_v51 }
 0x68e   :  { %1109 = vadd.xlane.f32.xlu0 %v1108_v57  ;;  %v1880_v57 = vsel %vm125_vm5, %v1841_v46, 0 }
 0x690   :  { %v1843_v36 = vpop.permute.xlu0 %1842 }
 0x691   :  { %v1883_v3 = vsel %vm125_vm5, %v1843_v36, 0 }
 0x692   :  { %1097 = vadd.xlane.f32.xlu1 %v1096_v10 }
 0x696   :  { %1036 = vadd.xlane.f32.xlu0 %v1035_v52 }
 0x6a9   :  { %v1022_v0 = vpop.xlane.xlu2 %1021 }
 0x6aa   :  { %v1057_v33 = vmul.f32 %v3885_v38, %v1022_v0 }
 0x6ab   :  { %1836 = vrot.lane.b32.xlu1 %v1806_v17, %s3267_s17  ;;  %v3146_v17 = vpop.eup %3145 }
 0x6ac   :  { %v4216_v39 = vsub.f32 %v3859_v37, %v1057_v33  ;;  %vm1170_vm3 = vweird.f32 %v3146_v17 }
 0x6ad   :  { %vm1171_vm8 = vmor %vm1169_vm7, %vm1170_vm3 }
 0x6ae   :  { %v1085_v51 = vmul.f32 %v4216_v39, %v4216_v39 }
 0x6b0   :  { %v1111_v63 = vsel %vm125_vm5, %v1085_v51, 0.0 }
 0x6b1   :  { %v1101_v5 = vpop.xlane.xlu2 %1100 }
 0x6b9   :  { %v1028_v47 = vpop.xlane.xlu2 %1027 }
 0x6ba   :  { %v1059_v19 = vmul.f32 %v3885_v38, %v1028_v47 }
 0x6bb   :  { %v1025_v21 = vpop.xlane.xlu0 %1024 }
 0x6bc   :  { %v1058_v15 = vmul.f32 %v3885_v38, %v1025_v21  ;;  %v4227_v8 = vsub.f32 %v3894_v2, %v1059_v19 }
 0x6be   :  { %v4204_v1 = vsub.f32 %v3877_v53, %v1058_v15  ;;  %v1087_v25 = vmul.f32 %v4227_v8, %v4227_v8  ;;  %v1137_v15 = vmul.f32 %v1101_v5, %v3885_v38 }
 0x6c0   :  { %v1086_v48 = vmul.f32 %v4204_v1, %v4204_v1  ;;  %v1117_v24 = vsel %vm125_vm5, %v1087_v25, 0.0  ;;  %v4249_v0 = vadd.f32 1e-06, %v1137_v15 }
 0x6c2   :  { %v1114_v23 = vsel %vm125_vm5, %v1086_v48, 0.0  ;;  %vm1189_vm13 = vweird.f32 %v4249_v0 }
 0x6c3   :  { %1115 = vadd.xlane.f32.xlu0 %v1114_v23  ;;  %v1164_v23 = vmul.f32 %v3146_v17, %v1149_v56  ;;  %v4274_v56 = vld [vmem:[%s5041_s14] ss:$0 sm:$0xff] }
 0x6c5   :  { %v1165_v31 = vmul.f32 %v3146_v17, %v1164_v23  ;;  %v4285_v23 = vld [vmem:[%s5042_s15] ss:$0 sm:$0xff] }
 0x6cb   :  { %1042 = vadd.xlane.f32.xlu0 %v1041_v18 }
 0x6ce   :  { %v1835_v10 = vpop.permute.xlu0 %1834 }
 0x6d5   :  { %1030 = vadd.xlane.f32.xlu1 %v1029_v58  ;;  %v1833_v58 = vpop.permute.xlu2 %1832 }
 0x6da   :  { %v1845_v45 = vpop.permute.xlu1 %1844 }
 0x6db   :  { %v1886_v59 = vsel %vm125_vm5, %v1845_v45, 0  ;;  %v1166_v45 = vmul.f32 0.5, %v1165_v31 }
 0x6dc   :  { %1889 = vmatpush.bf16.xpose.msra.mxu1 %v1886_v59 }
 0x6dd   :  { %1033 = vadd.xlane.f32.xlu1 %v1032_v50 }
 0x6e4   :  { %1890 = vmatpush.bf16.xpose.msra.mxu1 %v1883_v3  ;;  %v1167_v3 = vsub.f32 1.5, %v1166_v45 }
 0x6e5   :  { %1112 = vadd.xlane.f32.xlu1 %v1111_v63 }
 0x6ec   :  { %1891 = vmatpush.bf16.xpose.msra.mxu1 %v1880_v57 }
 0x6ed   :  { %1039 = vadd.xlane.f32.xlu1 %v1038_v60 }
 0x6f4   :  { %1892 = vmatpush.bf16.xpose.msra.mxu1 %v1877_v9  ;;  %v1168_v9 = vmul.f32 %v3146_v17, %v1167_v3 }
 0x6f5   :  { %1118 = vadd.xlane.f32.xlu1 %v1117_v24 }
 0x6f9   :  { %v1104_v52 = vpop.xlane.xlu0 %1103 }
 0x6fa   :  { %v1138_v36 = vmul.f32 %v1104_v52, %v3885_v38  ;;  %v1107_v63 = vpop.xlane.xlu2 %1106 }
 0x6fb   :  { %v1139_v25 = vmul.f32 %v1107_v63, %v3885_v38 }
 0x6fc   :  { %v4247_v46 = vadd.f32 1e-06, %v1138_v36 }
 0x6fe   :  { %vm1199_vm11 = vweird.f32 %v4247_v46 }
 0x701   :  { %v1110_v41 = vpop.xlane.xlu0 %1109 }
 0x702   :  { %v1140_v19 = vmul.f32 %v1110_v41, %v3885_v38  ;;  %v1871_v41 = vsel %vm125_vm5, %v1835_v10, 0 }
 0x704   :  { %v4261_v52 = vadd.f32 1e-06, %v1140_v19 }
 0x705   :  { %v1098_v26 = vpop.xlane.xlu1 %1097 }
 0x706   :  { %v1136_v61 = vmul.f32 %v1098_v26, %v3885_v38 }
 0x708   :  { %v1150_v54 = vadd.f32 1e-06, %v1136_v61  ;;  %v4265_v61 = vadd.f32 1e-06, %v1139_v25 }
 0x709   :  { %v1037_v32 = vpop.xlane.xlu0 %1036 }
 0x70a   :  { %v1062_v20 = vmul.f32 %v3885_v38, %v1037_v32  ;;  %3147 = vrsqrt.f32 %v1150_v54  ;;  %vm1179_vm4 = vweird.f32 %v1150_v54  ;;  %v1172_v32 = vsel %vm1171_vm8, %v3146_v17, %v1168_v9 }
 0x70b   :  { %3149 = vrsqrt.f32 %v4247_v46  ;;  %v1303_v10 = vmul.f32 %v1172_v32, %v3889_v44 }
 0x70c   :  { %v4240_v42 = vsub.f32 %v3912_v28, %v1062_v20  ;;  %3151 = vrsqrt.f32 %v4249_v0 }
 0x70d   :  { %3153 = vrsqrt.f32 %v4261_v52  ;;  %v1320_v15 = vmul.f32 %v4274_v56, %v1303_v10 }
 0x70e   :  { %v1090_v34 = vmul.f32 %v4240_v42, %v4240_v42  ;;  %3155 = vrsqrt.f32 %v4265_v61 }
 0x710   :  { %v1126_v7 = vsel %vm125_vm5, %v1090_v34, 0.0  ;;  %v3148_v21 = vpop.eup %3147 }
 0x711   :  { %1127 = vadd.xlane.f32.xlu1 %v1126_v7  ;;  %v1174_v48 = vmul.f32 %v3148_v21, %v1150_v54  ;;  %v4253_v51 = vpop.eup %3149  ;;  %vm1180_vm2 = vweird.f32 %v3148_v21  ;;  %v2100_v54 = vpack.c.bf16 %v3930_v29, %v3917_v40 }
 0x712   :  { %v3152_v47 = vpop.eup %3151  ;;  %v1194_v57 = vmul.f32 %v4253_v51, %v4247_v46  ;;  %vm1181_vm6 = vmor %vm1179_vm4, %vm1180_vm2  ;;  %vm1200_vm9 = vweird.f32 %v4253_v51  ;;  %vm1219_vm2 = vweird.f32 %v4261_v52  ;;  %vm1209_vm4 = vweird.f32 %v4265_v61 }
 0x713   :  { %v1175_v18 = vmul.f32 %v3148_v21, %v1174_v48  ;;  %v1184_v24 = vmul.f32 %v3152_v47, %v4249_v0  ;;  %v1868_v48 = vsel %vm125_vm5, %v1833_v58, 0  ;;  %vm1190_vm10 = vweird.f32 %v3152_v47  ;;  %vm1201_vm12 = vmor %vm1199_vm11, %vm1200_vm9 }
 0x714   :  { %v1195_v30 = vmul.f32 %v4253_v51, %v1194_v57  ;;  %vm1191_vm14 = vmor %vm1189_vm13, %vm1190_vm10  ;;  %vm1932_vm13 = vcmask 916480  }
 0x715   :  { %v1176_v33 = vmul.f32 0.5, %v1175_v18  ;;  %v1185_v20 = vmul.f32 %v3152_v47, %v1184_v24 }
 0x716   :  { %v1196_v36 = vmul.f32 0.5, %v1195_v30 }
 0x717   :  { %v1177_v59 = vsub.f32 1.5, %v1176_v33  ;;  %v1186_v17 = vmul.f32 0.5, %v1185_v20 }
 0x719   :  { %v1178_v60 = vmul.f32 %v3148_v21, %v1177_v59  ;;  %v1187_v44 = vsub.f32 1.5, %v1186_v17  ;;  %v1337_v59 = vadd.f32 %v4285_v23, %v1320_v15 }
 0x71b   :  { %v1182_v26 = vsel %vm1181_vm6, %v3148_v21, %v1178_v60  ;;  %v3154_v21 = vpop.eup %3153 }
 0x71c   :  { %v1304_v34 = vmul.f32 %v1182_v26, %v4185_v62  ;;  %v1197_v62 = vsub.f32 1.5, %v1196_v36  ;;  %v3156_v18 = vpop.eup %3155  ;;  %v1214_v45 = vmul.f32 %v3154_v21, %v4261_v52  ;;  %vm1220_vm15 = vweird.f32 %v3154_v21 }
 0x71d   :  { %v1837_v50 = vpop.permute.xlu1 %1836  ;;  %v1204_v58 = vmul.f32 %v3156_v18, %v4265_v61  ;;  %vm1210_vm1 = vweird.f32 %v3156_v18  ;;  %vm1221_vm3 = vmor %vm1219_vm2, %vm1220_vm15 }
 0x71e   :  { %v1874_v5 = vsel %vm125_vm5, %v1837_v50, 0  ;;  %v1321_v7 = vmul.f32 %v4274_v56, %v1304_v34  ;;  %v1198_v33 = vmul.f32 %v4253_v51, %v1197_v62  ;;  %v1188_v50 = vmul.f32 %v3152_v47, %v1187_v44  ;;  %vm1211_vm6 = vmor %vm1209_vm4, %vm1210_vm1 }
 0x71f   :  { %1893 = vmatpush.bf16.xpose.msra.mxu1 %v1874_v5  ;;  %v1215_v63 = vmul.f32 %v3154_v21, %v1214_v45  ;;  %v1205_v57 = vmul.f32 %v3156_v18, %v1204_v58 }
 0x720   :  { %v1338_v31 = vadd.f32 %v4285_v23, %v1321_v7  ;;  %v1202_v3 = vsel %vm1201_vm12, %v4253_v51, %v1198_v33  ;;  %v1192_v19 = vsel %vm1191_vm14, %v3152_v47, %v1188_v50 }
 0x721   :  { %v1306_v60 = vmul.f32 %v1202_v3, %v4166_v14  ;;  %v1216_v25 = vmul.f32 0.5, %v1215_v63  ;;  %v1305_v9 = vmul.f32 %v1192_v19, %v4110_v6  ;;  %v1206_v46 = vmul.f32 0.5, %v1205_v57 }
 0x722   :  { %v1797_v5 = vpack.c.bf16 %v1338_v31, %v1337_v59 }
 0x723   :  { %v1323_v24 = vmul.f32 %v4274_v56, %v1306_v60  ;;  %v1217_v30 = vsub.f32 1.5, %v1216_v25  ;;  %v1322_v26 = vmul.f32 %v4274_v56, %v1305_v9  ;;  %v1207_v0 = vsub.f32 1.5, %v1206_v46 }
 0x725   :  { %v1340_v51 = vadd.f32 %v4285_v23, %v1323_v24  ;;  %v1218_v32 = vmul.f32 %v3154_v21, %v1217_v30  ;;  %v1339_v47 = vadd.f32 %v4285_v23, %v1322_v26  ;;  %v1208_v20 = vmul.f32 %v3156_v18, %v1207_v0 }
 0x727   :  { %1894 = vmatpush.bf16.xpose.msra.mxu1 %v1871_v41  ;;  %v1798_v14 = vpack.c.bf16 %v1340_v51, %v1339_v47  ;;  %v1222_v34 = vsel %vm1221_vm3, %v3154_v21, %v1218_v32 }
 0x728   :  { %v1308_v10 = vmul.f32 %v1222_v34, %v4180_v4 }
 0x72a   :  { %2120 = vrot.lane.b32.xlu1 %v2100_v54, %s3270_s28  ;;  %v1212_v54 = vsel %vm1211_vm6, %v3156_v18, %v1208_v20  ;;  %v1325_v15 = vmul.f32 %v4274_v56, %v1308_v10 }
 0x72b   :  { %v1307_v62 = vmul.f32 %v1212_v54, %v4169_v49 }
 0x72c   :  { %v1342_v18 = vadd.f32 %v4285_v23, %v1325_v15  ;;  %v2098_v15 = vpack.c.bf16 %v3899_v35, %v3894_v2 }
 0x72d   :  { %v1324_v21 = vmul.f32 %v4274_v56, %v1307_v62 }
 0x72f   :  { %1895 = vmatpush.bf16.xpose.msra.mxu1 %v1868_v48  ;;  %v1341_v33 = vadd.f32 %v4285_v23, %v1324_v21 }
 0x731   :  { %v1799_v58 = vpack.c.bf16 %v1342_v18, %v1341_v33 }
 0x736   :  { %2970 = vmatmul.msk.bf16.vlgmr.msra.gmra.mxu1 %vm125_vm5, %v1797_v5  ;;  %v1116_v41 = vpop.xlane.xlu0 %1115 }
 0x737   :  { %v1142_v6 = vmul.f32 %v1116_v41, %v3885_v38 }
 0x739   :  { %v1156_v36 = vadd.f32 1e-06, %v1142_v6 }
 0x73b   :  { %3157 = vrsqrt.f32 %v1156_v36  ;;  %vm1239_vm8 = vweird.f32 %v1156_v36 }
 0x73e   :  { %v1043_v44 = vpop.xlane.xlu0 %1042 }
 0x73f   :  { %v1064_v45 = vmul.f32 %v3885_v38, %v1043_v44 }
 0x741   :  { %v3158_v31 = vpop.eup %3157  ;;  %v4329_v3 = vsub.f32 %v3930_v29, %v1064_v45 }
 0x742   :  { %v1234_v50 = vmul.f32 %v3158_v31, %v1156_v36  ;;  %vm1240_vm7 = vweird.f32 %v3158_v31 }
 0x743   :  { %v1092_v9 = vmul.f32 %v4329_v3, %v4329_v3  ;;  %vm1241_vm9 = vmor %vm1239_vm8, %vm1240_vm7 }
 0x744   :  { %v1235_v19 = vmul.f32 %v3158_v31, %v1234_v50 }
 0x745   :  { %v1132_v24 = vsel %vm125_vm5, %v1092_v9, 0.0 }
 0x746   :  { %2971 = vmatmul.msk.bf16.gmra.mxu1 %vm125_vm5, %v1798_v14  ;;  %v1236_v46 = vmul.f32 0.5, %v1235_v19 }
 0x748   :  { %v1031_v17 = vpop.xlane.xlu1 %1030  ;;  %v1237_v30 = vsub.f32 1.5, %v1236_v46 }
 0x749   :  { %v1060_v7 = vmul.f32 %v3885_v38, %v1031_v17 }
 0x74a   :  { %v1238_v51 = vmul.f32 %v3158_v31, %v1237_v30 }
 0x74b   :  { %v4311_v52 = vsub.f32 %v3899_v35, %v1060_v7 }
 0x74c   :  { %v1242_v14 = vsel %vm1241_vm9, %v3158_v31, %v1238_v51  ;;  %v1811_v31 = vld [vmem:[%s5043_s4] sm:$0xff] }
 0x74d   :  { %v1088_v61 = vmul.f32 %v4311_v52, %v4311_v52  ;;  %v1310_v10 = vmul.f32 %v1242_v14, %v4204_v1 }
 0x74f   :  { %v1120_v48 = vsel %vm125_vm5, %v1088_v61, 0.0  ;;  %v1327_v62 = vmul.f32 %v4274_v56, %v1310_v10 }
 0x750   :  { %1121 = vadd.xlane.f32.xlu2 %v1120_v48  ;;  %v1034_v4 = vpop.xlane.xlu1 %1033  ;;  %v2099_v48 = vpack.c.bf16 %v3912_v28, %v3904_v13 }
 0x751   :  { %v1061_v49 = vmul.f32 %v3885_v38, %v1034_v4  ;;  %v1344_v21 = vadd.f32 %v4285_v23, %v1327_v62  ;;  %v1815_v62 = vld [vmem:[%s5043_s4 + $0x20] sm:$0xff] }
 0x753   :  { %v4323_v59 = vsub.f32 %v3904_v13, %v1061_v49 }
 0x755   :  { %v1089_v5 = vmul.f32 %v4323_v59, %v4323_v59 }
 0x756   :  { %2972 = vmatmul.msk.bf16.gmra.mxu1 %vm125_vm5, %v1799_v58 }
 0x757   :  { %v1123_v63 = vsel %vm125_vm5, %v1089_v5, 0.0 }
 0x758   :  { %1124 = vadd.xlane.f32.xlu0 %v1123_v63  ;;  %v1113_v57 = vpop.xlane.xlu1 %1112  ;;  %v1813_v63 = vld [vmem:[%s5043_s4 + $0x10] sm:$0xff] }
 0x759   :  { %v1141_v60 = vmul.f32 %v1113_v57, %v3885_v38 }
 0x75b   :  { %v1155_v25 = vadd.f32 1e-06, %v1141_v60 }
 0x75d   :  { %3159 = vrsqrt.f32 %v1155_v25  ;;  %vm1229_vm11 = vweird.f32 %v1155_v25 }
 0x760   :  { %1133 = vadd.xlane.f32.xlu0 %v1132_v24  ;;  %v1040_v26 = vpop.xlane.xlu1 %1039 }
 0x761   :  { %v1063_v29 = vmul.f32 %v3885_v38, %v1040_v26 }
 0x763   :  { %v3160_v0 = vpop.eup %3159  ;;  %v4338_v41 = vsub.f32 %v3917_v40, %v1063_v29  ;;  %v1814_v29 = vld [vmem:[%s5043_s4 + $0x18] sm:$0xff] }
 0x764   :  { %v1224_v32 = vmul.f32 %v3160_v0, %v1155_v25  ;;  %vm1230_vm10 = vweird.f32 %v3160_v0 }
 0x765   :  { %v1091_v47 = vmul.f32 %v4338_v41, %v4338_v41  ;;  %vm1231_vm12 = vmor %vm1229_vm11, %vm1230_vm10 }
 0x766   :  { %v1225_v20 = vmul.f32 %v3160_v0, %v1224_v32 }
 0x767   :  { %v1129_v6 = vsel %vm125_vm5, %v1091_v47, 0.0 }
 0x768   :  { %v1226_v34 = vmul.f32 0.5, %v1225_v20  ;;  %1130 = vadd.xlane.f32.xlu2 %v1129_v6  ;;  %v1119_v2 = vpop.xlane.xlu1 %1118 }
 0x769   :  { %v1143_v4 = vmul.f32 %v1119_v2, %v3885_v38 }
 0x76a   :  { %v1227_v54 = vsub.f32 1.5, %v1226_v34 }
 0x76b   :  { %v1157_v18 = vadd.f32 1e-06, %v1143_v4 }
 0x76c   :  { %v1228_v40 = vmul.f32 %v3160_v0, %v1227_v54 }
 0x76d   :  { %3161 = vrsqrt.f32 %v1157_v18  ;;  %vm1249_vm15 = vweird.f32 %v1157_v18 }
 0x76e   :  { %v1232_v17 = vsel %vm1231_vm12, %v3160_v0, %v1228_v40 }
 0x76f   :  { %v1309_v7 = vmul.f32 %v1232_v17, %v4216_v39  ;;  %v2097_v39 = vpack.c.bf16 %v3877_v53, %v3859_v37  ;;  %v1812_v53 = vld [vmem:[%s5043_s4 + $0x8] sm:$0xff] }
 0x771   :  { %v1326_v36 = vmul.f32 %v4274_v56, %v1309_v7 }
 0x773   :  { %v1343_v61 = vadd.f32 %v4285_v23, %v1326_v36  ;;  %v3162_v28 = vpop.eup %3161 }
 0x774   :  { %2116 = vrot.lane.b32.xlu0 %v2098_v15, %s3270_s28  ;;  %v1244_v50 = vmul.f32 %v3162_v28, %v1157_v18  ;;  %vm1250_vm14 = vweird.f32 %v3162_v28 }
 0x775   :  { %v1800_v1 = vpack.c.bf16 %v1344_v21, %v1343_v61  ;;  %vm1251_vm1 = vmor %vm1249_vm15, %vm1250_vm14 }
 0x776   :  { %v1245_v19 = vmul.f32 %v3162_v28, %v1244_v50 }
 0x777   :  { %2973 = vmatmul.msk.bf16.gmra.mxu1 %vm125_vm5, %v1800_v1 }
 0x778   :  { %v1246_v24 = vmul.f32 0.5, %v1245_v19 }
 0x77a   :  { %v1247_v0 = vsub.f32 1.5, %v1246_v24 }
 0x77c   :  { %v1248_v34 = vmul.f32 %v3162_v28, %v1247_v0 }
 0x77e   :  { %v1252_v36 = vsel %vm1251_vm1, %v3162_v28, %v1248_v34 }
 0x77f   :  { %v1311_v2 = vmul.f32 %v1252_v36, %v4227_v8  ;;  %v1816_v8 = vld [vmem:[%s5043_s4 + $0x28] sm:$0xff] }
 0x780   :  { %2118 = vrot.lane.b32.xlu2 %v2099_v48, %s3270_s28 }
 0x784   :  { %v1128_v35 = vpop.xlane.xlu1 %1127 }
 0x785   :  { %v1146_v58 = vmul.f32 %v1128_v35, %v3885_v38 }
 0x787   :  { %v4378_v57 = vadd.f32 1e-06, %v1146_v58 }
 0x788   :  { %2114 = vrot.lane.b32.xlu2 %v2097_v39, %s3270_s28 }
 0x789   :  { %3163 = vrsqrt.f32 %v4378_v57  ;;  %vm1279_vm10 = vweird.f32 %v4378_v57 }
 0x78f   :  { %v4389_v47 = vpop.eup %3163 }
 0x790   :  { %v1274_v40 = vmul.f32 %v4389_v47, %v4378_v57  ;;  %vm1280_vm7 = vweird.f32 %v4389_v47 }
 0x791   :  { %vm1281_vm11 = vmor %vm1279_vm10, %vm1280_vm7 }
 0x792   :  { %v1275_v15 = vmul.f32 %v4389_v47, %v1274_v40 }
 0x79c   :  { %v2121_v44 = vpop.permute.xlu1 %2120 }
 0x79d   :  { %2151 = vmatpush.bf16.msrb.mxu2 %v2121_v44 }
 0x7b3   :  { %v1897_v49 = vpop.f32.mrf.mxu1 }
 0x7b4   :  { %v4363_v13 = vadd.f32 %v1897_v49, %v1811_v31  ;;  %v1276_v31 = vmul.f32 0.5, %v1275_v15 }
 0x7b6   :  { %v1933_v37 = vsel %vm1932_vm13, %v4363_v13, -inf  ;;  %v1277_v58 = vsub.f32 1.5, %v1276_v31 }
 0x7b7   :  { %1934 = vmax.xlane.f32.xlu1 %v1933_v37 }
 0x7bb   :  { %v1899_v33 = vpop.f32.mrf.mxu1 }
 0x7bc   :  { %v4370_v45 = vadd.f32 %v1899_v33, %v1812_v53  ;;  %v1328_v33 = vmul.f32 %v4274_v56, %v1311_v2 }
 0x7be   :  { %v1936_v5 = vsel %vm1932_vm13, %v4370_v45, -inf }
 0x7bf   :  { %1937 = vmax.xlane.f32.xlu2 %v1936_v5 }
 0x7c3   :  { %v1902_v60 = vpop.f32.mrf.mxu1  ;;  %v1122_v25 = vpop.xlane.xlu2 %1121 }
 0x7c4   :  { %v4380_v9 = vadd.f32 %v1902_v60, %v1813_v63  ;;  %v1144_v46 = vmul.f32 %v1122_v25, %v3885_v38 }
 0x7c6   :  { %v1158_v30 = vadd.f32 1e-06, %v1144_v46  ;;  %v1939_v26 = vsel %vm1932_vm13, %v4380_v9, -inf }
 0x7c7   :  { %1940 = vmax.xlane.f32.xlu0 %v1939_v26 }
 0x7c8   :  { %3165 = vrsqrt.f32 %v1158_v30  ;;  %vm1259_vm3 = vweird.f32 %v1158_v30 }
 0x7cb   :  { %v1904_v51 = vpop.f32.mrf.mxu1  ;;  %v1125_v32 = vpop.xlane.xlu0 %1124 }
 0x7cc   :  { %v4391_v20 = vadd.f32 %v1904_v51, %v1814_v29  ;;  %v1145_v6 = vmul.f32 %v1125_v32, %v3885_v38  ;;  %v1278_v51 = vmul.f32 %v4389_v47, %v1277_v58  ;;  %v1818_v58 = vld [vmem:[%s5043_s4 + $0x38] sm:$0xff] }
 0x7ce   :  { %v3166_v14 = vpop.eup %3165  ;;  %v1159_v54 = vadd.f32 1e-06, %v1145_v6  ;;  %v1942_v10 = vsel %vm1932_vm13, %v4391_v20, -inf  ;;  %v1282_v34 = vsel %vm1281_vm11, %v4389_v47, %v1278_v51 }
 0x7cf   :  { %v1254_v17 = vmul.f32 %v3166_v14, %v1158_v30  ;;  %1943 = vmax.xlane.f32.xlu1 %v1942_v10  ;;  %vm1260_vm2 = vweird.f32 %v3166_v14  ;;  %v1345_v30 = vadd.f32 %v4285_v23, %v1328_v33 }
 0x7d0   :  { %3167 = vrsqrt.f32 %v1159_v54  ;;  %vm1261_vm4 = vmor %vm1259_vm3, %vm1260_vm2  ;;  %vm1269_vm8 = vweird.f32 %v1159_v54 }
 0x7d1   :  { %v1255_v7 = vmul.f32 %v3166_v14, %v1254_v17 }
 0x7d3   :  { %v1256_v61 = vmul.f32 0.5, %v1255_v7  ;;  %v1907_v21 = vpop.f32.mrf.mxu1  ;;  %v1134_v1 = vpop.xlane.xlu0 %1133  ;;  %v1314_v7 = vmul.f32 %v1282_v34, %v4240_v42 }
 0x7d4   :  { %v4402_v48 = vadd.f32 %v1907_v21, %v1815_v62  ;;  %v1148_v39 = vmul.f32 %v1134_v1, %v3885_v38 }
 0x7d5   :  { %v1257_v35 = vsub.f32 1.5, %v1256_v61  ;;  %v1331_v21 = vmul.f32 %v4274_v56, %v1314_v7 }
 0x7d6   :  { %v3168_v44 = vpop.eup %3167  ;;  %v4406_v4 = vadd.f32 1e-06, %v1148_v39  ;;  %v1945_v18 = vsel %vm1932_vm13, %v4402_v48, -inf }
 0x7d7   :  { %v1258_v49 = vmul.f32 %v3166_v14, %v1257_v35  ;;  %v1264_v37 = vmul.f32 %v3168_v44, %v1159_v54  ;;  %1946 = vmax.xlane.f32.xlu2 %v1945_v18  ;;  %vm1270_vm6 = vweird.f32 %v3168_v44  ;;  %v1348_v35 = vadd.f32 %v4285_v23, %v1331_v21 }
 0x7d8   :  { %3169 = vrsqrt.f32 %v4406_v4  ;;  %vm1271_vm9 = vmor %vm1269_vm8, %vm1270_vm6  ;;  %vm1299_vm2 = vweird.f32 %v4406_v4 }
 0x7d9   :  { %v1262_v53 = vsel %vm1261_vm4, %v3166_v14, %v1258_v49  ;;  %v1265_v28 = vmul.f32 %v3168_v44, %v1264_v37  ;;  %v1817_v49 = vld [vmem:[%s5043_s4 + $0x30] sm:$0xff] }
 0x7da   :  { %v1312_v50 = vmul.f32 %v1262_v53, %v4311_v52 }
 0x7db   :  { %v1266_v5 = vmul.f32 0.5, %v1265_v28  ;;  %v1909_v63 = vpop.f32.mrf.mxu1  ;;  %v1131_v19 = vpop.xlane.xlu2 %1130 }
 0x7dc   :  { %v4416_v60 = vadd.f32 %v1909_v63, %v1816_v8  ;;  %v1147_v25 = vmul.f32 %v1131_v19, %v3885_v38  ;;  %v1329_v46 = vmul.f32 %v4274_v56, %v1312_v50 }
 0x7dd   :  { %v1267_v24 = vsub.f32 1.5, %v1266_v5 }
 0x7de   :  { %v3170_v26 = vpop.eup %3169  ;;  %v1161_v29 = vadd.f32 1e-06, %v1147_v25  ;;  %v1948_v52 = vsel %vm1932_vm13, %v4416_v60, -inf  ;;  %v1346_v0 = vadd.f32 %v4285_v23, %v1329_v46 }
 0x7df   :  { %v1268_v32 = vmul.f32 %v3168_v44, %v1267_v24  ;;  %v1294_v38 = vmul.f32 %v3170_v26, %v4406_v4  ;;  %1949 = vmax.xlane.f32.xlu0 %v1948_v52  ;;  %vm1300_vm14 = vweird.f32 %v3170_v26  ;;  %v2096_v24 = vpack.c.bf16 %v3857_v12, %v3853_v22 }
 0x7e0   :  { %3171 = vrsqrt.f32 %v1161_v29  ;;  %v1801_v6 = vpack.c.bf16 %v1346_v0, %v1345_v30  ;;  %vm1289_vm15 = vweird.f32 %v1161_v29  ;;  %vm1301_vm3 = vmor %vm1299_vm2, %vm1300_vm14  ;;  %v2094_v12 = vpack.c.bf16 %v3833_v11, %v3827_v27 }
 0x7e1   :  { %v1272_v14 = vsel %vm1271_vm9, %v3168_v44, %v1268_v32  ;;  %v1295_v10 = vmul.f32 %v3170_v26, %v1294_v38 }
 0x7e2   :  { %2974 = vmatmul.msk.bf16.gmra.mxu1 %vm125_vm5, %v1801_v6  ;;  %v1313_v17 = vmul.f32 %v1272_v14, %v4323_v59  ;;  %v1819_v14 = vld [vmem:[%s5043_s4 + $0x40] sm:$0xff] }
 0x7e3   :  { %v2119_v40 = vpop.permute.xlu2 %2118  ;;  %v1296_v36 = vmul.f32 0.5, %v1295_v10 }
 0x7e4   :  { %2152 = vmatpush.bf16.msrb.mxu2 %v2119_v40  ;;  %v1330_v57 = vmul.f32 %v4274_v56, %v1313_v17 }
 0x7e5   :  { %v1297_v1 = vsub.f32 1.5, %v1296_v36 }
 0x7e6   :  { %v3172_v54 = vpop.eup %3171  ;;  %v2117_v62 = vpop.permute.xlu0 %2116  ;;  %v1347_v2 = vadd.f32 %v4285_v23, %v1330_v57  ;;  %v1822_v57 = vld [vmem:[%s5043_s4 + $0x58] sm:$0xff] }
 0x7e7   :  { %v1284_v15 = vmul.f32 %v3172_v54, %v1161_v29  ;;  %vm1290_vm12 = vweird.f32 %v3172_v54  ;;  %v1298_v42 = vmul.f32 %v3170_v26, %v1297_v1 }
 0x7e8   :  { %2153 = vmatpush.bf16.msrb.mxu2 %v2117_v62  ;;  %vm1291_vm1 = vmor %vm1289_vm15, %vm1290_vm12  ;;  %v1802_v18 = vpack.c.bf16 %v1348_v35, %v1347_v2 }
 0x7e9   :  { %v1285_v61 = vmul.f32 %v3172_v54, %v1284_v15  ;;  %v1302_v37 = vsel %vm1301_vm3, %v3170_v26, %v1298_v42 }
 0x7ea   :  { %v1316_v33 = vmul.f32 %v1302_v37, %v4329_v3 }
 0x7eb   :  { %v1286_v39 = vmul.f32 0.5, %v1285_v61  ;;  %v2115_v47 = vpop.permute.xlu2 %2114 }
 0x7ec   :  { %2154 = vmatpush.bf16.msrb.mxu2 %v2115_v47  ;;  %v1333_v5 = vmul.f32 %v4274_v56, %v1316_v33 }
 0x7ed   :  { %v1287_v59 = vsub.f32 1.5, %v1286_v39 }
 0x7ee   :  { %v1350_v25 = vadd.f32 %v4285_v23, %v1333_v5 }
 0x7ef   :  { %v1288_v44 = vmul.f32 %v3172_v54, %v1287_v59 }
 0x7f1   :  { %v1292_v31 = vsel %vm1291_vm1, %v3172_v54, %v1288_v44 }
 0x7f2   :  { %2975 = vmatmul.msk.bf16.gmra.mxu1 %vm125_vm5, %v1802_v18  ;;  %v1315_v53 = vmul.f32 %v1292_v31, %v4338_v41  ;;  %v1821_v18 = vld [vmem:[%s5043_s4 + $0x50] sm:$0xff] }
 0x7f4   :  { %v1912_v28 = vpop.f32.mrf.mxu1  ;;  %v1332_v4 = vmul.f32 %v4274_v56, %v1315_v53 }
 0x7f5   :  { %v4442_v8 = vadd.f32 %v1912_v28, %v1817_v49  ;;  %v1823_v49 = vld [vmem:[%s5043_s4 + $0x60] sm:$0xff] }
 0x7f6   :  { %v1349_v41 = vadd.f32 %v4285_v23, %v1332_v4 }
 0x7f7   :  { %v1951_v50 = vsel %vm1932_vm13, %v4442_v8, -inf }
 0x7f8   :  { %1952 = vmax.xlane.f32.xlu0 %v1951_v50  ;;  %v1803_v46 = vpack.c.bf16 %v1350_v25, %v1349_v41 }
 0x7fc   :  { %v1914_v63 = vpop.f32.mrf.mxu1 }
 0x7fd   :  { %v4453_v19 = vadd.f32 %v1914_v63, %v1818_v58  ;;  %v1824_v63 = vld [vmem:[%s5043_s4 + $0x68] sm:$0xff] }
 0x7ff   :  { %v1954_v3 = vsel %vm1932_vm13, %v4453_v19, -inf }
 0x800   :  { %1955 = vmax.xlane.f32.xlu1 %v1954_v3 }
 0x802   :  { %2976 = vmatmul.msk.bf16.gmra.mxu1 %vm125_vm5, %v1803_v46 }
 0x819   :  { %2112 = vrot.lane.b32.xlu1 %v2096_v24, %s3270_s28 }
 0x82a   :  { %v1935_v56 = vpop.xlane.xlu1 %1934 }
 0x82b   :  { %v1975_v30 = vsub.f32 %v4363_v13, %v1935_v56  ;;  %v2095_v13 = vpack.c.bf16 %v3847_v43, %v3841_v16 }
 0x82d   :  { %v1989_v26 = vmul.f32 1.442695, %v1975_v30 }
 0x82f   :  { %3173 = vpow2.f32 %v1989_v26 }
 0x832   :  { %v1938_v29 = vpop.xlane.xlu2 %1937 }
 0x833   :  { %v1976_v23 = vsub.f32 %v4370_v45, %v1938_v29 }
 0x835   :  { %v4464_v52 = vpop.eup %3173  ;;  %v1991_v0 = vmul.f32 1.442695, %v1976_v23 }
 0x836   :  { %v2017_v51 = vsel %vm1932_vm13, %v4464_v52, 0.0 }
 0x837   :  { %3175 = vpow2.f32 %v1991_v0  ;;  %2018 = vadd.xlane.f32.xlu2 %v2017_v51 }
 0x83a   :  { %v1941_v11 = vpop.xlane.xlu0 %1940 }
 0x83b   :  { %v1977_v16 = vsub.f32 %v4380_v9, %v1941_v11  ;;  %v1820_v9 = vld [vmem:[%s5043_s4 + $0x48] sm:$0xff]  ;;  %s3271_s4 = smov 16  }
 0x83d   :  { %v4468_v32 = vpop.eup %3175 }
 0x83e   :  { %v2020_v22 = vsel %vm1932_vm13, %v4468_v32, 0.0 }
 0x83f   :  { %2021 = vadd.xlane.f32.xlu0 %v2020_v22 }
 0x842   :  { %v1944_v45 = vpop.xlane.xlu1 %1943 }
 0x843   :  { %v1978_v38 = vsub.f32 %v4391_v20, %v1944_v45  ;;  %v1993_v20 = vmul.f32 1.442695, %v1977_v16 }
 0x845   :  { %v1995_v6 = vmul.f32 1.442695, %v1978_v38 }
 0x847   :  { %3177 = vpow2.f32 %v1995_v6 }
 0x848   :  { %3179 = vpow2.f32 %v1993_v20 }
 0x84a   :  { %v1947_v54 = vpop.xlane.xlu2 %1946 }
 0x84b   :  { %v1979_v7 = vsub.f32 %v4402_v48, %v1947_v54 }
 0x84d   :  { %v4487_v43 = vpop.eup %3177  ;;  %v1997_v36 = vmul.f32 1.442695, %v1979_v7 }
 0x84e   :  { %v2026_v17 = vsel %vm1932_vm13, %v4487_v43, 0.0  ;;  %v4492_v15 = vpop.eup %3179 }
 0x84f   :  { %2108 = vrot.lane.b32.xlu2 %v2094_v12, %s3270_s28  ;;  %3181 = vpow2.f32 %v1997_v36  ;;  %v2023_v1 = vsel %vm1932_vm13, %v4492_v15, 0.0 }
 0x852   :  { %v1950_v39 = vpop.xlane.xlu0 %1949 }
 0x853   :  { %2110 = vrot.lane.b32.xlu0 %v2095_v13, %s3270_s28  ;;  %v1980_v35 = vsub.f32 %v4416_v60, %v1950_v39 }
 0x855   :  { %v4510_v42 = vpop.eup %3181  ;;  %v1999_v37 = vmul.f32 1.442695, %v1980_v35 }
 0x856   :  { %v2029_v60 = vsel %vm1932_vm13, %v4510_v42, 0.0 }
 0x85f   :  { %v1917_v34 = vpop.f32.mrf.mxu1 }
 0x860   :  { %v4482_v10 = vadd.f32 %v1917_v34, %v1819_v14 }
 0x862   :  { %v1957_v27 = vsel %vm1932_vm13, %v4482_v10, -inf }
 0x863   :  { %1958 = vmax.xlane.f32.xlu1 %v1957_v27 }
 0x867   :  { %v1919_v40 = vpop.f32.mrf.mxu1 }
 0x868   :  { %v4502_v48 = vadd.f32 %v1919_v40, %v1820_v9 }
 0x86a   :  { %v1960_v44 = vsel %vm1932_vm13, %v4502_v48, -inf }
 0x86b   :  { %2027 = vadd.xlane.f32.xlu1 %v2026_v17  ;;  %v1953_v28 = vpop.xlane.xlu0 %1952 }
 0x86c   :  { %v1981_v58 = vsub.f32 %v4442_v8, %v1953_v28 }
 0x86f   :  { %v1922_v62 = vpop.f32.mrf.mxu1 }
 0x870   :  { %v4522_v33 = vadd.f32 %v1922_v62, %v1821_v18 }
 0x872   :  { %v1963_v5 = vsel %vm1932_vm13, %v4522_v33, -inf }
 0x873   :  { %v1956_v61 = vpop.xlane.xlu1 %1955 }
 0x874   :  { %v1982_v2 = vsub.f32 %v4453_v19, %v1956_v61  ;;  %v2001_v19 = vmul.f32 1.442695, %v1981_v58 }
 0x876   :  { %v2003_v31 = vmul.f32 1.442695, %v1982_v2 }
 0x877   :  { %v1924_v21 = vpop.f32.mrf.mxu1 }
 0x878   :  { %v4504_v47 = vadd.f32 %v1924_v21, %v1822_v57  ;;  %2024 = vadd.xlane.f32.xlu2 %v2023_v1  ;;  %3183 = vpow2.f32 %v2003_v31 }
 0x879   :  { %3185 = vpow2.f32 %v1999_v37 }
 0x87a   :  { %v1966_v59 = vsel %vm1932_vm13, %v4504_v47, -inf  ;;  %3187 = vpow2.f32 %v2001_v19 }
 0x87b   :  { %1967 = vmax.xlane.f32.xlu1 %v1966_v59 }
 0x87d   :  { %1961 = vmax.xlane.f32.xlu0 %v1960_v44 }
 0x87e   :  { %v4534_v41 = vpop.eup %3183 }
 0x87f   :  { %v1927_v53 = vpop.f32.mrf.mxu1  ;;  %v4538_v46 = vpop.eup %3185  ;;  %v2038_v24 = vsel %vm1932_vm13, %v4534_v41, 0.0 }
 0x880   :  { %v4524_v50 = vadd.f32 %v1927_v53, %v1823_v49  ;;  %2030 = vadd.xlane.f32.xlu2 %v2029_v60  ;;  %v2032_v30 = vsel %vm1932_vm13, %v4538_v46, 0.0  ;;  %v4546_v26 = vpop.eup %3187 }
 0x881   :  { %v2035_v29 = vsel %vm1932_vm13, %v4546_v26, 0.0 }
 0x882   :  { %v1969_v4 = vsel %vm1932_vm13, %v4524_v50, -inf }
 0x883   :  { %1970 = vmax.xlane.f32.xlu1 %v1969_v4 }
 0x885   :  { %1964 = vmax.xlane.f32.xlu0 %v1963_v5 }
 0x887   :  { %v1929_v25 = vpop.f32.mrf.mxu1 }
 0x888   :  { %v4536_v3 = vadd.f32 %v1929_v25, %v1824_v63 }
 0x88a   :  { %v1972_v8 = vsel %vm1932_vm13, %v4536_v3, -inf }
 0x88b   :  { %1973 = vmax.xlane.f32.xlu2 %v1972_v8  ;;  %2039 = vadd.xlane.f32.xlu1 %v2038_v24  ;;  %v2113_v56 = vpop.permute.xlu1 %2112 }
 0x88c   :  { %2155 = vmatpush.bf16.msrb.mxu2 %v2113_v56 }
 0x88d   :  { %2033 = vadd.xlane.f32.xlu0 %v2032_v30 }
 0x895   :  { %2036 = vadd.xlane.f32.xlu0 %v2035_v29 }
 0x8aa   :  { %v2019_v0 = vpop.xlane.xlu2 %2018 }
 0x8b2   :  { %v2022_v23 = vpop.xlane.xlu0 %2021  ;;  %v2109_v38 = vpop.permute.xlu2 %2108 }
 0x8b3   :  { %3189 = vrcp.f32 %v2022_v23 }
 0x8b4   :  { %3191 = vrcp.f32 %v2019_v0  ;;  %v4580_v0 = vpop.f32.mrf.mxu2 }
 0x8b9   :  { %v3190_v51 = vpop.eup %3189 }
 0x8ba   :  { %v3192_v12 = vpop.eup %3191  ;;  %v2074_v13 = vmul.f32 %v3190_v51, %v4468_v32 }
 0x8bb   :  { %v2073_v45 = vmul.f32 %v3192_v12, %v4464_v52 }
 0x8bd   :  { %v2087_v6 = vpack.c.bf16 %v2074_v13, %v2073_v45 }
 0x8c5   :  { %v2111_v22 = vpop.permute.xlu0 %2110 }
 0x8c6   :  { %2156 = vmatpush.bf16.msrb.mxu2 %v2111_v22 }
 0x8ca   :  { %2157 = vmatpush.bf16.msrb.mxu2 %v2109_v38 }
 0x8cd   :  { %2977 = vmatmul.msk.bf16.vlgmr.msrb.gmra.mxu2 %vm1932_vm13, %v2087_v6  ;;  %v4583_v6 = vpop.f32.mrf.mxu2 }
 0x8d6   :  { %v1959_v14 = vpop.xlane.xlu1 %1958 }
 0x8d7   :  { %v1983_v34 = vsub.f32 %v4482_v10, %v1959_v14 }
 0x8d9   :  { %v2005_v27 = vmul.f32 1.442695, %v1983_v34  ;;  %v4586_v34 = vpop.f32.mrf.mxu2 }
 0x8db   :  { %3193 = vpow2.f32 %v2005_v27 }
 0x8de   :  { %v2028_v40 = vpop.xlane.xlu1 %2027 }
 0x8df   :  { %3195 = vrcp.f32 %v2028_v40 }
 0x8e1   :  { %v4554_v11 = vpop.eup %3193 }
 0x8e2   :  { %v2041_v16 = vsel %vm1932_vm13, %v4554_v11, 0.0 }
 0x8e3   :  { %2042 = vadd.xlane.f32.xlu2 %v2041_v16 }
 0x8e5   :  { %v3196_v17 = vpop.eup %3195 }
 0x8e6   :  { %v2076_v57 = vmul.f32 %v3196_v17, %v4487_v43 }
 0x8eb   :  { %v2025_v32 = vpop.xlane.xlu2 %2024 }
 0x8ec   :  { %3197 = vrcp.f32 %v2025_v32 }
 0x8ee   :  { %v1968_v52 = vpop.xlane.xlu1 %1967 }
 0x8ef   :  { %v1986_v20 = vsub.f32 %v4504_v47, %v1968_v52  ;;  %v4590_v52 = vpop.f32.mrf.mxu2 }
 0x8f0   :  { %v1962_v54 = vpop.xlane.xlu0 %1961 }
 0x8f1   :  { %v2011_v7 = vmul.f32 1.442695, %v1986_v20  ;;  %v1984_v10 = vsub.f32 %v4502_v48, %v1962_v54 }
 0x8f2   :  { %v3198_v62 = vpop.eup %3197 }
 0x8f3   :  { %3199 = vpow2.f32 %v2011_v7  ;;  %v2007_v36 = vmul.f32 1.442695, %v1984_v10  ;;  %v2075_v9 = vmul.f32 %v3198_v62, %v4492_v15  ;;  %v2031_v21 = vpop.xlane.xlu2 %2030 }
 0x8f5   :  { %3201 = vpow2.f32 %v2007_v36  ;;  %v2088_v61 = vpack.c.bf16 %v2076_v57, %v2075_v9 }
 0x8f6   :  { %v1971_v1 = vpop.xlane.xlu1 %1970 }
 0x8f7   :  { %v1987_v39 = vsub.f32 %v4524_v50, %v1971_v1  ;;  %2978 = vmatmul.msk.bf16.gmra.mxu2 %vm1932_vm13, %v2088_v61  ;;  %v4592_v10 = vpop.f32.mrf.mxu2 }
 0x8f8   :  { %v1965_v47 = vpop.xlane.xlu0 %1964 }
 0x8f9   :  { %v4564_v2 = vpop.eup %3199  ;;  %v2013_v59 = vmul.f32 1.442695, %v1987_v39  ;;  %v1985_v48 = vsub.f32 %v4522_v33, %v1965_v47 }
 0x8fa   :  { %v2050_v35 = vsel %vm1932_vm13, %v4564_v2, 0.0 }
 0x8fb   :  { %v3202_v15 = vpop.eup %3201  ;;  %3203 = vpow2.f32 %v2013_v59  ;;  %v2009_v43 = vmul.f32 1.442695, %v1985_v48  ;;  %2051 = vadd.xlane.f32.xlu2 %v2050_v35 }
 0x8fc   :  { %v2044_v44 = vsel %vm1932_vm13, %v3202_v15, 0.0 }
 0x8fd   :  { %3205 = vpow2.f32 %v2009_v43  ;;  %2045 = vadd.xlane.f32.xlu0 %v2044_v44 }
 0x8fe   :  { %v1974_v18 = vpop.xlane.xlu2 %1973  ;;  %3207 = vrcp.f32 %v2031_v21 }
 0x8ff   :  { %v1988_v31 = vsub.f32 %v4536_v3, %v1974_v18  ;;  %v2040_v3 = vpop.xlane.xlu1 %2039  ;;  %v4595_v36 = vpop.f32.mrf.mxu2  ;;  %v3046_v18 = vld [vmem:[%s5044_s18 + $0x8] sm:$0xff] }
 0x900   :  { %v2034_v49 = vpop.xlane.xlu0 %2033  ;;  %2271 = vmatpush.bf16.msra.mxu3 %v3046_v18 }
 0x901   :  { %v3204_v37 = vpop.eup %3203  ;;  %v2015_v53 = vmul.f32 1.442695, %v1988_v31  ;;  %3209 = vrcp.f32 %v2034_v49  ;;  %v3045_v31 = vld [vmem:[%s5044_s18] sm:$0xff] }
 0x902   :  { %v2053_v33 = vsel %vm1932_vm13, %v3204_v37, 0.0 }
 0x903   :  { %v3206_v60 = vpop.eup %3205  ;;  %3211 = vpow2.f32 %v2015_v53 }
 0x904   :  { %v2047_v28 = vsel %vm1932_vm13, %v3206_v60, 0.0  ;;  %v3208_v50 = vpop.eup %3207  ;;  %2272 = vmatpush.bf16.msra.mxu3 %v3045_v31 }
 0x905   :  { %2048 = vadd.xlane.f32.xlu1 %v2047_v28  ;;  %2054 = vadd.xlane.f32.xlu0 %v2053_v33  ;;  %v2077_v58 = vmul.f32 %v3208_v50, %v4510_v42 }
 0x907   :  { %v3210_v4 = vpop.eup %3209  ;;  %v4597_v9 = vpop.f32.mrf.mxu2 }
 0x908   :  { %v2078_v5 = vmul.f32 %v3210_v4, %v4538_v46  ;;  %v2037_v19 = vpop.xlane.xlu0 %2036  ;;  %v5130_v4 = vld [vmem:[#allocation5_spill] sm:$0xff] }
 0x909   :  { %v3212_v63 = vpop.eup %3211  ;;  %3213 = vrcp.f32 %v2037_v19 }
 0x90a   :  { %v2089_v25 = vpack.c.bf16 %v2078_v5, %v2077_v58  ;;  %v2056_v8 = vsel %vm1932_vm13, %v3212_v63, 0.0  ;;  %3215 = vrcp.f32 %v2040_v3 }
 0x90c   :  { %2979 = vmatmul.msk.bf16.gmra.mxu2 %vm1932_vm13, %v2089_v25 }
 0x90d   :  { %2057 = vadd.xlane.f32.xlu1 %v2056_v8 }
 0x90f   :  { %v3214_v24 = vpop.eup %3213 }
 0x910   :  { %v3216_v56 = vpop.eup %3215  ;;  %v2079_v30 = vmul.f32 %v3214_v24, %v4546_v26 }
 0x911   :  { %v2080_v29 = vmul.f32 %v3216_v56, %v4534_v41 }
 0x913   :  { %v2090_v42 = vpack.c.bf16 %v2080_v29, %v2079_v30 }
 0x91c   :  { %2980 = vmatmul.msk.bf16.gmra.mxu2 %vm1932_vm13, %v2090_v42 }
 0x950   :  { %v2159_v57 = vpop.f32.mrf.mxu2 }
 0x956   :  { %v2043_v46 = vpop.xlane.xlu2 %2042 }
 0x957   :  { %3217 = vrcp.f32 %v2043_v46 }
 0x958   :  { %v2161_v61 = vpop.f32.mrf.mxu2 }
 0x95d   :  { %v3218_v51 = vpop.eup %3217 }
 0x95e   :  { %v2081_v12 = vmul.f32 %v3218_v51, %v4554_v11 }
 0x96e   :  { %v2052_v26 = vpop.xlane.xlu2 %2051 }
 0x970   :  { %v2046_v23 = vpop.xlane.xlu0 %2045 }
 0x971   :  { %3219 = vrcp.f32 %v2046_v23 }
 0x977   :  { %v3220_v22 = vpop.eup %3219 }
 0x978   :  { %v2082_v13 = vmul.f32 %v3220_v22, %v3202_v15  ;;  %v2049_v45 = vpop.xlane.xlu1 %2048  ;;  %v2055_v11 = vpop.xlane.xlu0 %2054 }
 0x979   :  { %3221 = vrcp.f32 %v2049_v45  ;;  %v392_v15 = vpop.f32.mrf.mxu3 }
 0x97a   :  { %v2091_v38 = vpack.c.bf16 %v2082_v13, %v2081_v12  ;;  %3223 = vrcp.f32 %v2052_v26  ;;  %v2164_v21 = vpop.f32.mrf.mxu2  ;;  %v637_v44 = vmul.f32 %v3624_v55, %v392_v15 }
 0x97c   :  { %2981 = vmatmul.msk.bf16.gmra.mxu2 %vm1932_vm13, %v2091_v38 }
 0x97f   :  { %v3222_v41 = vpop.eup %3221 }
 0x980   :  { %v3224_v14 = vpop.eup %3223  ;;  %v2083_v27 = vmul.f32 %v3222_v41, %v3206_v60  ;;  %v2058_v40 = vpop.xlane.xlu1 %2057 }
 0x981   :  { %v2084_v16 = vmul.f32 %v3224_v14, %v4564_v2  ;;  %3225 = vrcp.f32 %v2058_v40  ;;  %v395_v33 = vpop.f32.mrf.mxu3 }
 0x982   :  { %3227 = vrcp.f32 %v2055_v11  ;;  %v2166_v1 = vpop.f32.mrf.mxu2  ;;  %v638_v58 = vmul.f32 %v5130_v4, %v395_v33  ;;  %v3090_v11 = vld [vmem:[%s5045_s19] ss:$0 sm:$0xff]  ;;  %v5135_v33 = vld [vmem:[#allocation15_spill] sm:$0xff] }
 0x983   :  { %v2092_v32 = vpack.c.bf16 %v2084_v16, %v2083_v27 }
 0x987   :  { %v3226_v20 = vpop.eup %3225 }
 0x988   :  { %v3228_v17 = vpop.eup %3227  ;;  %v2086_v54 = vmul.f32 %v3226_v20, %v3212_v63 }
 0x989   :  { %v2085_v7 = vmul.f32 %v3228_v17, %v3204_v37  ;;  %v398_v14 = vpop.f32.mrf.mxu3 }
 0x98b   :  { %v2093_v62 = vpack.c.bf16 %v2086_v54, %v2085_v7  ;;  %v5131_v7 = vld [vmem:[#allocation4_spill] sm:$0xff] }
 0x98c   :  { %2982 = vmatmul.msk.bf16.gmra.mxu2 %vm1932_vm13, %v2092_v32 }
 0x98f   :  { %v2169_v39 = vpop.f32.mrf.mxu2 }
 0x991   :  { %v401_v27 = vpop.f32.mrf.mxu3 }
 0x997   :  { %v2171_v47 = vpop.f32.mrf.mxu2 }
 0x999   :  { %v404_v16 = vpop.f32.mrf.mxu3 }
 0x99c   :  { %2983 = vmatmul.msk.bf16.gmra.mxu2 %vm1932_vm13, %v2093_v62  ;;  %v640_v62 = vmul.f32 %v5131_v7, %v401_v27 }
 0x99f   :  { %v2174_v2 = vpop.f32.mrf.mxu2 }
 0x9a1   :  { %v407_v40 = vpop.f32.mrf.mxu3 }
 0x9a7   :  { %v2176_v59 = vpop.f32.mrf.mxu2 }
 0x9a9   :  { %v4620_v32 = vpop.f32.mrf.mxu3 }
 0x9ff   :  { %v2179_v48 = vpop.f32.mrf.mxu2 }
 0xa00   :  { %v3069_v35 = vpack.i.bf16 %v2179_v48, %v2176_v59 }
 0xa02   :  { %3070 = vrot.lane.b32.xlu2 %v3069_v35, %s3271_s4 }
 0xa07   :  { %v2181_v43 = vpop.f32.mrf.mxu2 }
 0xa0a   :  { %651 = vrot.lane.b32.xlu2 %v637_v44, %s3266_s8 }
 0xa0f   :  { %v2184_v49 = vpop.f32.mrf.mxu2 }
 0xa10   :  { %v3074_v37 = vpack.i.bf16 %v2184_v49, %v2181_v43  ;;  %v5134_v43 = vld [vmem:[#allocation6_spill] sm:$0xff] }
 0xa11   :  { %v641_v44 = vmul.f32 %v5134_v43, %v404_v16 }
 0xa12   :  { %3075 = vrot.lane.b32.xlu0 %v3074_v37, %s3271_s4 }
 0xa17   :  { %v2186_v53 = vpop.f32.mrf.mxu2 }
 0xa1f   :  { %v2189_v60 = vpop.f32.mrf.mxu2 }
 0xa20   :  { %v3079_v28 = vpack.i.bf16 %v2189_v60, %v2186_v53 }
 0xa22   :  { %3080 = vrot.lane.b32.xlu1 %v3079_v28, %s3271_s4 }
 0xa27   :  { %v2191_v50 = vpop.f32.mrf.mxu2 }
 0xa28   :  { %2213 = vrot.lane.b32.xlu0 %v2191_v50, %s3271_s4 }
 0xa2a   :  { %653 = vrot.lane.b32.xlu1 %v638_v58, %s3266_s8 }
 0xa5c   :  { %v3071_v5 = vpop.permute.xlu2 %3070 }
 0xa5d   :  { %v3073_v63 = vunpack.i.h.bf16 %v3071_v5  ;;  %v3072_v19 = vunpack.i.l.bf16 %v3071_v5 }
 0xa5f   :  { %v2223_v25 = vsel %vm125_vm5, %v2161_v61, %v3073_v63  ;;  %v2222_v3 = vsel %vm125_vm5, %v2159_v57, %v3072_v19  ;;  %v5132_v61 = vld [vmem:[#allocation3_spill] sm:$0xff]  ;;  %v5136_v63 = vld [vmem:[#allocation18_spill] sm:$0xff] }
 0xa60   :  { %v2229_v8 = vpack.c.bf16 %v2223_v25, %v2222_v3  ;;  %v5137_v3 = vld [vmem:[#allocation19_spill] sm:$0xff] }
 0xa62   :  { %2992 = vmatmul.msk.bf16.vlgmr.msra.gmra.mxu3 %vm688_vm0, %v2229_v8 }
 0xa64   :  { %v4643_v60 = vpop.permute.xlu2 %651 }
 0xa84   :  { %v3076_v24 = vpop.permute.xlu0 %3075 }
 0xa85   :  { %v3078_v56 = vunpack.i.h.bf16 %v3076_v24  ;;  %v3077_v30 = vunpack.i.l.bf16 %v3076_v24  ;;  %v3272_v24 = vmov 0.0  }
 0xa86   :  { %2322 = vst [vmem:[%s5046_s25] sm:$0xff] %v3272_v24 }
 0xa87   :  { %v2224_v29 = vsel %vm125_vm5, %v2164_v21, %v3077_v30  ;;  %v2225_v42 = vsel %vm125_vm5, %v2166_v1, %v3078_v56  ;;  %v639_v21 = vmul.f32 %v5132_v61, %v398_v14 }
 0xa88   :  { %v2230_v46 = vpack.c.bf16 %v2225_v42, %v2224_v29  ;;  %v5138_v42 = vld [vmem:[#allocation21_spill] sm:$0xff] }
 0xa8a   :  { %2993 = vmatmul.msk.bf16.gmra.mxu3 %vm688_vm0, %v2230_v46 }
 0xa94   :  { %v3081_v23 = vpop.permute.xlu1 %3080 }
 0xa95   :  { %v3083_v51 = vunpack.i.h.bf16 %v3081_v23  ;;  %v3082_v22 = vunpack.i.l.bf16 %v3081_v23 }
 0xa97   :  { %v2226_v12 = vsel %vm125_vm5, %v2169_v39, %v3082_v22  ;;  %v2227_v13 = vsel %vm125_vm5, %v2171_v47, %v3083_v51 }
 0xa98   :  { %v2231_v45 = vpack.c.bf16 %v2227_v13, %v2226_v12  ;;  %v5139_v12 = vld [vmem:[#allocation22_spill] sm:$0xff] }
 0xa9a   :  { %2994 = vmatmul.msk.bf16.gmra.mxu3 %vm688_vm0, %v2231_v45  ;;  %v2214_v38 = vpop.permute.xlu0 %2213  ;;  %v5140_v45 = vld [vmem:[#allocation17_spill] sm:$0xff] }
 0xa9b   :  { %v2228_v26 = vsel %vm125_vm5, %v2174_v2, %v2214_v38  ;;  %v5133_v2 = vld [vmem:[#allocation9_spill] sm:$0xff]  ;;  %vm2323_vm5 = vcmask 125952  }
 0xa9c   :  { %v2232_v41 = vpack.c.bf16 %v2228_v26, %v2228_v26  ;;  %v642_v59 = vmul.f32 %v5133_v2, %v407_v40  ;;  %v654_v29 = vpop.permute.xlu1 %653 }
 0xaaa   :  { %2995 = vmatmul.msk.bf16.gmra.mxu3 %vm688_vm0, %v2232_v41  ;;  %v5141_v41 = vld [vmem:[#allocation20_spill] sm:$0xff] }
 0xae5   :  { %v2274_v20 = vpop.f32.mrf.mxu3 }
 0xae6   :  { %v2275_v17 = vadd.f32 %v3090_v11, %v2274_v20 }
 0xae8   :  { %2329 = vrot.lane.b32.xlu2 %v2275_v17, %s3270_s28 }
 0xaed   :  { %v2276_v54 = vpop.f32.mrf.mxu3 }
 0xaee   :  { %v2277_v57 = vadd.f32 %v3090_v11, %v2276_v54 }
 0xaf0   :  { %657 = vrot.lane.b32.xlu2 %v640_v62, %s3266_s8  ;;  %2331 = vrot.lane.b32.xlu0 %v2277_v57, %s3270_s28  ;;  %v3258_v62 = vld [vmem:[%s5097_s9 + $0x8] sm:$0xff] }
 0xaf8   :  { %655 = vrot.lane.b32.xlu0 %v639_v21, %s3266_s8 }
 0xb0d   :  { %v2279_v1 = vpop.f32.mrf.mxu3 }
 0xb0e   :  { %v2280_v39 = vadd.f32 %v3090_v11, %v2279_v1 }
 0xb10   :  { %2333 = vrot.lane.b32.xlu2 %v2280_v39, %s3270_s28  ;;  %2996 = vmatpush.xpose.msk.msrb.mxu1 %vm688_vm0, %v2280_v39  ;;  %v3259_v39 = vld [vmem:[%s5097_s9 + $0x10] sm:$0xff] }
 0xb14   :  { %2997 = vmatpush.xpose.msk.msrb.mxu1 %vm688_vm0, %v2277_v57 }
 0xb15   :  { %v2281_v47 = vpop.f32.mrf.mxu3 }
 0xb16   :  { %v2282_v48 = vadd.f32 %v3090_v11, %v2281_v47 }
 0xb18   :  { %661 = vrot.lane.b32.xlu2 %v642_v59, %s3266_s8  ;;  %2998 = vmatmul.msk.f32.vlgmr.msrb.gmra.mxu1 %vm688_vm0, %v2282_v48 }
 0xb19   :  { %2335 = vrot.lane.b32.xlu1 %v2282_v48, %s3270_s28 }
 0xb1d   :  { %v2284_v35 = vpop.f32.mrf.mxu3 }
 0xb1e   :  { %v2285_v15 = vadd.f32 %v3090_v11, %v2284_v35  ;;  %v3260_v35 = vld [vmem:[%s5097_s9 + $0x20] sm:$0xff] }
 0xb20   :  { %2337 = vrot.lane.b32.xlu0 %v2285_v15, %s3270_s28 }
 0xb21   :  { %659 = vrot.lane.b32.xlu1 %v641_v44, %s3266_s8 }
 0xb25   :  { %v2286_v18 = vpop.f32.mrf.mxu3 }
 0xb26   :  { %v2287_v31 = vadd.f32 %v3090_v11, %v2286_v18 }
 0xb28   :  { %2339 = vrot.lane.b32.xlu2 %v2287_v31, %s3270_s28 }
 0xb2d   :  { %v2289_v49 = vpop.f32.mrf.mxu3 }
 0xb2e   :  { %v2290_v37 = vadd.f32 %v3090_v11, %v2289_v49  ;;  %v3257_v11 = vld [vmem:[%s5097_s9] sm:$0xff]  ;;  %v3261_v49 = vld [vmem:[%s5097_s9 + $0x30] sm:$0xff] }
 0xb30   :  { %2341 = vrot.lane.b32.xlu2 %v2290_v37, %s3270_s28 }
 0xb35   :  { %v2291_v53 = vpop.f32.mrf.mxu3 }
 0xb42   :  { %v2330_v28 = vpop.permute.xlu2 %2329 }
 0xb43   :  { %v2350_v50 = vmul.f32 %v2330_v28, %v5135_v33  ;;  %v3262_v28 = vld [vmem:[%s5097_s9 + $0x18] sm:$0xff] }
 0xb45   :  { %2364 = vrot.lane.b32.xlu1 %v2350_v50, %s3270_s28 }
 0xb4a   :  { %v4647_v58 = vpop.permute.xlu2 %657 }
 0xb62   :  { %v2332_v5 = vpop.permute.xlu0 %2331 }
 0xb63   :  { %v2351_v19 = vmul.f32 %v2332_v5, %v5136_v63  ;;  %v5142_v5 = vld [vmem:[#allocation7_spill] sm:$0xff] }
 0xb64   :  { %v4715_v63 = vmul.f32 %v5142_v5, %v4580_v0 }
 0xb65   :  { %2366 = vrot.lane.b32.xlu0 %v2351_v19, %s3270_s28 }
 0xb6a   :  { %v2334_v25 = vpop.permute.xlu2 %2333  ;;  %v4660_v23 = vpop.permute.xlu0 %655 }
 0xb6b   :  { %v2352_v8 = vmul.f32 %v2334_v25, %v5137_v3  ;;  %v4721_v25 = vadd.f32 %v4643_v60, %v4715_v63  ;;  %v3263_v3 = vld [vmem:[%s5097_s9 + $0x28] sm:$0xff]  ;;  %v5143_v60 = vld [vmem:[#allocation8_spill] sm:$0xff] }
 0xb6d   :  { %2368 = vrot.lane.b32.xlu1 %v2352_v8, %s3270_s28  ;;  %v679_v24 = vadd.f32 1.0, %v4721_v25 }
 0xb72   :  { %v4656_v56 = vpop.permute.xlu2 %661 }
 0xb82   :  { %v2340_v30 = vpop.permute.xlu2 %2339 }
 0xb83   :  { %v2355_v46 = vmul.f32 %v2340_v30, %v5138_v42  ;;  %v596_v42 = vmul.f32 %v5130_v4, %v4583_v6  ;;  %v5145_v4 = vld [vmem:[#allocation2_spill] sm:$0xff] }
 0xb85   :  { %2374 = vrot.lane.b32.xlu1 %v2355_v46, %s3270_s28  ;;  %v4736_v46 = vmul.f32 %v5143_v60, %v4583_v6 }
 0xb8a   :  { %v2342_v51 = vpop.permute.xlu2 %2341 }
 0xb8b   :  { %v2336_v22 = vpop.permute.xlu1 %2335  ;;  %v2356_v13 = vmul.f32 %v2342_v51, %v5139_v12  ;;  %v4740_v51 = vadd.f32 %v654_v29, %v4736_v46  ;;  %v5144_v12 = vld [vmem:[#allocation10_spill] sm:$0xff] }
 0xb8c   :  { %v2353_v38 = vmul.f32 %v2336_v22, %v5140_v45 }
 0xb8d   :  { %2376 = vrot.lane.b32.xlu1 %v2356_v13, %s3270_s28  ;;  %v680_v22 = vadd.f32 1.0, %v4740_v51  ;;  %v643_v13 = vmul.f32 %v5144_v12, %v4620_v32  ;;  %v598_v32 = vmul.f32 %v5131_v7, %v4590_v52 }
 0xb8e   :  { %2370 = vrot.lane.b32.xlu0 %v2353_v38, %s3270_s28 }
 0xb92   :  { %v2338_v26 = vpop.permute.xlu0 %2337 }
 0xb93   :  { %v2354_v14 = vmul.f32 %v2338_v26, %v5141_v41  ;;  %v4671_v16 = vpop.permute.xlu1 %659  ;;  %v597_v26 = vmul.f32 %v5132_v61, %v4586_v34 }
 0xb95   :  { %v2319_v27 = vpop.f32.mrf.mxu1  ;;  %2372 = vrot.lane.b32.xlu2 %v2354_v14, %s3270_s28  ;;  %v5146_v14 = vld [vmem:[#allocation11_spill] sm:$0xff] }
 0xb96   :  { %2324 = vst.msk [vmem:[%s5046_s25] sm:$0xf] %vm2323_vm5, %v2319_v27  ;;  %v4761_v27 = vmul.f32 %v5146_v14, %v4586_v34 }
 0xb98   :  { %v4766_v61 = vadd.f32 %v4660_v23, %v4761_v27 }
 0xbb7   :  { %v2365_v40 = vpop.permute.xlu1 %2364 }
 0xbb8   :  { %v4676_v20 = vadd.f32 %v3257_v11, %v2365_v40  ;;  %v681_v40 = vadd.f32 1.0, %v4766_v61  ;;  %v5147_v11 = vld [vmem:[#allocation13_spill] sm:$0xff] }
 0xbba   :  { %v2394_v17 = vsel %vm688_vm0, %v4676_v20, 0.0 }
 0xbbb   :  { %2395 = vadd.xlane.f32.xlu0 %v2394_v17  ;;  %v4771_v17 = vmul.f32 %v5147_v11, %v4590_v52  ;;  %v600_v52 = vmul.f32 %v5133_v2, %v4595_v36 }
 0xbbd   :  { %v4776_v7 = vadd.f32 %v4647_v58, %v4771_v17 }
 0xbbf   :  { %v682_v34 = vadd.f32 1.0, %v4776_v7 }
 0xbd7   :  { %v2367_v54 = vpop.permute.xlu0 %2366 }
 0xbd8   :  { %v4683_v57 = vadd.f32 %v3258_v62, %v2367_v54 }
 0xbda   :  { %v2397_v21 = vsel %vm688_vm0, %v4683_v57, 0.0 }
 0xbdb   :  { %2398 = vadd.xlane.f32.xlu2 %v2397_v21 }
 0xbdf   :  { %v2369_v1 = vpop.permute.xlu1 %2368 }
 0xbe0   :  { %v4690_v47 = vadd.f32 %v3259_v39, %v2369_v1  ;;  %v5148_v1 = vld [vmem:[#allocation14_spill] sm:$0xff] }
 0xbe1   :  { %v4790_v58 = vmul.f32 %v5148_v1, %v4595_v36 }
 0xbe2   :  { %v2400_v59 = vsel %vm688_vm0, %v4690_v47, 0.0 }
 0xbe3   :  { %2401 = vadd.xlane.f32.xlu1 %v2400_v59  ;;  %v4796_v59 = vadd.f32 %v4656_v56, %v4790_v58  ;;  %v601_v56 = vmul.f32 %v5144_v12, %v4597_v9  ;;  %v5149_v12 = vld [vmem:[#allocation12_spill] sm:$0xff] }
 0xbef   :  { %v2373_v48 = vpop.permute.xlu2 %2372 }
 0xbf0   :  { %v4697_v15 = vadd.f32 %v3260_v35, %v2373_v48 }
 0xbf2   :  { %v2406_v44 = vsel %vm688_vm0, %v4697_v15, 0.0 }
 0xbf3   :  { %2407 = vadd.xlane.f32.xlu2 %v2406_v44  ;;  %v684_v44 = vadd.f32 1.0, %v4796_v59 }
 0xbf7   :  { %v2375_v18 = vpop.permute.xlu1 %2374 }
 0xbf8   :  { %v4726_v8 = vadd.f32 %v3263_v3, %v2375_v18 }
 0xbfa   :  { %v2409_v30 = vsel %vm688_vm0, %v4726_v8, 0.0 }
 0xbff   :  { %v2377_v31 = vpop.permute.xlu1 %2376 }
 0xc00   :  { %v4704_v37 = vadd.f32 %v3261_v49, %v2377_v31  ;;  %v2371_v53 = vpop.permute.xlu0 %2370 }
 0xc01   :  { %v4709_v33 = vadd.f32 %v3262_v28, %v2371_v53  ;;  %v595_v53 = vmul.f32 %v3624_v55, %v4580_v0 }
 0xc02   :  { %v2412_v50 = vsel %vm688_vm0, %v4704_v37, 0.0 }
 0xc03   :  { %2413 = vadd.xlane.f32.xlu1 %v2412_v50  ;;  %v2403_v19 = vsel %vm688_vm0, %v4709_v33, 0.0 }
 0xc04   :  { %2404 = vadd.xlane.f32.xlu0 %v2403_v19 }
 0xc0b   :  { %2575 = vrot.lane.b32.xlu2 %v679_v24, %s3267_s17 }
 0xc0c   :  { %2410 = vadd.xlane.f32.xlu0 %v2409_v30 }
 0xc1c   :  { %611 = vrot.lane.b32.xlu1 %v596_v42, %s3266_s8 }
 0xc24   :  { %2577 = vrot.lane.b32.xlu1 %v680_v22, %s3267_s17 }
 0xc2c   :  { %663 = vrot.lane.b32.xlu1 %v643_v13, %s3266_s8  ;;  %v4833_v13 = vmul.f32 %v5149_v12, %v4592_v10 }
 0xc2e   :  { %v2396_v45 = vpop.xlane.xlu0 %2395 }
 0xc2f   :  { %v2415_v38 = vmul.f32 %v2396_v45, %v5145_v4 }
 0xc31   :  { %v4749_v6 = vsub.f32 %v4676_v20, %v2415_v38 }
 0xc33   :  { %v2429_v29 = vmul.f32 %v4749_v6, %v4749_v6 }
 0xc34   :  { %613 = vrot.lane.b32.xlu1 %v597_v26, %s3266_s8  ;;  %v4840_v26 = vadd.f32 %v4671_v16, %v4833_v13  ;;  %v599_v16 = vmul.f32 %v5134_v43, %v4592_v10 }
 0xc35   :  { %v2436_v41 = vsel %vm688_vm0, %v2429_v29, 0.0 }
 0xc36   :  { %2437 = vadd.xlane.f32.xlu0 %v2436_v41 }
 0xc3c   :  { %615 = vrot.lane.b32.xlu1 %v598_v32, %s3266_s8  ;;  %v683_v32 = vadd.f32 1.0, %v4840_v26 }
 0xc44   :  { %2579 = vrot.lane.b32.xlu1 %v681_v40, %s3267_s17 }
 0xc4c   :  { %2581 = vrot.lane.b32.xlu1 %v682_v34, %s3267_s17 }
 0xc4e   :  { %v2399_v54 = vpop.xlane.xlu2 %2398 }
 0xc4f   :  { %v2416_v23 = vmul.f32 %v2399_v54, %v5145_v4 }
 0xc51   :  { %v4782_v62 = vsub.f32 %v4683_v57, %v2416_v23 }
 0xc53   :  { %v2430_v21 = vmul.f32 %v4782_v62, %v4782_v62 }
 0xc54   :  { %619 = vrot.lane.b32.xlu1 %v600_v52, %s3266_s8  ;;  %v5150_v52 = vld [vmem:[#allocation16_spill] sm:$0xff] }
 0xc55   :  { %v2439_v39 = vsel %vm688_vm0, %v2430_v21, 0.0  ;;  %v4855_v21 = vmul.f32 %v5150_v52, %v4597_v9  ;;  %v3048_v9 = vld [vmem:[%s5049_s20 + $0x8] sm:$0xff] }
 0xc56   :  { %v2402_v48 = vpop.xlane.xlu1 %2401  ;;  %2440 = vadd.xlane.f32.xlu0 %v2439_v39  ;;  %2652 = vmatpush.bf16.msrb.mxu3 %v3048_v9 }
 0xc57   :  { %v2417_v35 = vmul.f32 %v2402_v48, %v5145_v4 }
 0xc59   :  { %v4800_v2 = vsub.f32 %v4690_v47, %v2417_v35 }
 0xc5b   :  { %v2431_v36 = vmul.f32 %v4800_v2, %v4800_v2 }
 0xc5c   :  { %2585 = vrot.lane.b32.xlu1 %v684_v44, %s3267_s17 }
 0xc5d   :  { %v2442_v18 = vsel %vm688_vm0, %v2431_v36, 0.0  ;;  %v3047_v36 = vld [vmem:[%s5049_s20] sm:$0xff] }
 0xc5e   :  { %2443 = vadd.xlane.f32.xlu2 %v2442_v18  ;;  %2653 = vmatpush.bf16.msrb.mxu3 %v3047_v36 }
 0xc64   :  { %621 = vrot.lane.b32.xlu1 %v601_v56, %s3266_s8 }
 0xc66   :  { %v2408_v31 = vpop.xlane.xlu2 %2407 }
 0xc67   :  { %v2419_v49 = vmul.f32 %v2408_v31, %v5145_v4 }
 0xc69   :  { %v4814_v28 = vsub.f32 %v4697_v15, %v2419_v49 }
 0xc6a   :  { %609 = vrot.lane.b32.xlu0 %v595_v53, %s3266_s8 }
 0xc6b   :  { %v2433_v50 = vmul.f32 %v4814_v28, %v4814_v28 }
 0xc6d   :  { %v2448_v5 = vsel %vm688_vm0, %v2433_v50, 0.0 }
 0xc6e   :  { %2449 = vadd.xlane.f32.xlu2 %v2448_v5 }
 0xc76   :  { %v2414_v19 = vpop.xlane.xlu1 %2413 }
 0xc77   :  { %v2421_v3 = vmul.f32 %v2414_v19, %v5145_v4  ;;  %v2405_v30 = vpop.xlane.xlu0 %2404 }
 0xc78   :  { %v2418_v42 = vmul.f32 %v2405_v30, %v5145_v4 }
 0xc79   :  { %v4822_v24 = vsub.f32 %v4704_v37, %v2421_v3 }
 0xc7a   :  { %v4829_v60 = vsub.f32 %v4709_v33, %v2418_v42  ;;  %v4875_v42 = vld [vmem:[%s5047_s11] ss:$0 sm:$0xff] }
 0xc7b   :  { %v2435_v55 = vmul.f32 %v4822_v24, %v4822_v24 }
 0xc7c   :  { %v2432_v38 = vmul.f32 %v4829_v60, %v4829_v60 }
 0xc7d   :  { %v2454_v0 = vsel %vm688_vm0, %v2435_v55, 0.0 }
 0xc7e   :  { %2455 = vadd.xlane.f32.xlu2 %v2454_v0  ;;  %v2445_v41 = vsel %vm688_vm0, %v2432_v38, 0.0  ;;  %v4881_v38 = vld [vmem:[%s5048_s12] ss:$0 sm:$0xff] }
 0xc7f   :  { %v2411_v22 = vpop.xlane.xlu0 %2410 }
 0xc80   :  { %v2420_v45 = vmul.f32 %v2411_v22, %v5145_v4 }
 0xc82   :  { %v4843_v29 = vsub.f32 %v4726_v8, %v2420_v45 }
 0xc84   :  { %v2434_v14 = vmul.f32 %v4843_v29, %v4843_v29 }
 0xc86   :  { %v2451_v11 = vsel %vm688_vm0, %v2434_v14, 0.0 }
 0xc8e   :  { %v612_v40 = vpop.permute.xlu1 %611 }
 0xc8f   :  { %v631_v52 = vadd.f32 %v612_v40, %v4736_v46 }
 0xc94   :  { %2446 = vadd.xlane.f32.xlu0 %v2445_v41 }
 0xc96   :  { %2583 = vrot.lane.b32.xlu2 %v683_v32, %s3267_s17  ;;  %v2578_v34 = vpop.permute.xlu1 %2577 }
 0xc9c   :  { %2452 = vadd.xlane.f32.xlu0 %v2451_v11 }
 0xc9e   :  { %v664_v54 = vpop.permute.xlu1 %663 }
 0xc9f   :  { %v4859_v1 = vadd.f32 %v664_v54, %v4855_v21 }
 0xca1   :  { %v685_v48 = vadd.f32 1.0, %v4859_v1 }
 0xca9   :  { %v2438_v23 = vpop.xlane.xlu0 %2437 }
 0xcaa   :  { %v2457_v39 = vmul.f32 %v2438_v23, %v5145_v4 }
 0xcac   :  { %v2464_v35 = vadd.f32 1e-05, %v2457_v39 }
 0xcae   :  { %3229 = vrsqrt.f32 %v2464_v35  ;;  %vm2477_vm4 = vweird.f32 %v2464_v35 }
 0xcb0   :  { %617 = vrot.lane.b32.xlu0 %v599_v16, %s3266_s8  ;;  %v2576_v16 = vpop.permute.xlu2 %2575 }
 0xcb4   :  { %v3230_v10 = vpop.eup %3229 }
 0xcb5   :  { %v2472_v43 = vmul.f32 %v3230_v10, %v2464_v35  ;;  %vm2478_vm13 = vweird.f32 %v3230_v10 }
 0xcb6   :  { %vm2479_vm6 = vmor %vm2477_vm4, %vm2478_vm13 }
 0xcb7   :  { %v2473_v44 = vmul.f32 %v3230_v10, %v2472_v43 }
 0xcb8   :  { %2587 = vrot.lane.b32.xlu0 %v685_v48, %s3267_s17 }
 0xcb9   :  { %v2474_v31 = vmul.f32 0.5, %v2473_v44 }
 0xcbb   :  { %v2475_v53 = vsub.f32 1.5, %v2474_v31 }
 0xcbd   :  { %v2476_v50 = vmul.f32 %v3230_v10, %v2475_v53 }
 0xcbf   :  { %v2480_v3 = vsel %vm2479_vm6, %v3230_v10, %v2476_v50 }
 0xcc0   :  { %v2541_v30 = vmul.f32 %v2480_v3, %v4749_v6 }
 0xcc2   :  { %v2551_v45 = vmul.f32 %v4875_v42, %v2541_v30 }
 0xcc4   :  { %v2561_v11 = vadd.f32 %v4881_v38, %v2551_v45 }
 0xcc6   :  { %v2596_v39 = vmul.f32 %v2576_v16, %v2561_v11 }
 0xcc9   :  { %v2441_v18 = vpop.xlane.xlu0 %2440 }
 0xcca   :  { %v2458_v56 = vmul.f32 %v2441_v18, %v5145_v4  ;;  %v4891_v18 = vpop.permute.xlu1 %613 }
 0xccc   :  { %v2465_v49 = vadd.f32 1e-05, %v2458_v56 }
 0xcce   :  { %3231 = vrsqrt.f32 %v2465_v49  ;;  %vm2487_vm8 = vweird.f32 %v2465_v49 }
 0xcd1   :  { %v2444_v9 = vpop.xlane.xlu2 %2443 }
 0xcd4   :  { %v3232_v5 = vpop.eup %3231 }
 0xcd5   :  { %v2482_v19 = vmul.f32 %v3232_v5, %v2465_v49  ;;  %vm2488_vm7 = vweird.f32 %v3232_v5 }
 0xcd6   :  { %vm2489_vm9 = vmor %vm2487_vm8, %vm2488_vm7 }
 0xcd7   :  { %v2483_v55 = vmul.f32 %v3232_v5, %v2482_v19 }
 0xcd9   :  { %v2484_v0 = vmul.f32 0.5, %v2483_v55 }
 0xcdb   :  { %v2485_v22 = vsub.f32 1.5, %v2484_v0 }
 0xcdc   :  { %v610_v32 = vpop.permute.xlu0 %609 }
 0xcdd   :  { %v2486_v12 = vmul.f32 %v3232_v5, %v2485_v22  ;;  %v630_v23 = vadd.f32 %v610_v32, %v4715_v63 }
 0xcdf   :  { %v2490_v41 = vsel %vm2489_vm9, %v3232_v5, %v2486_v12  ;;  %v2603_v10 = vadd.f32 %v2596_v39, %v630_v23 }
 0xce0   :  { %v2542_v6 = vmul.f32 %v2490_v41, %v4782_v62  ;;  %v2459_v62 = vmul.f32 %v2444_v9, %v5145_v4 }
 0xce1   :  { %v2450_v56 = vpop.xlane.xlu2 %2449 }
 0xce2   :  { %v2552_v14 = vmul.f32 %v4875_v42, %v2542_v6  ;;  %v2466_v44 = vadd.f32 1e-05, %v2459_v62  ;;  %v2461_v63 = vmul.f32 %v2450_v56, %v5145_v4 }
 0xce4   :  { %v2562_v54 = vadd.f32 %v4881_v38, %v2552_v14  ;;  %3233 = vrsqrt.f32 %v2466_v44  ;;  %v2468_v40 = vadd.f32 1e-05, %v2461_v63  ;;  %vm2497_vm11 = vweird.f32 %v2466_v44 }
 0xce6   :  { %v2597_v48 = vmul.f32 %v2578_v34, %v2562_v54  ;;  %v616_v34 = vpop.permute.xlu1 %615  ;;  %3235 = vrsqrt.f32 %v2468_v40  ;;  %vm2517_vm5 = vweird.f32 %v2468_v40 }
 0xce8   :  { %v2604_v35 = vadd.f32 %v2597_v48, %v631_v52 }
 0xcea   :  { %v2610_v43 = vpack.c.bf16 %v2604_v35, %v2603_v10  ;;  %v3234_v36 = vpop.eup %3233 }
 0xceb   :  { %v2492_v31 = vmul.f32 %v3234_v36, %v2466_v44  ;;  %vm2498_vm10 = vweird.f32 %v3234_v36 }
 0xcec   :  { %3007 = vmatmul.msk.bf16.vlgmr.msrb.gmra.mxu3 %vm688_vm0, %v2610_v43  ;;  %v4895_v55 = vpop.eup %3235  ;;  %vm2499_vm12 = vmor %vm2497_vm11, %vm2498_vm10 }
 0xced   :  { %v2493_v46 = vmul.f32 %v3234_v36, %v2492_v31  ;;  %v2512_v41 = vmul.f32 %v4895_v55, %v2468_v40  ;;  %vm2518_vm2 = vweird.f32 %v4895_v55 }
 0xcee   :  { %v2580_v45 = vpop.permute.xlu1 %2579  ;;  %vm2519_vm13 = vmor %vm2517_vm5, %vm2518_vm2 }
 0xcef   :  { %v2494_v49 = vmul.f32 0.5, %v2493_v46  ;;  %v2513_v54 = vmul.f32 %v4895_v55, %v2512_v41 }
 0xcf1   :  { %v2495_v19 = vsub.f32 1.5, %v2494_v49  ;;  %v2456_v3 = vpop.xlane.xlu2 %2455  ;;  %v2514_v39 = vmul.f32 0.5, %v2513_v54 }
 0xcf2   :  { %v2463_v0 = vmul.f32 %v2456_v3, %v5145_v4 }
 0xcf3   :  { %v2496_v30 = vmul.f32 %v3234_v36, %v2495_v19 }
 0xcf4   :  { %v4900_v32 = vadd.f32 1e-05, %v2463_v0 }
 0xcf5   :  { %v2500_v11 = vsel %vm2499_vm12, %v3234_v36, %v2496_v30  ;;  %v2515_v36 = vsub.f32 1.5, %v2514_v39  ;;  %v632_v30 = vadd.f32 %v4891_v18, %v4761_v27 }
 0xcf6   :  { %v2543_v52 = vmul.f32 %v2500_v11, %v4800_v2  ;;  %v2582_v43 = vpop.permute.xlu1 %2581  ;;  %vm2537_vm8 = vweird.f32 %v4900_v32 }
 0xcf8   :  { %v2553_v10 = vmul.f32 %v4875_v42, %v2543_v52 }
 0xcfa   :  { %v2563_v63 = vadd.f32 %v4881_v38, %v2553_v10 }
 0xcfc   :  { %v2598_v3 = vmul.f32 %v2580_v45, %v2563_v63 }
 0xcfe   :  { %v620_v41 = vpop.permute.xlu1 %619 }
 0xd07   :  { %v2447_v53 = vpop.xlane.xlu0 %2446 }
 0xd08   :  { %v2460_v50 = vmul.f32 %v2447_v53, %v5145_v4 }
 0xd0a   :  { %v2467_v5 = vadd.f32 1e-05, %v2460_v50  ;;  %v2516_v50 = vmul.f32 %v4895_v55, %v2515_v36 }
 0xd0c   :  { %3237 = vrsqrt.f32 %v2467_v5  ;;  %vm2507_vm15 = vweird.f32 %v2467_v5 }
 0xd0f   :  { %v2453_v22 = vpop.xlane.xlu0 %2452 }
 0xd10   :  { %v2462_v12 = vmul.f32 %v2453_v22, %v5145_v4  ;;  %v633_v22 = vadd.f32 %v616_v34, %v4771_v17  ;;  %v2586_v34 = vpop.permute.xlu1 %2585 }
 0xd12   :  { %v3238_v6 = vpop.eup %3237  ;;  %v2469_v14 = vadd.f32 1e-05, %v2462_v12 }
 0xd13   :  { %v2502_v16 = vmul.f32 %v3238_v6, %v2467_v5  ;;  %vm2508_vm14 = vweird.f32 %v3238_v6 }
 0xd14   :  { %3239 = vrsqrt.f32 %v2469_v14  ;;  %vm2509_vm1 = vmor %vm2507_vm15, %vm2508_vm14  ;;  %vm2527_vm4 = vweird.f32 %v2469_v14 }
 0xd15   :  { %v2503_v23 = vmul.f32 %v3238_v6, %v2502_v16  ;;  %3241 = vrsqrt.f32 %v4900_v32  ;;  %v2605_v16 = vadd.f32 %v2598_v3, %v632_v30 }
 0xd17   :  { %v2504_v4 = vmul.f32 0.5, %v2503_v23 }
 0xd18   :  { %v622_v63 = vpop.permute.xlu1 %621 }
 0xd19   :  { %v2505_v48 = vsub.f32 1.5, %v2504_v4 }
 0xd1a   :  { %v3240_v35 = vpop.eup %3239 }
 0xd1b   :  { %v2506_v9 = vmul.f32 %v3238_v6, %v2505_v48  ;;  %v2522_v62 = vmul.f32 %v3240_v35, %v2469_v14  ;;  %v3242_v44 = vpop.eup %3241  ;;  %vm2528_vm3 = vweird.f32 %v3240_v35 }
 0xd1c   :  { %v2532_v46 = vmul.f32 %v3242_v44, %v4900_v32  ;;  %vm2529_vm6 = vmor %vm2527_vm4, %vm2528_vm3  ;;  %vm2538_vm7 = vweird.f32 %v3242_v44 }
 0xd1d   :  { %v2510_v56 = vsel %vm2509_vm1, %v3238_v6, %v2506_v9  ;;  %v2523_v31 = vmul.f32 %v3240_v35, %v2522_v62  ;;  %v2520_v6 = vsel %vm2519_vm13, %v4895_v55, %v2516_v50  ;;  %vm2539_vm9 = vmor %vm2537_vm8, %vm2538_vm7  ;;  %v3050_v50 = vld [vmem:[%s5051_s22 + $0x8] sm:$0xff] }
 0xd1e   :  { %v2544_v2 = vmul.f32 %v2510_v56, %v4829_v60  ;;  %v2533_v0 = vmul.f32 %v3242_v44, %v2532_v46  ;;  %v2545_v23 = vmul.f32 %v2520_v6, %v4814_v28  ;;  %v635_v28 = vadd.f32 %v620_v41, %v4790_v58 }
 0xd1f   :  { %v2524_v49 = vmul.f32 0.5, %v2523_v31  ;;  %v636_v46 = vadd.f32 %v622_v63, %v4855_v21  ;;  %v3053_v21 = vld [vmem:[%s5051_s22 + $0x20] sm:$0xff] }
 0xd20   :  { %v2554_v53 = vmul.f32 %v4875_v42, %v2544_v2  ;;  %v2534_v45 = vmul.f32 0.5, %v2533_v0  ;;  %v2555_v17 = vmul.f32 %v4875_v42, %v2545_v23 }
 0xd21   :  { %v2525_v5 = vsub.f32 1.5, %v2524_v49 }
 0xd22   :  { %v2564_v19 = vadd.f32 %v4881_v38, %v2554_v53  ;;  %v2535_v27 = vsub.f32 1.5, %v2534_v45  ;;  %v618_v4 = vpop.permute.xlu0 %617  ;;  %v3051_v53 = vld [vmem:[%s5051_s22 + $0x10] sm:$0xff] }
 0xd23   :  { %v2526_v60 = vmul.f32 %v3240_v35, %v2525_v5  ;;  %v634_v48 = vadd.f32 %v618_v4, %v4833_v13  ;;  %v3049_v5 = vld [vmem:[%s5051_s22] sm:$0xff] }
 0xd24   :  { %v2599_v12 = vmul.f32 %v2582_v43, %v2564_v19  ;;  %v2536_v55 = vmul.f32 %v3242_v44, %v2535_v27  ;;  %v4960_v19 = vld [vmem:[%s5050_s21] ss:$0 sm:$0xff] }
 0xd25   :  { %v2530_v11 = vsel %vm2529_vm6, %v3240_v35, %v2526_v60  ;;  %v2584_v35 = vpop.permute.xlu2 %2583 }
 0xd26   :  { %v2546_v40 = vmul.f32 %v2530_v11, %v4843_v29  ;;  %v2606_v54 = vadd.f32 %v2599_v12, %v633_v22  ;;  %v2565_v29 = vadd.f32 %v4881_v38, %v2555_v17  ;;  %v2540_v10 = vsel %vm2539_vm9, %v3242_v44, %v2536_v55  ;;  %v3052_v44 = vld [vmem:[%s5051_s22 + $0x18] sm:$0xff] }
 0xd27   :  { %v2547_v36 = vmul.f32 %v2540_v10, %v4822_v24  ;;  %v3056_v24 = vld [vmem:[%s5051_s22 + $0x38] sm:$0xff] }
 0xd28   :  { %v2556_v14 = vmul.f32 %v4875_v42, %v2546_v40  ;;  %v2611_v52 = vpack.c.bf16 %v2606_v54, %v2605_v16  ;;  %v2600_v43 = vmul.f32 %v2584_v35, %v2565_v29  ;;  %2809 = vmatpush.bf16.msra.mxu0 %v3056_v24 }
 0xd29   :  { %v2557_v31 = vmul.f32 %v4875_v42, %v2547_v36  ;;  %v3055_v42 = vld [vmem:[%s5051_s22 + $0x30] sm:$0xff] }
 0xd2a   :  { %3008 = vmatmul.msk.bf16.gmra.mxu3 %vm688_vm0, %v2611_v52  ;;  %v2566_v18 = vadd.f32 %v4881_v38, %v2556_v14  ;;  %v2607_v62 = vadd.f32 %v2600_v43, %v634_v48  ;;  %v2588_v2 = vpop.permute.xlu0 %2587 }
 0xd2b   :  { %v2567_v32 = vadd.f32 %v4881_v38, %v2557_v31  ;;  %v3054_v38 = vld [vmem:[%s5051_s22 + $0x28] sm:$0xff] }
 0xd2c   :  { %v2601_v39 = vmul.f32 %v2586_v34, %v2566_v18  ;;  %2810 = vmatpush.bf16.msra.mxu0 %v3055_v42 }
 0xd2d   :  { %v2602_v58 = vmul.f32 %v2588_v2, %v2567_v32 }
 0xd2e   :  { %v2608_v9 = vadd.f32 %v2601_v39, %v635_v28 }
 0xd2f   :  { %v2609_v13 = vadd.f32 %v2602_v58, %v636_v46 }
 0xd30   :  { %v2612_v56 = vpack.c.bf16 %v2608_v9, %v2607_v62  ;;  %2811 = vmatpush.bf16.msra.mxu0 %v3054_v38 }
 0xd31   :  { %v2613_v49 = vpack.c.bf16 %v2609_v13, %v2609_v13 }
 0xd34   :  { %2812 = vmatpush.bf16.msra.mxu0 %v3053_v21 }
 0xd38   :  { %2813 = vmatpush.bf16.msra.mxu0 %v3052_v44 }
 0xd3a   :  { %3009 = vmatmul.msk.bf16.gmra.mxu3 %vm688_vm0, %v2612_v56 }
 0xd3c   :  { %2814 = vmatpush.bf16.msra.mxu0 %v3051_v53 }
 0xd40   :  { %2815 = vmatpush.bf16.msra.mxu0 %v3050_v50 }
 0xd44   :  { %2816 = vmatpush.bf16.msra.mxu0 %v3049_v5 }
 0xd4a   :  { %3010 = vmatmul.msk.bf16.gmra.mxu3 %vm688_vm0, %v2613_v49 }
 0xd6f   :  { %v2655_v3 = vpop.f32.mrf.mxu3 }
 0xd70   :  { %v2656_v0 = vadd.f32 %v4960_v19, %v2655_v3 }
 0xd72   :  { %v2681_v60 = vmul.f32 0.044715, %v2656_v0  ;;  %v2674_v17 = vmul.f32 0.5, %v2656_v0 }
 0xd74   :  { %v2688_v30 = vmul.f32 %v2681_v60, %v2656_v0 }
 0xd76   :  { %v2695_v22 = vmul.f32 %v2688_v30, %v2656_v0 }
 0xd77   :  { %v2657_v12 = vpop.f32.mrf.mxu3 }
 0xd78   :  { %v2702_v41 = vadd.f32 %v2695_v22, %v2656_v0  ;;  %v2658_v6 = vadd.f32 %v4960_v19, %v2657_v12 }
 0xd7a   :  { %v2682_v11 = vmul.f32 0.044715, %v2658_v6  ;;  %v2709_v40 = vmul.f32 0.7978846, %v2702_v41  ;;  %v2675_v18 = vmul.f32 0.5, %v2658_v6 }
 0xd7c   :  { %v2689_v16 = vmul.f32 %v2682_v11, %v2658_v6  ;;  %3243 = vtanh.f32 %v2709_v40 }
 0xd7e   :  { %v2696_v54 = vmul.f32 %v2689_v16, %v2658_v6 }
 0xd80   :  { %v2703_v45 = vadd.f32 %v2696_v54, %v2658_v6 }
 0xd82   :  { %v2710_v23 = vmul.f32 0.7978846, %v2703_v45  ;;  %v3244_v14 = vpop.eup %3243 }
 0xd83   :  { %v2723_v52 = vadd.f32 1.0, %v3244_v14 }
 0xd84   :  { %3245 = vtanh.f32 %v2710_v23 }
 0xd85   :  { %v2730_v55 = vmul.f32 %v2723_v52, %v2674_v17 }
 0xd8a   :  { %v3246_v27 = vpop.eup %3245 }
 0xd8b   :  { %v2724_v34 = vadd.f32 1.0, %v3246_v27 }
 0xd8d   :  { %v2731_v4 = vmul.f32 %v2724_v34, %v2675_v18 }
 0xd8f   :  { %v2737_v29 = vpack.c.bf16 %v2731_v4, %v2730_v55 }
 0xd91   :  { %2817 = vmatmul.bf16.vlgmr.msra.gmra.mxu0 %v2737_v29 }
 0xdad   :  { %v2660_v39 = vpop.f32.mrf.mxu3 }
 0xdae   :  { %v2661_v28 = vadd.f32 %v4960_v19, %v2660_v39 }
 0xdb0   :  { %v2683_v48 = vmul.f32 0.044715, %v2661_v28  ;;  %v2676_v3 = vmul.f32 0.5, %v2661_v28 }
 0xdb2   :  { %v2690_v35 = vmul.f32 %v2683_v48, %v2661_v28 }
 0xdb4   :  { %v2697_v10 = vmul.f32 %v2690_v35, %v2661_v28 }
 0xdb5   :  { %v2662_v43 = vpop.f32.mrf.mxu3 }
 0xdb6   :  { %v2663_v9 = vadd.f32 %v4960_v19, %v2662_v43  ;;  %v2704_v62 = vadd.f32 %v2697_v10, %v2661_v28 }
 0xdb8   :  { %v2684_v36 = vmul.f32 0.044715, %v2663_v9  ;;  %v2711_v31 = vmul.f32 0.7978846, %v2704_v62  ;;  %v2677_v0 = vmul.f32 0.5, %v2663_v9 }
 0xdba   :  { %v2691_v56 = vmul.f32 %v2684_v36, %v2663_v9  ;;  %3247 = vtanh.f32 %v2711_v31 }
 0xdbc   :  { %v2698_v2 = vmul.f32 %v2691_v56, %v2663_v9  ;;  %v3094_v56 = vld [vmem:[%s5052_s23] ss:$0 sm:$0xff] }
 0xdbd   :  { %v2665_v32 = vpop.f32.mrf.mxu3 }
 0xdbe   :  { %v2666_v63 = vadd.f32 %v4960_v19, %v2665_v32  ;;  %v2705_v58 = vadd.f32 %v2698_v2, %v2663_v9 }
 0xdc0   :  { %v2685_v46 = vmul.f32 0.044715, %v2666_v63  ;;  %v2712_v13 = vmul.f32 0.7978846, %v2705_v58  ;;  %v3248_v24 = vpop.eup %3247  ;;  %v2678_v29 = vmul.f32 0.5, %v2666_v63 }
 0xdc1   :  { %v2725_v53 = vadd.f32 1.0, %v3248_v24 }
 0xdc2   :  { %3249 = vtanh.f32 %v2712_v13  ;;  %v2692_v49 = vmul.f32 %v2685_v46, %v2666_v63 }
 0xdc3   :  { %v2732_v12 = vmul.f32 %v2725_v53, %v2676_v3 }
 0xdc4   :  { %v2699_v42 = vmul.f32 %v2692_v49, %v2666_v63 }
 0xdc5   :  { %v2667_v38 = vpop.f32.mrf.mxu3 }
 0xdc6   :  { %v2668_v21 = vadd.f32 %v4960_v19, %v2667_v38  ;;  %v2706_v44 = vadd.f32 %v2699_v42, %v2666_v63 }
 0xdc8   :  { %v3250_v50 = vpop.eup %3249  ;;  %v2686_v5 = vmul.f32 0.044715, %v2668_v21  ;;  %v2713_v22 = vmul.f32 0.7978846, %v2706_v44  ;;  %v2679_v39 = vmul.f32 0.5, %v2668_v21 }
 0xdc9   :  { %v2726_v60 = vadd.f32 1.0, %v3250_v50 }
 0xdca   :  { %v2693_v30 = vmul.f32 %v2686_v5, %v2668_v21  ;;  %3251 = vtanh.f32 %v2713_v22 }
 0xdcb   :  { %v2733_v41 = vmul.f32 %v2726_v60, %v2677_v0 }
 0xdcc   :  { %v2700_v6 = vmul.f32 %v2693_v30, %v2668_v21 }
 0xdcd   :  { %v2670_v11 = vpop.f32.mrf.mxu3  ;;  %v2738_v40 = vpack.c.bf16 %v2733_v41, %v2732_v12 }
 0xdce   :  { %v2671_v16 = vadd.f32 %v4960_v19, %v2670_v11  ;;  %v2707_v54 = vadd.f32 %v2700_v6, %v2668_v21 }
 0xdcf   :  { %2822 = vmatmul.bf16.gmra.mxu0 %v2738_v40 }
 0xdd0   :  { %v2714_v45 = vmul.f32 0.7978846, %v2707_v54  ;;  %v2687_v23 = vmul.f32 0.044715, %v2671_v16  ;;  %v3252_v52 = vpop.eup %3251  ;;  %v2680_v9 = vmul.f32 0.5, %v2671_v16 }
 0xdd1   :  { %v2727_v34 = vadd.f32 1.0, %v3252_v52 }
 0xdd2   :  { %3253 = vtanh.f32 %v2714_v45  ;;  %v2694_v14 = vmul.f32 %v2687_v23, %v2671_v16 }
 0xdd3   :  { %v2734_v48 = vmul.f32 %v2727_v34, %v2678_v29 }
 0xdd4   :  { %v2701_v27 = vmul.f32 %v2694_v14, %v2671_v16 }
 0xdd5   :  { %v2672_v17 = vpop.f32.mrf.mxu3 }
 0xdd6   :  { %v2708_v18 = vadd.f32 %v2701_v27, %v2671_v16 }
 0xdd8   :  { %v3254_v55 = vpop.eup %3253  ;;  %v2715_v4 = vmul.f32 0.7978846, %v2708_v18 }
 0xdd9   :  { %v2728_v28 = vadd.f32 1.0, %v3254_v55 }
 0xdda   :  { %3255 = vtanh.f32 %v2715_v4 }
 0xddb   :  { %v2735_v35 = vmul.f32 %v2728_v28, %v2679_v39 }
 0xddd   :  { %v2739_v19 = vpack.c.bf16 %v2735_v35, %v2734_v48 }
 0xddf   :  { %2827 = vmatmul.bf16.gmra.mxu0 %v2739_v19 }
 0xde0   :  { %v3256_v10 = vpop.eup %3255 }
 0xde1   :  { %v2729_v43 = vadd.f32 1.0, %v3256_v10 }
 0xde3   :  { %v2736_v62 = vmul.f32 %v2729_v43, %v2680_v9 }
 0xde5   :  { %v2740_v36 = vpack.c.bf16 %v2736_v62, %v2736_v62 }
 0xdef   :  { %2832 = vmatmul.bf16.gmra.mxu0 %v2740_v36 }
 0xe0e   :  { %v2818_v31 = vpop.f32.mrf.mxu0 }
 0xe0f   :  { %v2819_v2 = vadd.f32 %v3094_v56, %v2818_v31 }
 0xe11   :  { %2844 = vrot.lane.b32.xlu1 %v2819_v2, %s3270_s28 }
 0xe16   :  { %v2820_v32 = vpop.f32.mrf.mxu0 }
 0xe17   :  { %v2821_v63 = vadd.f32 %v3094_v56, %v2820_v32 }
 0xe19   :  { %2846 = vrot.lane.b32.xlu0 %v2821_v63, %s3270_s28 }
 0xe4c   :  { %v2823_v58 = vpop.f32.mrf.mxu0 }
 0xe4d   :  { %v2824_v46 = vadd.f32 %v3094_v56, %v2823_v58 }
 0xe4f   :  { %2848 = vrot.lane.b32.xlu2 %v2824_v46, %s3270_s28 }
 0xe54   :  { %v2825_v13 = vpop.f32.mrf.mxu0 }
 0xe55   :  { %v2826_v49 = vadd.f32 %v3094_v56, %v2825_v13 }
 0xe57   :  { %2850 = vrot.lane.b32.xlu1 %v2826_v49, %s3270_s28 }
 0xe5c   :  { %v2828_v24 = vpop.f32.mrf.mxu0 }
 0xe5d   :  { %v2829_v42 = vadd.f32 %v3094_v56, %v2828_v24 }
 0xe5f   :  { %2852 = vrot.lane.b32.xlu0 %v2829_v42, %s3270_s28 }
 0xe64   :  { %v2830_v38 = vpop.f32.mrf.mxu0 }
 0xe65   :  { %v2831_v21 = vadd.f32 %v3094_v56, %v2830_v38 }
 0xe67   :  { %2854 = vrot.lane.b32.xlu2 %v2831_v21, %s3270_s28 }
 0xe6c   :  { %v2833_v44 = vpop.f32.mrf.mxu0 }
 0xe6d   :  { %v2834_v53 = vadd.f32 %v3094_v56, %v2833_v44 }
 0xe6f   :  { %2856 = vrot.lane.b32.xlu1 %v2834_v53, %s3270_s28 }
 0xe74   :  { %v2835_v50 = vpop.f32.mrf.mxu0 }
 0xe83   :  { %v2845_v5 = vpop.permute.xlu1 %2844 }
 0xe84   :  { %v2865_v3 = vmul.f32 %v2845_v5, %v4721_v25 }
 0xe86   :  { %2879 = vrot.lane.b32.xlu0 %v2865_v3, %s3270_s28 }
 0xe8b   :  { %v2847_v0 = vpop.permute.xlu0 %2846 }
 0xe8c   :  { %v2866_v60 = vmul.f32 %v2847_v0, %v4740_v51 }
 0xe8e   :  { %2881 = vrot.lane.b32.xlu2 %v2866_v60, %s3270_s28 }
 0xea9   :  { %v2849_v30 = vpop.permute.xlu2 %2848 }
 0xeaa   :  { %v2867_v22 = vmul.f32 %v2849_v30, %v4766_v61 }
 0xeac   :  { %2883 = vrot.lane.b32.xlu1 %v2867_v22, %s3270_s28 }
 0xec1   :  { %v2855_v12 = vpop.permute.xlu2 %2854 }
 0xec2   :  { %v2870_v41 = vmul.f32 %v2855_v12, %v4796_v59 }
 0xec4   :  { %2889 = vrot.lane.b32.xlu1 %v2870_v41, %s3270_s28 }
 0xec9   :  { %v2851_v6 = vpop.permute.xlu1 %2850 }
 0xeca   :  { %v2868_v25 = vmul.f32 %v2851_v6, %v4776_v7 }
 0xecc   :  { %2885 = vrot.lane.b32.xlu0 %v2868_v25, %s3270_s28 }
 0xed1   :  { %v2853_v11 = vpop.permute.xlu0 %2852 }
 0xed2   :  { %v2869_v51 = vmul.f32 %v2853_v11, %v4840_v26 }
 0xed4   :  { %2887 = vrot.lane.b32.xlu2 %v2869_v51, %s3270_s28 }
 0xee1   :  { %v2857_v40 = vpop.permute.xlu1 %2856 }
 0xee2   :  { %v2871_v61 = vmul.f32 %v2857_v40, %v4859_v1 }
 0xee4   :  { %2891 = vrot.lane.b32.xlu0 %v2871_v61, %s3270_s28 }
 0xee8   :  { %v2882_v16 = vpop.permute.xlu2 %2881 }
 0xee9   :  { %v2901_v59 = vadd.f32 %v2882_v16, %v4683_v57 }
 0xeeb   :  { %2908 = vst.msk [vmem:[%s5053_s24 + $0x8] sm:$0xff] %vm688_vm0, %v2901_v59 }
 0xef8   :  { %v2880_v7 = vpop.permute.xlu0 %2879 }
 0xef9   :  { %v2900_v54 = vadd.f32 %v2880_v7, %v4676_v20 }
 0xefb   :  { %2907 = vst.msk [vmem:[%s5053_s24] sm:$0xff] %vm688_vm0, %v2900_v54 }
 0xf1e   :  { %v2884_v26 = vpop.permute.xlu1 %2883 }
 0xf1f   :  { %v2902_v1 = vadd.f32 %v2884_v26, %v4690_v47 }
 0xf21   :  { %2909 = vst.msk [vmem:[%s5053_s24 + $0x10] sm:$0xff] %vm688_vm0, %v2902_v1 }
 0xf2e   :  { %v2888_v57 = vpop.permute.xlu2 %2887 }
 0xf2f   :  { %v2904_v45 = vadd.f32 %v2888_v57, %v4697_v15 }
 0xf31   :  { %2911 = vst.msk [vmem:[%s5053_s24 + $0x20] sm:$0xff] %vm688_vm0, %v2904_v45 }
 0xf36   :  { %v2890_v20 = vpop.permute.xlu1 %2889 }
 0xf37   :  { %v2905_v23 = vadd.f32 %v2890_v20, %v4726_v8 }
 0xf39   :  { %2912 = vst.msk [vmem:[%s5053_s24 + $0x28] sm:$0xff] %vm688_vm0, %v2905_v23 }
 0xf3e   :  { %v2886_v47 = vpop.permute.xlu0 %2885 }
 0xf3f   :  { %v2903_v14 = vadd.f32 %v2886_v47, %v4709_v33 }
 0xf41   :  { %2910 = vst.msk [vmem:[%s5053_s24 + $0x18] sm:$0xff] %vm688_vm0, %v2903_v14 }
 0xf56   :  { %v2892_v15 = vpop.permute.xlu0 %2891 }
 0xf57   :  { %v2906_v52 = vadd.f32 %v2892_v15, %v4704_v37 }
 0xf59   :  { %2913 = vst.msk [vmem:[%s5053_s24 + $0x30] sm:$0xff] %vm688_vm0, %v2906_v52 }

</bundles_post_ra>
